<compile_context>
chip_gen: v7x
topology: tpu7x:2x2x1
jax: 0.10.0
libtpu: 0.0.40
codegen_flags: <defaults>
</compile_context>

<pallas_src>
import functools

import jax
import jax.numpy as jnp
from jax import lax
from jax.experimental import pallas as pl
from jax.experimental.pallas import tpu as pltpu

_VMEM = pltpu.MemorySpace.VMEM
_VMEM_LIMIT = 32 * 1024 * 1024


# ---------------------------------------------------------------------------
# Shared serial GRU recurrence. Input projections (gi, (T*B,3H)) are
# precomputed for all time steps; each step does ONE fused (B,H)x(H,3H) MXU
# matmul for the recurrent gates. PyTorch GRUCell gates (gate order r|z|n):
#   r = sig(gi_r + gh_r); z = sig(gi_z + gh_z); n = tanh(gi_n + r*gh_n)
#   h' = (1-z)*n + z*h
# ---------------------------------------------------------------------------
def _gru_recurrence(T, B, H, gi_ref, whh_ref, bhh_ref, h0, h_all_ref=None):
    def step(t, h):
        hb = h.astype(jnp.bfloat16)
        off = pl.multiple_of(t * B, B)          # sublane-aligned (B % 8 == 0)
        gi = gi_ref[pl.ds(off, B), :]                       # (B, 3H) f32
        # single fused hh matmul; whh re-read from VMEM each step (3 vld
        # slots/cycle) instead of pinning 3H*H bf16 in vregs across the loop
        gh = jnp.dot(hb, whh_ref[...],
                     preferred_element_type=jnp.float32) + bhh_ref[...]
        r = jax.nn.sigmoid(gi[:, :H] + gh[:, :H])
        z = jax.nn.sigmoid(gi[:, H:2 * H] + gh[:, H:2 * H])
        n = jnp.tanh(gi[:, 2 * H:] + r * gh[:, 2 * H:])
        h_new = (1.0 - z) * n + z * h
        if h_all_ref is not None:
            h_all_ref[pl.ds(off, B), :] = h_new
        return h_new

    unroll = True if T <= 16 else 8             # bounded unroll for long T
    return lax.fori_loop(0, T, step, h0, unroll=unroll)


# ---------------------------------------------------------------------------
# Encoder kernel: one fused batched input projection + serial recurrence,
# h0 = 0. Only the final hidden state is materialized (the (T,B,H) encoder
# output is never consumed by the non-attention decoder).
# ---------------------------------------------------------------------------
def _encoder_kernel(T, B, H, x_ref, wih_ref, whh_ref, bih_ref, bhh_ref,
                    hn_ref, gi_ref):
    x = x_ref[...]                                           # (T*B, E) bf16
    gi_ref[...] = jnp.dot(x, wih_ref[...],
                          preferred_element_type=jnp.float32) + bih_ref[...]
    h0 = jnp.zeros((B, H), jnp.float32)
    hn_ref[...] = _gru_recurrence(T, B, H, gi_ref, whh_ref, bhh_ref, h0)


def encoder_forward(x_emb_tm, T, B, wih, whh, bih, bhh):
    H = whh.shape[0]
    return pl.pallas_call(
        functools.partial(_encoder_kernel, T, B, H),
        out_shape=jax.ShapeDtypeStruct((B, H), jnp.float32),
        in_specs=[pl.BlockSpec(memory_space=_VMEM)] * 5,
        out_specs=pl.BlockSpec(memory_space=_VMEM),
        scratch_shapes=[pltpu.VMEM((T * B, 3 * H), jnp.float32)],
        compiler_params=pltpu.CompilerParams(vmem_limit_bytes=_VMEM_LIMIT),
    )(x_emb_tm, wih, whh, bih, bhh)


# ---------------------------------------------------------------------------
# Decoder recurrence kernel: relu fused into the batched input projection,
# serial GRU, all hidden states written to an f32 scratch slab and emitted as
# one bf16 (T*B, H) slab for the batched vocab projection.
# ---------------------------------------------------------------------------
def _decoder_rnn_kernel(T, B, H, x_ref, h0_ref, wih_ref, whh_ref, bih_ref,
                        bhh_ref, h_all_ref, gi_ref, h_scratch):
    x = jnp.maximum(x_ref[...], 0.0).astype(jnp.bfloat16)    # relu, batched
    gi_ref[...] = jnp.dot(x, wih_ref[...],
                          preferred_element_type=jnp.float32) + bih_ref[...]
    _gru_recurrence(T, B, H, gi_ref, whh_ref, bhh_ref, h0_ref[...],
                    h_all_ref=h_scratch)
    h_all_ref[...] = h_scratch[...].astype(h_all_ref.dtype)  # bf16 handoff


def decoder_recurrence(x_emb_tm, h0, T, B, wih, whh, bih, bhh):
    H = whh.shape[0]
    return pl.pallas_call(
        functools.partial(_decoder_rnn_kernel, T, B, H),
        out_shape=jax.ShapeDtypeStruct((T * B, H), jnp.bfloat16),
        in_specs=[pl.BlockSpec(memory_space=_VMEM)] * 6,
        out_specs=pl.BlockSpec(memory_space=_VMEM),
        scratch_shapes=[pltpu.VMEM((T * B, 3 * H), jnp.float32),
                        pltpu.VMEM((T * B, H), jnp.float32)],
        compiler_params=pltpu.CompilerParams(vmem_limit_bytes=_VMEM_LIMIT),
    )(x_emb_tm, h0, wih, whh, bih, bhh)


# ---------------------------------------------------------------------------
# Batched vocab projection + log_softmax over a (rows, H) bf16 slab.
# V axis is tiled; a two-pass online log_softmax (running max + sum-exp in
# scratch) keeps each VMEM-resident block at (rt, tv) regardless of V.
# Grid = (row tiles ["parallel"], pass in {0,1}, V tiles) — pass 0 builds the
# row-wise logsumexp, pass 1 recomputes each logits tile and normalizes it.
# ---------------------------------------------------------------------------
def _proj_kernel(h_ref, w_ref, b_ref, out_ref, m_ref, l_ref):
    p = pl.program_id(1)
    k = pl.program_id(2)

    @pl.when(jnp.logical_and(p == 0, k == 0))
    def _():
        m_ref[...] = jnp.full(m_ref.shape, -jnp.inf, jnp.float32)
        l_ref[...] = jnp.zeros(l_ref.shape, jnp.float32)

    logits = jnp.dot(h_ref[...], w_ref[...],
                     preferred_element_type=jnp.float32) + b_ref[...]

    @pl.when(p == 0)
    def _():
        m_prev = m_ref[...]
        m_new = jnp.maximum(m_prev, jnp.max(logits, axis=-1, keepdims=True))
        l_ref[...] = (l_ref[...] * jnp.exp(m_prev - m_new)
                      + jnp.sum(jnp.exp(logits - m_new), axis=-1,
                                keepdims=True))
        m_ref[...] = m_new

    @pl.when(p == 1)
    def _():
        lse = m_ref[...] + jnp.log(l_ref[...])
        out_ref[...] = logits - lse


def _pick_row_tile(rows):
    for cand in (256, 128, 64, 32, 16, 8):
        if rows % cand == 0:
            return cand
    return rows


def _pick_v_tile(V):
    for cand in (2048, 1024, 512, 256, 128):
        if V % cand == 0:
            return cand
    return V   # TODO(synk): pad V to a multiple of 128 for production vocabs


def vocab_projection(h_all, w_t, b):
    rows, H = h_all.shape
    V = w_t.shape[-1]
    rt = _pick_row_tile(rows)
    tv = _pick_v_tile(V)
    return pl.pallas_call(
        _proj_kernel,
        out_shape=jax.ShapeDtypeStruct((rows, V), jnp.float32),
        grid=(rows // rt, 2, V // tv),
        in_specs=[
            pl.BlockSpec((rt, H), lambda i, p, k: (i, 0)),
            pl.BlockSpec((H, tv), lambda i, p, k: (0, k)),
            pl.BlockSpec((1, tv), lambda i, p, k: (0, k)),
        ],
        out_specs=pl.BlockSpec((rt, tv), lambda i, p, k: (i, k)),
        scratch_shapes=[pltpu.VMEM((rt, 1), jnp.float32),
                        pltpu.VMEM((rt, 1), jnp.float32)],
        compiler_params=pltpu.CompilerParams(
            dimension_semantics=("parallel", "arbitrary", "arbitrary"),
            vmem_limit_bytes=_VMEM_LIMIT,
        ),
    )(h_all, w_t, b)


# ---------------------------------------------------------------------------
# Full Seq2Seq forward (glue in plain JAX: embedding gather, tiny reshapes).
# ---------------------------------------------------------------------------
def seq2seq_forward(params, src, tgt, sos_token, max_length):
    B, T_src = src.shape
    H = params["enc_whh"].shape[0]
    assert B % 8 == 0, "pad batch to a multiple of 8 (sublanes)"
    assert H % 128 == 0, "hidden size must be lane-aligned for gate slices"

    # Encoder: gather embeddings directly in time-major order (transpose the
    # small int id matrix instead of the (B, T, E) activations).
    src_ids_tm = src.T.reshape(-1)                            # (T_src*B,)
    enc_x = params["enc_emb"][src_ids_tm].astype(jnp.bfloat16)
    # TODO(synk): dropout(p=0.1) on the encoder embedding is identity here.
    enc_hidden = encoder_forward(
        enc_x, T_src, B,
        params["enc_wih"], params["enc_whh"],
        params["enc_bih"], params["enc_bhh"])
    # (encoder_output (T,B,H) intentionally not materialized — unused by the
    #  non-attention decoder.)

    # Decoder inputs (teacher forcing): [SOS, tgt[:, 0], ..., tgt[:, L-2]].
    sos = jnp.full((B, 1), sos_token, dtype=tgt.dtype)
    dec_tokens = jnp.concatenate([sos, tgt[:, :max_length - 1]], axis=1)
    dec_ids_tm = dec_tokens.T.reshape(-1)                     # (T_dec*B,)
    dec_x = params["dec_emb"][dec_ids_tm].astype(jnp.bfloat16)

    h_all_tm = decoder_recurrence(
        dec_x, enc_hidden, max_length, B,
        params["dec_wih"], params["dec_whh"],
        params["dec_bih"], params["dec_bhh"])                 # (T*B, H) bf16

    # Reorder the H-wide bf16 hidden slab to batch-major so the V-wide output
    # is written directly in (B, T, V) order (no post-hoc transpose of logp).
    h_all_bm = (h_all_tm.reshape(max_length, B, H)
                .transpose(1, 0, 2).reshape(B * max_length, H))

    logp = vocab_projection(h_all_bm, params["out_w_t"], params["out_b"])
    return logp.reshape(B, max_length, -1)                    # (B, T_dec, V)


# ---------------------------------------------------------------------------
# Pure-JAX reference (mirrors the kernel's bf16-at-MXU-boundary policy).
# ---------------------------------------------------------------------------
def _gru_ref(x_bf, h0, wih, whh, bih, bhh):
    wih_f = wih.astype(jnp.float32)
    whh_f = whh.astype(jnp.float32)
    H = whh.shape[0]

    def step(h, x):
        gi = x.astype(jnp.float32) @ wih_f + bih
        gh = h.astype(jnp.bfloat16).astype(jnp.float32) @ whh_f + bhh
        r = jax.nn.sigmoid(gi[:, :H] + gh[:, :H])
        z = jax.nn.sigmoid(gi[:, H:2 * H] + gh[:, H:2 * H])
        n = jnp.tanh(gi[:, 2 * H:] + r * gh[:, 2 * H:])
        h_new = (1.0 - z) * n + z * h
        return h_new, h_new

    h_fin, hs = lax.scan(step, h0, x_bf)
    return hs, h_fin


def seq2seq_ref(params, src, tgt, sos_token, max_length):
    B = src.shape[0]
    H = params["enc_whh"].shape[0]
    enc_x = params["enc_emb"][src.T].astype(jnp.bfloat16)     # (T, B, E)
    _, enc_h = _gru_ref(enc_x, jnp.zeros((B, H), jnp.float32),
                        params["enc_wih"], params["enc_whh"],
                        params["enc_bih"], params["enc_bhh"])
    sos = jnp.full((B, 1), sos_token, tgt.dtype)
    dec_tokens = jnp.concatenate([sos, tgt[:, :max_length - 1]], axis=1)
    dec_x = jnp.maximum(params["dec_emb"][dec_tokens.T],
                        0.0).astype(jnp.bfloat16)
    hs, _ = _gru_ref(dec_x, enc_h, params["dec_wih"], params["dec_whh"],
                     params["dec_bih"], params["dec_bhh"])    # (T, B, H)
    hs_bf = hs.astype(jnp.bfloat16).astype(jnp.float32)
    logits = jnp.einsum("tbh,hv->tbv", hs_bf,
                        params["out_w_t"].astype(jnp.float32)) + params["out_b"]
    logp = jax.nn.log_softmax(logits, axis=-1)
    return jnp.transpose(logp, (1, 0, 2))


def init_params(key, vocab_size, input_size, hidden_size):
    V, E, H = vocab_size, input_size, hidden_size
    ks = jax.random.split(key, 12)
    s = 1.0 / jnp.sqrt(H)

    def u(k, shape):
        return jax.random.uniform(k, shape, jnp.float32, -s, s)

    # Gate-fused (r|z|n concatenated along lanes) weight layout; matmul
    # weights stored bf16.
    return {
        "enc_emb": jax.random.normal(ks[0], (V, E), jnp.float32),
        "enc_wih": u(ks[1], (E, 3 * H)).astype(jnp.bfloat16),
        "enc_whh": u(ks[2], (H, 3 * H)).astype(jnp.bfloat16),
        "enc_bih": u(ks[3], (1, 3 * H)),
        "enc_bhh": u(ks[4], (1, 3 * H)),
        "dec_emb": jax.random.normal(ks[5], (V, E), jnp.float32),
        "dec_wih": u(ks[6], (3 * H * 0 + E, 3 * H)).astype(jnp.bfloat16),
        "dec_whh": u(ks[7], (H, 3 * H)).astype(jnp.bfloat16),
        "dec_bih": u(ks[8], (1, 3 * H)),
        "dec_bhh": u(ks[9], (1, 3 * H)),
        "out_w_t": u(ks[10], (H, V)).astype(jnp.bfloat16),
        "out_b": u(ks[11], (1, V)),
    }


if __name__ == "__main__":
    # Small shapes consistent with the module (input_size=128, hidden/vocab
    # scaled down), chosen so sublanes (B=8) and lanes (H/V multiples of 128)
    # are filled.
    B, T_src, E, H, V = 8, 8, 128, 128, 256
    max_length = 8
    sos_token = 1

    key = jax.random.PRNGKey(0)
    k_p, k_src, k_tgt = jax.random.split(key, 3)

    params = init_params(k_p, V, E, H)
    src = jax.random.randint(k_src, (B, T_src), 0, V, dtype=jnp.int32)
    tgt = jax.random.randint(k_tgt, (B, max_length), 0, V, dtype=jnp.int32)

    fwd = jax.jit(functools.partial(
        seq2seq_forward, sos_token=sos_token, max_length=max_length))
    out = jax.block_until_ready(fwd(params, src, tgt))

    assert out.shape == (B, max_length, V), out.shape
    assert bool(jnp.all(jnp.isfinite(out)))
    # log_softmax sanity: rows sum to ~1 in prob space
    assert jnp.allclose(jnp.sum(jnp.exp(out), axis=-1), 1.0, atol=1e-3)
    # end-to-end check against a pure-JAX reference (same precision policy)
    ref = seq2seq_ref(params, src, tgt, sos_token, max_length)
    assert jnp.allclose(out, ref, atol=2e-2, rtol=2e-2), \
        float(jnp.max(jnp.abs(out - ref)))

    print("KERNEL_OK")
</pallas_src>

<mosaic_0001>
module attributes {stable_mosaic.version = 11 : i64} {
  func.func @_decoder_rnn_kernel(%arg0: memref<64x128xbf16, #tpu.memory_space<vmem>>, %arg1: memref<8x128xf32, #tpu.memory_space<vmem>>, %arg2: memref<128x384xbf16, #tpu.memory_space<vmem>>, %arg3: memref<128x384xbf16, #tpu.memory_space<vmem>>, %arg4: memref<1x384xf32, #tpu.memory_space<vmem>>, %arg5: memref<1x384xf32, #tpu.memory_space<vmem>>, %arg6: memref<64x128xbf16, #tpu.memory_space<vmem>>, %arg7: memref<64x384xf32, #tpu.memory_space<vmem>>, %arg8: memref<64x128xf32, #tpu.memory_space<vmem>>) attributes {dimension_semantics = [], scalar_prefetch = 0 : i64, scratch_operands = 2 : i64, tpu.core_type = #tpu.core_type<tc>} {
    %c0 = arith.constant 0 : index
    %c0_0 = arith.constant 0 : index
    %0 = vector.load %arg0[%c0, %c0_0] : memref<64x128xbf16, #tpu.memory_space<vmem>>, vector<64x128xbf16>
    %cst = arith.constant 0.000000e+00 : bf16
    %1 = vector.broadcast %cst : bf16 to vector<64x128xbf16>
    %2 = arith.maximumf %0, %1 : vector<64x128xbf16>
    %c0_1 = arith.constant 0 : index
    %c0_2 = arith.constant 0 : index
    %3 = vector.load %arg2[%c0_1, %c0_2] : memref<128x384xbf16, #tpu.memory_space<vmem>>, vector<128x384xbf16>
    %cst_3 = arith.constant dense<0.000000e+00> : vector<64x384xf32>
    %4 = tpu.matmul %2, %3, %cst_3 {dimension_numbers = #tpu.dot_dimension_numbers<[1], [0], [0], [1], [0, 0, 1, 1], [], []>} : vector<64x128xbf16>, vector<128x384xbf16>, vector<64x384xf32> -> vector<64x384xf32>
    %c0_4 = arith.constant 0 : index
    %c0_5 = arith.constant 0 : index
    %5 = vector.load %arg4[%c0_4, %c0_5] : memref<1x384xf32, #tpu.memory_space<vmem>>, vector<1x384xf32>
    %6 = vector.broadcast %5 : vector<1x384xf32> to vector<64x384xf32>
    %7 = arith.addf %4, %6 : vector<64x384xf32>
    %c0_6 = arith.constant 0 : index
    %c0_7 = arith.constant 0 : index
    %8 = vector.load %arg7[%c0_6, %c0_7] : memref<64x384xf32, #tpu.memory_space<vmem>>, vector<64x384xf32>
    tpu.vector_store %arg7[%c0_6, %c0_7], %7 {strides = array<i32>} : memref<64x384xf32, #tpu.memory_space<vmem>>, vector<64x384xf32>,
    %c0_8 = arith.constant 0 : index
    %c0_9 = arith.constant 0 : index
    %9 = vector.load %arg1[%c0_8, %c0_9] : memref<8x128xf32, #tpu.memory_space<vmem>>, vector<8x128xf32>
    %c0_i32 = arith.constant 0 : i32
    %10 = arith.truncf %9 : vector<8x128xf32> to vector<8x128xbf16>
    %c8_i32 = arith.constant 8 : i32
    %11 = arith.muli %c0_i32, %c8_i32 : i32
    %12 = tpu.assume_multiple %11, 8 : i32
    %13 = arith.index_cast %12 : i32 to index
    %c0_10 = arith.constant 0 : index
    %14 = vector.load %arg7[%13, %c0_10] : memref<64x384xf32, #tpu.memory_space<vmem>>, vector<8x384xf32>
    %c0_11 = arith.constant 0 : index
    %c0_12 = arith.constant 0 : index
    %15 = vector.load %arg3[%c0_11, %c0_12] : memref<128x384xbf16, #tpu.memory_space<vmem>>, vector<128x384xbf16>
    %cst_13 = arith.constant dense<0.000000e+00> : vector<8x384xf32>
    %16 = tpu.matmul %10, %15, %cst_13 {dimension_numbers = #tpu.dot_dimension_numbers<[1], [0], [0], [1], [0, 0, 1, 1], [], []>} : vector<8x128xbf16>, vector<128x384xbf16>, vector<8x384xf32> -> vector<8x384xf32>
    %c0_14 = arith.constant 0 : index
    %c0_15 = arith.constant 0 : index
    %17 = vector.load %arg5[%c0_14, %c0_15] : memref<1x384xf32, #tpu.memory_space<vmem>>, vector<1x384xf32>
    %18 = vector.broadcast %17 : vector<1x384xf32> to vector<8x384xf32>
    %19 = arith.addf %16, %18 : vector<8x384xf32>
    %20 = vector.extract_strided_slice %14 {offsets = [0, 0], sizes = [8, 128], strides = [1, 1]} : vector<8x384xf32> to vector<8x128xf32>
    %21 = vector.extract_strided_slice %19 {offsets = [0, 0], sizes = [8, 128], strides = [1, 1]} : vector<8x384xf32> to vector<8x128xf32>
    %22 = arith.addf %20, %21 : vector<8x128xf32>
    %23 = arith.negf %22 : vector<8x128xf32>
    %24 = math.exp %23 : vector<8x128xf32>
    %cst_16 = arith.constant 1.000000e+00 : f32
    %25 = vector.broadcast %cst_16 : f32 to vector<8x128xf32>
    %26 = arith.addf %25, %24 : vector<8x128xf32>
    %27 = arith.divf %25, %26 : vector<8x128xf32>
    %28 = vector.extract_strided_slice %14 {offsets = [0, 128], sizes = [8, 128], strides = [1, 1]} : vector<8x384xf32> to vector<8x128xf32>
    %29 = vector.extract_strided_slice %19 {offsets = [0, 128], sizes = [8, 128], strides = [1, 1]} : vector<8x384xf32> to vector<8x128xf32>
    %30 = arith.addf %28, %29 : vector<8x128xf32>
    %31 = arith.negf %30 : vector<8x128xf32>
    %32 = math.exp %31 : vector<8x128xf32>
    %cst_17 = arith.constant 1.000000e+00 : f32
    %33 = vector.broadcast %cst_17 : f32 to vector<8x128xf32>
    %34 = arith.addf %33, %32 : vector<8x128xf32>
    %35 = arith.divf %33, %34 : vector<8x128xf32>
    %36 = vector.extract_strided_slice %14 {offsets = [0, 256], sizes = [8, 128], strides = [1, 1]} : vector<8x384xf32> to vector<8x128xf32>
    %37 = vector.extract_strided_slice %19 {offsets = [0, 256], sizes = [8, 128], strides = [1, 1]} : vector<8x384xf32> to vector<8x128xf32>
    %38 = arith.mulf %27, %37 : vector<8x128xf32>
    %39 = arith.addf %36, %38 : vector<8x128xf32>
    %40 = math.tanh %39 : vector<8x128xf32>
    %cst_18 = arith.constant 1.000000e+00 : f32
    %41 = vector.broadcast %cst_18 : f32 to vector<8x128xf32>
    %42 = arith.subf %41, %35 : vector<8x128xf32>
    %43 = arith.mulf %42, %40 : vector<8x128xf32>
    %44 = arith.mulf %35, %9 : vector<8x128xf32>
    %45 = arith.addf %43, %44 : vector<8x128xf32>
    %46 = arith.index_cast %12 : i32 to index
    %c0_19 = arith.constant 0 : index
    %47 = vector.load %arg8[%46, %c0_19] : memref<64x128xf32, #tpu.memory_space<vmem>>, vector<8x128xf32>
    tpu.vector_store %arg8[%46, %c0_19], %45 {strides = array<i32>} : memref<64x128xf32, #tpu.memory_space<vmem>>, vector<8x128xf32>,
    %c1_i32 = arith.constant 1 : i32
    %48 = arith.truncf %45 : vector<8x128xf32> to vector<8x128xbf16>
    %c8_i32_20 = arith.constant 8 : i32
    %49 = arith.muli %c1_i32, %c8_i32_20 : i32
    %50 = tpu.assume_multiple %49, 8 : i32
    %51 = arith.index_cast %50 : i32 to index
    %c0_21 = arith.constant 0 : index
    %52 = vector.load %arg7[%51, %c0_21] : memref<64x384xf32, #tpu.memory_space<vmem>>, vector<8x384xf32>
    %c0_22 = arith.constant 0 : index
    %c0_23 = arith.constant 0 : index
    %53 = vector.load %arg3[%c0_22, %c0_23] : memref<128x384xbf16, #tpu.memory_space<vmem>>, vector<128x384xbf16>
    %cst_24 = arith.constant dense<0.000000e+00> : vector<8x384xf32>
    %54 = tpu.matmul %48, %53, %cst_24 {dimension_numbers = #tpu.dot_dimension_numbers<[1], [0], [0], [1], [0, 0, 1, 1], [], []>} : vector<8x128xbf16>, vector<128x384xbf16>, vector<8x384xf32> -> vector<8x384xf32>
    %c0_25 = arith.constant 0 : index
    %c0_26 = arith.constant 0 : index
    %55 = vector.load %arg5[%c0_25, %c0_26] : memref<1x384xf32, #tpu.memory_space<vmem>>, vector<1x384xf32>
    %56 = vector.broadcast %55 : vector<1x384xf32> to vector<8x384xf32>
    %57 = arith.addf %54, %56 : vector<8x384xf32>
    %58 = vector.extract_strided_slice %52 {offsets = [0, 0], sizes = [8, 128], strides = [1, 1]} : vector<8x384xf32> to vector<8x128xf32>
    %59 = vector.extract_strided_slice %57 {offsets = [0, 0], sizes = [8, 128], strides = [1, 1]} : vector<8x384xf32> to vector<8x128xf32>
    %60 = arith.addf %58, %59 : vector<8x128xf32>
    %61 = arith.negf %60 : vector<8x128xf32>
    %62 = math.exp %61 : vector<8x128xf32>
    %cst_27 = arith.constant 1.000000e+00 : f32
    %63 = vector.broadcast %cst_27 : f32 to vector<8x128xf32>
    %64 = arith.addf %63, %62 : vector<8x128xf32>
    %65 = arith.divf %63, %64 : vector<8x128xf32>
    %66 = vector.extract_strided_slice %52 {offsets = [0, 128], sizes = [8, 128], strides = [1, 1]} : vector<8x384xf32> to vector<8x128xf32>
    %67 = vector.extract_strided_slice %57 {offsets = [0, 128], sizes = [8, 128], strides = [1, 1]} : vector<8x384xf32> to vector<8x128xf32>
    %68 = arith.addf %66, %67 : vector<8x128xf32>
    %69 = arith.negf %68 : vector<8x128xf32>
    %70 = math.exp %69 : vector<8x128xf32>
    %cst_28 = arith.constant 1.000000e+00 : f32
    %71 = vector.broadcast %cst_28 : f32 to vector<8x128xf32>
    %72 = arith.addf %71, %70 : vector<8x128xf32>
    %73 = arith.divf %71, %72 : vector<8x128xf32>
    %74 = vector.extract_strided_slice %52 {offsets = [0, 256], sizes = [8, 128], strides = [1, 1]} : vector<8x384xf32> to vector<8x128xf32>
    %75 = vector.extract_strided_slice %57 {offsets = [0, 256], sizes = [8, 128], strides = [1, 1]} : vector<8x384xf32> to vector<8x128xf32>
    %76 = arith.mulf %65, %75 : vector<8x128xf32>
    %77 = arith.addf %74, %76 : vector<8x128xf32>
    %78 = math.tanh %77 : vector<8x128xf32>
    %cst_29 = arith.constant 1.000000e+00 : f32
    %79 = vector.broadcast %cst_29 : f32 to vector<8x128xf32>
    %80 = arith.subf %79, %73 : vector<8x128xf32>
    %81 = arith.mulf %80, %78 : vector<8x128xf32>
    %82 = arith.mulf %73, %45 : vector<8x128xf32>
    %83 = arith.addf %81, %82 : vector<8x128xf32>
    %84 = arith.index_cast %50 : i32 to index
    %c0_30 = arith.constant 0 : index
    %85 = vector.load %arg8[%84, %c0_30] : memref<64x128xf32, #tpu.memory_space<vmem>>, vector<8x128xf32>
    tpu.vector_store %arg8[%84, %c0_30], %83 {strides = array<i32>} : memref<64x128xf32, #tpu.memory_space<vmem>>, vector<8x128xf32>,
    %c2_i32 = arith.constant 2 : i32
    %86 = arith.truncf %83 : vector<8x128xf32> to vector<8x128xbf16>
    %c8_i32_31 = arith.constant 8 : i32
    %87 = arith.muli %c2_i32, %c8_i32_31 : i32
    %88 = tpu.assume_multiple %87, 8 : i32
    %89 = arith.index_cast %88 : i32 to index
    %c0_32 = arith.constant 0 : index
    %90 = vector.load %arg7[%89, %c0_32] : memref<64x384xf32, #tpu.memory_space<vmem>>, vector<8x384xf32>
    %c0_33 = arith.constant 0 : index
    %c0_34 = arith.constant 0 : index
    %91 = vector.load %arg3[%c0_33, %c0_34] : memref<128x384xbf16, #tpu.memory_space<vmem>>, vector<128x384xbf16>
    %cst_35 = arith.constant dense<0.000000e+00> : vector<8x384xf32>
    %92 = tpu.matmul %86, %91, %cst_35 {dimension_numbers = #tpu.dot_dimension_numbers<[1], [0], [0], [1], [0, 0, 1, 1], [], []>} : vector<8x128xbf16>, vector<128x384xbf16>, vector<8x384xf32> -> vector<8x384xf32>
    %c0_36 = arith.constant 0 : index
    %c0_37 = arith.constant 0 : index
    %93 = vector.load %arg5[%c0_36, %c0_37] : memref<1x384xf32, #tpu.memory_space<vmem>>, vector<1x384xf32>
    %94 = vector.broadcast %93 : vector<1x384xf32> to vector<8x384xf32>
    %95 = arith.addf %92, %94 : vector<8x384xf32>
    %96 = vector.extract_strided_slice %90 {offsets = [0, 0], sizes = [8, 128], strides = [1, 1]} : vector<8x384xf32> to vector<8x128xf32>
    %97 = vector.extract_strided_slice %95 {offsets = [0, 0], sizes = [8, 128], strides = [1, 1]} : vector<8x384xf32> to vector<8x128xf32>
    %98 = arith.addf %96, %97 : vector<8x128xf32>
    %99 = arith.negf %98 : vector<8x128xf32>
    %100 = math.exp %99 : vector<8x128xf32>
    %cst_38 = arith.constant 1.000000e+00 : f32
    %101 = vector.broadcast %cst_38 : f32 to vector<8x128xf32>
    %102 = arith.addf %101, %100 : vector<8x128xf32>
    %103 = arith.divf %101, %102 : vector<8x128xf32>
    %104 = vector.extract_strided_slice %90 {offsets = [0, 128], sizes = [8, 128], strides = [1, 1]} : vector<8x384xf32> to vector<8x128xf32>
    %105 = vector.extract_strided_slice %95 {offsets = [0, 128], sizes = [8, 128], strides = [1, 1]} : vector<8x384xf32> to vector<8x128xf32>
    %106 = arith.addf %104, %105 : vector<8x128xf32>
    %107 = arith.negf %106 : vector<8x128xf32>
    %108 = math.exp %107 : vector<8x128xf32>
    %cst_39 = arith.constant 1.000000e+00 : f32
    %109 = vector.broadcast %cst_39 : f32 to vector<8x128xf32>
    %110 = arith.addf %109, %108 : vector<8x128xf32>
    %111 = arith.divf %109, %110 : vector<8x128xf32>
    %112 = vector.extract_strided_slice %90 {offsets = [0, 256], sizes = [8, 128], strides = [1, 1]} : vector<8x384xf32> to vector<8x128xf32>
    %113 = vector.extract_strided_slice %95 {offsets = [0, 256], sizes = [8, 128], strides = [1, 1]} : vector<8x384xf32> to vector<8x128xf32>
    %114 = arith.mulf %103, %113 : vector<8x128xf32>
    %115 = arith.addf %112, %114 : vector<8x128xf32>
    %116 = math.tanh %115 : vector<8x128xf32>
    %cst_40 = arith.constant 1.000000e+00 : f32
    %117 = vector.broadcast %cst_40 : f32 to vector<8x128xf32>
    %118 = arith.subf %117, %111 : vector<8x128xf32>
    %119 = arith.mulf %118, %116 : vector<8x128xf32>
    %120 = arith.mulf %111, %83 : vector<8x128xf32>
    %121 = arith.addf %119, %120 : vector<8x128xf32>
    %122 = arith.index_cast %88 : i32 to index
    %c0_41 = arith.constant 0 : index
    %123 = vector.load %arg8[%122, %c0_41] : memref<64x128xf32, #tpu.memory_space<vmem>>, vector<8x128xf32>
    tpu.vector_store %arg8[%122, %c0_41], %121 {strides = array<i32>} : memref<64x128xf32, #tpu.memory_space<vmem>>, vector<8x128xf32>,
    %c3_i32 = arith.constant 3 : i32
    %124 = arith.truncf %121 : vector<8x128xf32> to vector<8x128xbf16>
    %c8_i32_42 = arith.constant 8 : i32
    %125 = arith.muli %c3_i32, %c8_i32_42 : i32
    %126 = tpu.assume_multiple %125, 8 : i32
    %127 = arith.index_cast %126 : i32 to index
    %c0_43 = arith.constant 0 : index
    %128 = vector.load %arg7[%127, %c0_43] : memref<64x384xf32, #tpu.memory_space<vmem>>, vector<8x384xf32>
    %c0_44 = arith.constant 0 : index
    %c0_45 = arith.constant 0 : index
    %129 = vector.load %arg3[%c0_44, %c0_45] : memref<128x384xbf16, #tpu.memory_space<vmem>>, vector<128x384xbf16>
    %cst_46 = arith.constant dense<0.000000e+00> : vector<8x384xf32>
    %130 = tpu.matmul %124, %129, %cst_46 {dimension_numbers = #tpu.dot_dimension_numbers<[1], [0], [0], [1], [0, 0, 1, 1], [], []>} : vector<8x128xbf16>, vector<128x384xbf16>, vector<8x384xf32> -> vector<8x384xf32>
    %c0_47 = arith.constant 0 : index
    %c0_48 = arith.constant 0 : index
    %131 = vector.load %arg5[%c0_47, %c0_48] : memref<1x384xf32, #tpu.memory_space<vmem>>, vector<1x384xf32>
    %132 = vector.broadcast %131 : vector<1x384xf32> to vector<8x384xf32>
    %133 = arith.addf %130, %132 : vector<8x384xf32>
    %134 = vector.extract_strided_slice %128 {offsets = [0, 0], sizes = [8, 128], strides = [1, 1]} : vector<8x384xf32> to vector<8x128xf32>
    %135 = vector.extract_strided_slice %133 {offsets = [0, 0], sizes = [8, 128], strides = [1, 1]} : vector<8x384xf32> to vector<8x128xf32>
    %136 = arith.addf %134, %135 : vector<8x128xf32>
    %137 = arith.negf %136 : vector<8x128xf32>
    %138 = math.exp %137 : vector<8x128xf32>
    %cst_49 = arith.constant 1.000000e+00 : f32
    %139 = vector.broadcast %cst_49 : f32 to vector<8x128xf32>
    %140 = arith.addf %139, %138 : vector<8x128xf32>
    %141 = arith.divf %139, %140 : vector<8x128xf32>
    %142 = vector.extract_strided_slice %128 {offsets = [0, 128], sizes = [8, 128], strides = [1, 1]} : vector<8x384xf32> to vector<8x128xf32>
    %143 = vector.extract_strided_slice %133 {offsets = [0, 128], sizes = [8, 128], strides = [1, 1]} : vector<8x384xf32> to vector<8x128xf32>
    %144 = arith.addf %142, %143 : vector<8x128xf32>
    %145 = arith.negf %144 : vector<8x128xf32>
    %146 = math.exp %145 : vector<8x128xf32>
    %cst_50 = arith.constant 1.000000e+00 : f32
    %147 = vector.broadcast %cst_50 : f32 to vector<8x128xf32>
    %148 = arith.addf %147, %146 : vector<8x128xf32>
    %149 = arith.divf %147, %148 : vector<8x128xf32>
    %150 = vector.extract_strided_slice %128 {offsets = [0, 256], sizes = [8, 128], strides = [1, 1]} : vector<8x384xf32> to vector<8x128xf32>
    %151 = vector.extract_strided_slice %133 {offsets = [0, 256], sizes = [8, 128], strides = [1, 1]} : vector<8x384xf32> to vector<8x128xf32>
    %152 = arith.mulf %141, %151 : vector<8x128xf32>
    %153 = arith.addf %150, %152 : vector<8x128xf32>
    %154 = math.tanh %153 : vector<8x128xf32>
    %cst_51 = arith.constant 1.000000e+00 : f32
    %155 = vector.broadcast %cst_51 : f32 to vector<8x128xf32>
    %156 = arith.subf %155, %149 : vector<8x128xf32>
    %157 = arith.mulf %156, %154 : vector<8x128xf32>
    %158 = arith.mulf %149, %121 : vector<8x128xf32>
    %159 = arith.addf %157, %158 : vector<8x128xf32>
    %160 = arith.index_cast %126 : i32 to index
    %c0_52 = arith.constant 0 : index
    %161 = vector.load %arg8[%160, %c0_52] : memref<64x128xf32, #tpu.memory_space<vmem>>, vector<8x128xf32>
    tpu.vector_store %arg8[%160, %c0_52], %159 {strides = array<i32>} : memref<64x128xf32, #tpu.memory_space<vmem>>, vector<8x128xf32>,
    %c4_i32 = arith.constant 4 : i32
    %162 = arith.truncf %159 : vector<8x128xf32> to vector<8x128xbf16>
    %c8_i32_53 = arith.constant 8 : i32
    %163 = arith.muli %c4_i32, %c8_i32_53 : i32
    %164 = tpu.assume_multiple %163, 8 : i32
    %165 = arith.index_cast %164 : i32 to index
    %c0_54 = arith.constant 0 : index
    %166 = vector.load %arg7[%165, %c0_54] : memref<64x384xf32, #tpu.memory_space<vmem>>, vector<8x384xf32>
    %c0_55 = arith.constant 0 : index
    %c0_56 = arith.constant 0 : index
    %167 = vector.load %arg3[%c0_55, %c0_56] : memref<128x384xbf16, #tpu.memory_space<vmem>>, vector<128x384xbf16>
    %cst_57 = arith.constant dense<0.000000e+00> : vector<8x384xf32>
    %168 = tpu.matmul %162, %167, %cst_57 {dimension_numbers = #tpu.dot_dimension_numbers<[1], [0], [0], [1], [0, 0, 1, 1], [], []>} : vector<8x128xbf16>, vector<128x384xbf16>, vector<8x384xf32> -> vector<8x384xf32>
    %c0_58 = arith.constant 0 : index
    %c0_59 = arith.constant 0 : index
    %169 = vector.load %arg5[%c0_58, %c0_59] : memref<1x384xf32, #tpu.memory_space<vmem>>, vector<1x384xf32>
    %170 = vector.broadcast %169 : vector<1x384xf32> to vector<8x384xf32>
    %171 = arith.addf %168, %170 : vector<8x384xf32>
    %172 = vector.extract_strided_slice %166 {offsets = [0, 0], sizes = [8, 128], strides = [1, 1]} : vector<8x384xf32> to vector<8x128xf32>
    %173 = vector.extract_strided_slice %171 {offsets = [0, 0], sizes = [8, 128], strides = [1, 1]} : vector<8x384xf32> to vector<8x128xf32>
    %174 = arith.addf %172, %173 : vector<8x128xf32>
    %175 = arith.negf %174 : vector<8x128xf32>
    %176 = math.exp %175 : vector<8x128xf32>
    %cst_60 = arith.constant 1.000000e+00 : f32
    %177 = vector.broadcast %cst_60 : f32 to vector<8x128xf32>
    %178 = arith.addf %177, %176 : vector<8x128xf32>
    %179 = arith.divf %177, %178 : vector<8x128xf32>
    %180 = vector.extract_strided_slice %166 {offsets = [0, 128], sizes = [8, 128], strides = [1, 1]} : vector<8x384xf32> to vector<8x128xf32>
    %181 = vector.extract_strided_slice %171 {offsets = [0, 128], sizes = [8, 128], strides = [1, 1]} : vector<8x384xf32> to vector<8x128xf32>
    %182 = arith.addf %180, %181 : vector<8x128xf32>
    %183 = arith.negf %182 : vector<8x128xf32>
    %184 = math.exp %183 : vector<8x128xf32>
    %cst_61 = arith.constant 1.000000e+00 : f32
    %185 = vector.broadcast %cst_61 : f32 to vector<8x128xf32>
    %186 = arith.addf %185, %184 : vector<8x128xf32>
    %187 = arith.divf %185, %186 : vector<8x128xf32>
    %188 = vector.extract_strided_slice %166 {offsets = [0, 256], sizes = [8, 128], strides = [1, 1]} : vector<8x384xf32> to vector<8x128xf32>
    %189 = vector.extract_strided_slice %171 {offsets = [0, 256], sizes = [8, 128], strides = [1, 1]} : vector<8x384xf32> to vector<8x128xf32>
    %190 = arith.mulf %179, %189 : vector<8x128xf32>
    %191 = arith.addf %188, %190 : vector<8x128xf32>
    %192 = math.tanh %191 : vector<8x128xf32>
    %cst_62 = arith.constant 1.000000e+00 : f32
    %193 = vector.broadcast %cst_62 : f32 to vector<8x128xf32>
    %194 = arith.subf %193, %187 : vector<8x128xf32>
    %195 = arith.mulf %194, %192 : vector<8x128xf32>
    %196 = arith.mulf %187, %159 : vector<8x128xf32>
    %197 = arith.addf %195, %196 : vector<8x128xf32>
    %198 = arith.index_cast %164 : i32 to index
    %c0_63 = arith.constant 0 : index
    %199 = vector.load %arg8[%198, %c0_63] : memref<64x128xf32, #tpu.memory_space<vmem>>, vector<8x128xf32>
    tpu.vector_store %arg8[%198, %c0_63], %197 {strides = array<i32>} : memref<64x128xf32, #tpu.memory_space<vmem>>, vector<8x128xf32>,
    %c5_i32 = arith.constant 5 : i32
    %200 = arith.truncf %197 : vector<8x128xf32> to vector<8x128xbf16>
    %c8_i32_64 = arith.constant 8 : i32
    %201 = arith.muli %c5_i32, %c8_i32_64 : i32
    %202 = tpu.assume_multiple %201, 8 : i32
    %203 = arith.index_cast %202 : i32 to index
    %c0_65 = arith.constant 0 : index
    %204 = vector.load %arg7[%203, %c0_65] : memref<64x384xf32, #tpu.memory_space<vmem>>, vector<8x384xf32>
    %c0_66 = arith.constant 0 : index
    %c0_67 = arith.constant 0 : index
    %205 = vector.load %arg3[%c0_66, %c0_67] : memref<128x384xbf16, #tpu.memory_space<vmem>>, vector<128x384xbf16>
    %cst_68 = arith.constant dense<0.000000e+00> : vector<8x384xf32>
    %206 = tpu.matmul %200, %205, %cst_68 {dimension_numbers = #tpu.dot_dimension_numbers<[1], [0], [0], [1], [0, 0, 1, 1], [], []>} : vector<8x128xbf16>, vector<128x384xbf16>, vector<8x384xf32> -> vector<8x384xf32>
    %c0_69 = arith.constant 0 : index
    %c0_70 = arith.constant 0 : index
    %207 = vector.load %arg5[%c0_69, %c0_70] : memref<1x384xf32, #tpu.memory_space<vmem>>, vector<1x384xf32>
    %208 = vector.broadcast %207 : vector<1x384xf32> to vector<8x384xf32>
    %209 = arith.addf %206, %208 : vector<8x384xf32>
    %210 = vector.extract_strided_slice %204 {offsets = [0, 0], sizes = [8, 128], strides = [1, 1]} : vector<8x384xf32> to vector<8x128xf32>
    %211 = vector.extract_strided_slice %209 {offsets = [0, 0], sizes = [8, 128], strides = [1, 1]} : vector<8x384xf32> to vector<8x128xf32>
    %212 = arith.addf %210, %211 : vector<8x128xf32>
    %213 = arith.negf %212 : vector<8x128xf32>
    %214 = math.exp %213 : vector<8x128xf32>
    %cst_71 = arith.constant 1.000000e+00 : f32
    %215 = vector.broadcast %cst_71 : f32 to vector<8x128xf32>
    %216 = arith.addf %215, %214 : vector<8x128xf32>
    %217 = arith.divf %215, %216 : vector<8x128xf32>
    %218 = vector.extract_strided_slice %204 {offsets = [0, 128], sizes = [8, 128], strides = [1, 1]} : vector<8x384xf32> to vector<8x128xf32>
    %219 = vector.extract_strided_slice %209 {offsets = [0, 128], sizes = [8, 128], strides = [1, 1]} : vector<8x384xf32> to vector<8x128xf32>
    %220 = arith.addf %218, %219 : vector<8x128xf32>
    %221 = arith.negf %220 : vector<8x128xf32>
    %222 = math.exp %221 : vector<8x128xf32>
    %cst_72 = arith.constant 1.000000e+00 : f32
    %223 = vector.broadcast %cst_72 : f32 to vector<8x128xf32>
    %224 = arith.addf %223, %222 : vector<8x128xf32>
    %225 = arith.divf %223, %224 : vector<8x128xf32>
    %226 = vector.extract_strided_slice %204 {offsets = [0, 256], sizes = [8, 128], strides = [1, 1]} : vector<8x384xf32> to vector<8x128xf32>
    %227 = vector.extract_strided_slice %209 {offsets = [0, 256], sizes = [8, 128], strides = [1, 1]} : vector<8x384xf32> to vector<8x128xf32>
    %228 = arith.mulf %217, %227 : vector<8x128xf32>
    %229 = arith.addf %226, %228 : vector<8x128xf32>
    %230 = math.tanh %229 : vector<8x128xf32>
    %cst_73 = arith.constant 1.000000e+00 : f32
    %231 = vector.broadcast %cst_73 : f32 to vector<8x128xf32>
    %232 = arith.subf %231, %225 : vector<8x128xf32>
    %233 = arith.mulf %232, %230 : vector<8x128xf32>
    %234 = arith.mulf %225, %197 : vector<8x128xf32>
    %235 = arith.addf %233, %234 : vector<8x128xf32>
    %236 = arith.index_cast %202 : i32 to index
    %c0_74 = arith.constant 0 : index
    %237 = vector.load %arg8[%236, %c0_74] : memref<64x128xf32, #tpu.memory_space<vmem>>, vector<8x128xf32>
    tpu.vector_store %arg8[%236, %c0_74], %235 {strides = array<i32>} : memref<64x128xf32, #tpu.memory_space<vmem>>, vector<8x128xf32>,
    %c6_i32 = arith.constant 6 : i32
    %238 = arith.truncf %235 : vector<8x128xf32> to vector<8x128xbf16>
    %c8_i32_75 = arith.constant 8 : i32
    %239 = arith.muli %c6_i32, %c8_i32_75 : i32
    %240 = tpu.assume_multiple %239, 8 : i32
    %241 = arith.index_cast %240 : i32 to index
    %c0_76 = arith.constant 0 : index
    %242 = vector.load %arg7[%241, %c0_76] : memref<64x384xf32, #tpu.memory_space<vmem>>, vector<8x384xf32>
    %c0_77 = arith.constant 0 : index
    %c0_78 = arith.constant 0 : index
    %243 = vector.load %arg3[%c0_77, %c0_78] : memref<128x384xbf16, #tpu.memory_space<vmem>>, vector<128x384xbf16>
    %cst_79 = arith.constant dense<0.000000e+00> : vector<8x384xf32>
    %244 = tpu.matmul %238, %243, %cst_79 {dimension_numbers = #tpu.dot_dimension_numbers<[1], [0], [0], [1], [0, 0, 1, 1], [], []>} : vector<8x128xbf16>, vector<128x384xbf16>, vector<8x384xf32> -> vector<8x384xf32>
    %c0_80 = arith.constant 0 : index
    %c0_81 = arith.constant 0 : index
    %245 = vector.load %arg5[%c0_80, %c0_81] : memref<1x384xf32, #tpu.memory_space<vmem>>, vector<1x384xf32>
    %246 = vector.broadcast %245 : vector<1x384xf32> to vector<8x384xf32>
    %247 = arith.addf %244, %246 : vector<8x384xf32>
    %248 = vector.extract_strided_slice %242 {offsets = [0, 0], sizes = [8, 128], strides = [1, 1]} : vector<8x384xf32> to vector<8x128xf32>
    %249 = vector.extract_strided_slice %247 {offsets = [0, 0], sizes = [8, 128], strides = [1, 1]} : vector<8x384xf32> to vector<8x128xf32>
    %250 = arith.addf %248, %249 : vector<8x128xf32>
    %251 = arith.negf %250 : vector<8x128xf32>
    %252 = math.exp %251 : vector<8x128xf32>
    %cst_82 = arith.constant 1.000000e+00 : f32
    %253 = vector.broadcast %cst_82 : f32 to vector<8x128xf32>
    %254 = arith.addf %253, %252 : vector<8x128xf32>
    %255 = arith.divf %253, %254 : vector<8x128xf32>
    %256 = vector.extract_strided_slice %242 {offsets = [0, 128], sizes = [8, 128], strides = [1, 1]} : vector<8x384xf32> to vector<8x128xf32>
    %257 = vector.extract_strided_slice %247 {offsets = [0, 128], sizes = [8, 128], strides = [1, 1]} : vector<8x384xf32> to vector<8x128xf32>
    %258 = arith.addf %256, %257 : vector<8x128xf32>
    %259 = arith.negf %258 : vector<8x128xf32>
    %260 = math.exp %259 : vector<8x128xf32>
    %cst_83 = arith.constant 1.000000e+00 : f32
    %261 = vector.broadcast %cst_83 : f32 to vector<8x128xf32>
    %262 = arith.addf %261, %260 : vector<8x128xf32>
    %263 = arith.divf %261, %262 : vector<8x128xf32>
    %264 = vector.extract_strided_slice %242 {offsets = [0, 256], sizes = [8, 128], strides = [1, 1]} : vector<8x384xf32> to vector<8x128xf32>
    %265 = vector.extract_strided_slice %247 {offsets = [0, 256], sizes = [8, 128], strides = [1, 1]} : vector<8x384xf32> to vector<8x128xf32>
    %266 = arith.mulf %255, %265 : vector<8x128xf32>
    %267 = arith.addf %264, %266 : vector<8x128xf32>
    %268 = math.tanh %267 : vector<8x128xf32>
    %cst_84 = arith.constant 1.000000e+00 : f32
    %269 = vector.broadcast %cst_84 : f32 to vector<8x128xf32>
    %270 = arith.subf %269, %263 : vector<8x128xf32>
    %271 = arith.mulf %270, %268 : vector<8x128xf32>
    %272 = arith.mulf %263, %235 : vector<8x128xf32>
    %273 = arith.addf %271, %272 : vector<8x128xf32>
    %274 = arith.index_cast %240 : i32 to index
    %c0_85 = arith.constant 0 : index
    %275 = vector.load %arg8[%274, %c0_85] : memref<64x128xf32, #tpu.memory_space<vmem>>, vector<8x128xf32>
    tpu.vector_store %arg8[%274, %c0_85], %273 {strides = array<i32>} : memref<64x128xf32, #tpu.memory_space<vmem>>, vector<8x128xf32>,
    %c7_i32 = arith.constant 7 : i32
    %276 = arith.truncf %273 : vector<8x128xf32> to vector<8x128xbf16>
    %c8_i32_86 = arith.constant 8 : i32
    %277 = arith.muli %c7_i32, %c8_i32_86 : i32
    %278 = tpu.assume_multiple %277, 8 : i32
    %279 = arith.index_cast %278 : i32 to index
    %c0_87 = arith.constant 0 : index
    %280 = vector.load %arg7[%279, %c0_87] : memref<64x384xf32, #tpu.memory_space<vmem>>, vector<8x384xf32>
    %c0_88 = arith.constant 0 : index
    %c0_89 = arith.constant 0 : index
    %281 = vector.load %arg3[%c0_88, %c0_89] : memref<128x384xbf16, #tpu.memory_space<vmem>>, vector<128x384xbf16>
    %cst_90 = arith.constant dense<0.000000e+00> : vector<8x384xf32>
    %282 = tpu.matmul %276, %281, %cst_90 {dimension_numbers = #tpu.dot_dimension_numbers<[1], [0], [0], [1], [0, 0, 1, 1], [], []>} : vector<8x128xbf16>, vector<128x384xbf16>, vector<8x384xf32> -> vector<8x384xf32>
    %c0_91 = arith.constant 0 : index
    %c0_92 = arith.constant 0 : index
    %283 = vector.load %arg5[%c0_91, %c0_92] : memref<1x384xf32, #tpu.memory_space<vmem>>, vector<1x384xf32>
    %284 = vector.broadcast %283 : vector<1x384xf32> to vector<8x384xf32>
    %285 = arith.addf %282, %284 : vector<8x384xf32>
    %286 = vector.extract_strided_slice %280 {offsets = [0, 0], sizes = [8, 128], strides = [1, 1]} : vector<8x384xf32> to vector<8x128xf32>
    %287 = vector.extract_strided_slice %285 {offsets = [0, 0], sizes = [8, 128], strides = [1, 1]} : vector<8x384xf32> to vector<8x128xf32>
    %288 = arith.addf %286, %287 : vector<8x128xf32>
    %289 = arith.negf %288 : vector<8x128xf32>
    %290 = math.exp %289 : vector<8x128xf32>
    %cst_93 = arith.constant 1.000000e+00 : f32
    %291 = vector.broadcast %cst_93 : f32 to vector<8x128xf32>
    %292 = arith.addf %291, %290 : vector<8x128xf32>
    %293 = arith.divf %291, %292 : vector<8x128xf32>
    %294 = vector.extract_strided_slice %280 {offsets = [0, 128], sizes = [8, 128], strides = [1, 1]} : vector<8x384xf32> to vector<8x128xf32>
    %295 = vector.extract_strided_slice %285 {offsets = [0, 128], sizes = [8, 128], strides = [1, 1]} : vector<8x384xf32> to vector<8x128xf32>
    %296 = arith.addf %294, %295 : vector<8x128xf32>
    %297 = arith.negf %296 : vector<8x128xf32>
    %298 = math.exp %297 : vector<8x128xf32>
    %cst_94 = arith.constant 1.000000e+00 : f32
    %299 = vector.broadcast %cst_94 : f32 to vector<8x128xf32>
    %300 = arith.addf %299, %298 : vector<8x128xf32>
    %301 = arith.divf %299, %300 : vector<8x128xf32>
    %302 = vector.extract_strided_slice %280 {offsets = [0, 256], sizes = [8, 128], strides = [1, 1]} : vector<8x384xf32> to vector<8x128xf32>
    %303 = vector.extract_strided_slice %285 {offsets = [0, 256], sizes = [8, 128], strides = [1, 1]} : vector<8x384xf32> to vector<8x128xf32>
    %304 = arith.mulf %293, %303 : vector<8x128xf32>
    %305 = arith.addf %302, %304 : vector<8x128xf32>
    %306 = math.tanh %305 : vector<8x128xf32>
    %cst_95 = arith.constant 1.000000e+00 : f32
    %307 = vector.broadcast %cst_95 : f32 to vector<8x128xf32>
    %308 = arith.subf %307, %301 : vector<8x128xf32>
    %309 = arith.mulf %308, %306 : vector<8x128xf32>
    %310 = arith.mulf %301, %273 : vector<8x128xf32>
    %311 = arith.addf %309, %310 : vector<8x128xf32>
    %312 = arith.index_cast %278 : i32 to index
    %c0_96 = arith.constant 0 : index
    %313 = vector.load %arg8[%312, %c0_96] : memref<64x128xf32, #tpu.memory_space<vmem>>, vector<8x128xf32>
    tpu.vector_store %arg8[%312, %c0_96], %311 {strides = array<i32>} : memref<64x128xf32, #tpu.memory_space<vmem>>, vector<8x128xf32>,
    %c8_i32_97 = arith.constant 8 : i32
    %c0_98 = arith.constant 0 : index
    %c0_99 = arith.constant 0 : index
    %314 = vector.load %arg8[%c0_98, %c0_99] : memref<64x128xf32, #tpu.memory_space<vmem>>, vector<64x128xf32>
    %315 = arith.truncf %314 : vector<64x128xf32> to vector<64x128xbf16>
    %c0_100 = arith.constant 0 : index
    %c0_101 = arith.constant 0 : index
    %316 = vector.load %arg6[%c0_100, %c0_101] : memref<64x128xbf16, #tpu.memory_space<vmem>>, vector<64x128xbf16>
    tpu.vector_store %arg6[%c0_100, %c0_101], %315 {strides = array<i32>} : memref<64x128xbf16, #tpu.memory_space<vmem>>, vector<64x128xbf16>,
    return
  }
}

module attributes {stable_mosaic.version = 11 : i64} {
  func.func @_encoder_kernel(%arg0: memref<64x128xbf16, #tpu.memory_space<vmem>>, %arg1: memref<128x384xbf16, #tpu.memory_space<vmem>>, %arg2: memref<128x384xbf16, #tpu.memory_space<vmem>>, %arg3: memref<1x384xf32, #tpu.memory_space<vmem>>, %arg4: memref<1x384xf32, #tpu.memory_space<vmem>>, %arg5: memref<8x128xf32, #tpu.memory_space<vmem>>, %arg6: memref<64x384xf32, #tpu.memory_space<vmem>>) attributes {dimension_semantics = [], scalar_prefetch = 0 : i64, scratch_operands = 1 : i64, tpu.core_type = #tpu.core_type<tc>} {
    %c0 = arith.constant 0 : index
    %c0_0 = arith.constant 0 : index
    %0 = vector.load %arg0[%c0, %c0_0] : memref<64x128xbf16, #tpu.memory_space<vmem>>, vector<64x128xbf16>
    %c0_1 = arith.constant 0 : index
    %c0_2 = arith.constant 0 : index
    %1 = vector.load %arg1[%c0_1, %c0_2] : memref<128x384xbf16, #tpu.memory_space<vmem>>, vector<128x384xbf16>
    %cst = arith.constant dense<0.000000e+00> : vector<64x384xf32>
    %2 = tpu.matmul %0, %1, %cst {dimension_numbers = #tpu.dot_dimension_numbers<[1], [0], [0], [1], [0, 0, 1, 1], [], []>} : vector<64x128xbf16>, vector<128x384xbf16>, vector<64x384xf32> -> vector<64x384xf32>
    %c0_3 = arith.constant 0 : index
    %c0_4 = arith.constant 0 : index
    %3 = vector.load %arg3[%c0_3, %c0_4] : memref<1x384xf32, #tpu.memory_space<vmem>>, vector<1x384xf32>
    %4 = vector.broadcast %3 : vector<1x384xf32> to vector<64x384xf32>
    %5 = arith.addf %2, %4 : vector<64x384xf32>
    %c0_5 = arith.constant 0 : index
    %c0_6 = arith.constant 0 : index
    %6 = vector.load %arg6[%c0_5, %c0_6] : memref<64x384xf32, #tpu.memory_space<vmem>>, vector<64x384xf32>
    tpu.vector_store %arg6[%c0_5, %c0_6], %5 {strides = array<i32>} : memref<64x384xf32, #tpu.memory_space<vmem>>, vector<64x384xf32>,
    %cst_7 = arith.constant 0.000000e+00 : f32
    %7 = vector.broadcast %cst_7 : f32 to vector<8x128xf32>
    %c0_i32 = arith.constant 0 : i32
    %8 = arith.truncf %7 : vector<8x128xf32> to vector<8x128xbf16>
    %c8_i32 = arith.constant 8 : i32
    %9 = arith.muli %c0_i32, %c8_i32 : i32
    %10 = tpu.assume_multiple %9, 8 : i32
    %11 = arith.index_cast %10 : i32 to index
    %c0_8 = arith.constant 0 : index
    %12 = vector.load %arg6[%11, %c0_8] : memref<64x384xf32, #tpu.memory_space<vmem>>, vector<8x384xf32>
    %c0_9 = arith.constant 0 : index
    %c0_10 = arith.constant 0 : index
    %13 = vector.load %arg2[%c0_9, %c0_10] : memref<128x384xbf16, #tpu.memory_space<vmem>>, vector<128x384xbf16>
    %cst_11 = arith.constant dense<0.000000e+00> : vector<8x384xf32>
    %14 = tpu.matmul %8, %13, %cst_11 {dimension_numbers = #tpu.dot_dimension_numbers<[1], [0], [0], [1], [0, 0, 1, 1], [], []>} : vector<8x128xbf16>, vector<128x384xbf16>, vector<8x384xf32> -> vector<8x384xf32>
    %c0_12 = arith.constant 0 : index
    %c0_13 = arith.constant 0 : index
    %15 = vector.load %arg4[%c0_12, %c0_13] : memref<1x384xf32, #tpu.memory_space<vmem>>, vector<1x384xf32>
    %16 = vector.broadcast %15 : vector<1x384xf32> to vector<8x384xf32>
    %17 = arith.addf %14, %16 : vector<8x384xf32>
    %18 = vector.extract_strided_slice %12 {offsets = [0, 0], sizes = [8, 128], strides = [1, 1]} : vector<8x384xf32> to vector<8x128xf32>
    %19 = vector.extract_strided_slice %17 {offsets = [0, 0], sizes = [8, 128], strides = [1, 1]} : vector<8x384xf32> to vector<8x128xf32>
    %20 = arith.addf %18, %19 : vector<8x128xf32>
    %21 = arith.negf %20 : vector<8x128xf32>
    %22 = math.exp %21 : vector<8x128xf32>
    %cst_14 = arith.constant 1.000000e+00 : f32
    %23 = vector.broadcast %cst_14 : f32 to vector<8x128xf32>
    %24 = arith.addf %23, %22 : vector<8x128xf32>
    %25 = arith.divf %23, %24 : vector<8x128xf32>
    %26 = vector.extract_strided_slice %12 {offsets = [0, 128], sizes = [8, 128], strides = [1, 1]} : vector<8x384xf32> to vector<8x128xf32>
    %27 = vector.extract_strided_slice %17 {offsets = [0, 128], sizes = [8, 128], strides = [1, 1]} : vector<8x384xf32> to vector<8x128xf32>
    %28 = arith.addf %26, %27 : vector<8x128xf32>
    %29 = arith.negf %28 : vector<8x128xf32>
    %30 = math.exp %29 : vector<8x128xf32>
    %cst_15 = arith.constant 1.000000e+00 : f32
    %31 = vector.broadcast %cst_15 : f32 to vector<8x128xf32>
    %32 = arith.addf %31, %30 : vector<8x128xf32>
    %33 = arith.divf %31, %32 : vector<8x128xf32>
    %34 = vector.extract_strided_slice %12 {offsets = [0, 256], sizes = [8, 128], strides = [1, 1]} : vector<8x384xf32> to vector<8x128xf32>
    %35 = vector.extract_strided_slice %17 {offsets = [0, 256], sizes = [8, 128], strides = [1, 1]} : vector<8x384xf32> to vector<8x128xf32>
    %36 = arith.mulf %25, %35 : vector<8x128xf32>
    %37 = arith.addf %34, %36 : vector<8x128xf32>
    %38 = math.tanh %37 : vector<8x128xf32>
    %cst_16 = arith.constant 1.000000e+00 : f32
    %39 = vector.broadcast %cst_16 : f32 to vector<8x128xf32>
    %40 = arith.subf %39, %33 : vector<8x128xf32>
    %41 = arith.mulf %40, %38 : vector<8x128xf32>
    %42 = arith.mulf %33, %7 : vector<8x128xf32>
    %43 = arith.addf %41, %42 : vector<8x128xf32>
    %c1_i32 = arith.constant 1 : i32
    %44 = arith.truncf %43 : vector<8x128xf32> to vector<8x128xbf16>
    %c8_i32_17 = arith.constant 8 : i32
    %45 = arith.muli %c1_i32, %c8_i32_17 : i32
    %46 = tpu.assume_multiple %45, 8 : i32
    %47 = arith.index_cast %46 : i32 to index
    %c0_18 = arith.constant 0 : index
    %48 = vector.load %arg6[%47, %c0_18] : memref<64x384xf32, #tpu.memory_space<vmem>>, vector<8x384xf32>
    %c0_19 = arith.constant 0 : index
    %c0_20 = arith.constant 0 : index
    %49 = vector.load %arg2[%c0_19, %c0_20] : memref<128x384xbf16, #tpu.memory_space<vmem>>, vector<128x384xbf16>
    %cst_21 = arith.constant dense<0.000000e+00> : vector<8x384xf32>
    %50 = tpu.matmul %44, %49, %cst_21 {dimension_numbers = #tpu.dot_dimension_numbers<[1], [0], [0], [1], [0, 0, 1, 1], [], []>} : vector<8x128xbf16>, vector<128x384xbf16>, vector<8x384xf32> -> vector<8x384xf32>
    %c0_22 = arith.constant 0 : index
    %c0_23 = arith.constant 0 : index
    %51 = vector.load %arg4[%c0_22, %c0_23] : memref<1x384xf32, #tpu.memory_space<vmem>>, vector<1x384xf32>
    %52 = vector.broadcast %51 : vector<1x384xf32> to vector<8x384xf32>
    %53 = arith.addf %50, %52 : vector<8x384xf32>
    %54 = vector.extract_strided_slice %48 {offsets = [0, 0], sizes = [8, 128], strides = [1, 1]} : vector<8x384xf32> to vector<8x128xf32>
    %55 = vector.extract_strided_slice %53 {offsets = [0, 0], sizes = [8, 128], strides = [1, 1]} : vector<8x384xf32> to vector<8x128xf32>
    %56 = arith.addf %54, %55 : vector<8x128xf32>
    %57 = arith.negf %56 : vector<8x128xf32>
    %58 = math.exp %57 : vector<8x128xf32>
    %cst_24 = arith.constant 1.000000e+00 : f32
    %59 = vector.broadcast %cst_24 : f32 to vector<8x128xf32>
    %60 = arith.addf %59, %58 : vector<8x128xf32>
    %61 = arith.divf %59, %60 : vector<8x128xf32>
    %62 = vector.extract_strided_slice %48 {offsets = [0, 128], sizes = [8, 128], strides = [1, 1]} : vector<8x384xf32> to vector<8x128xf32>
    %63 = vector.extract_strided_slice %53 {offsets = [0, 128], sizes = [8, 128], strides = [1, 1]} : vector<8x384xf32> to vector<8x128xf32>
    %64 = arith.addf %62, %63 : vector<8x128xf32>
    %65 = arith.negf %64 : vector<8x128xf32>
    %66 = math.exp %65 : vector<8x128xf32>
    %cst_25 = arith.constant 1.000000e+00 : f32
    %67 = vector.broadcast %cst_25 : f32 to vector<8x128xf32>
    %68 = arith.addf %67, %66 : vector<8x128xf32>
    %69 = arith.divf %67, %68 : vector<8x128xf32>
    %70 = vector.extract_strided_slice %48 {offsets = [0, 256], sizes = [8, 128], strides = [1, 1]} : vector<8x384xf32> to vector<8x128xf32>
    %71 = vector.extract_strided_slice %53 {offsets = [0, 256], sizes = [8, 128], strides = [1, 1]} : vector<8x384xf32> to vector<8x128xf32>
    %72 = arith.mulf %61, %71 : vector<8x128xf32>
    %73 = arith.addf %70, %72 : vector<8x128xf32>
    %74 = math.tanh %73 : vector<8x128xf32>
    %cst_26 = arith.constant 1.000000e+00 : f32
    %75 = vector.broadcast %cst_26 : f32 to vector<8x128xf32>
    %76 = arith.subf %75, %69 : vector<8x128xf32>
    %77 = arith.mulf %76, %74 : vector<8x128xf32>
    %78 = arith.mulf %69, %43 : vector<8x128xf32>
    %79 = arith.addf %77, %78 : vector<8x128xf32>
    %c2_i32 = arith.constant 2 : i32
    %80 = arith.truncf %79 : vector<8x128xf32> to vector<8x128xbf16>
    %c8_i32_27 = arith.constant 8 : i32
    %81 = arith.muli %c2_i32, %c8_i32_27 : i32
    %82 = tpu.assume_multiple %81, 8 : i32
    %83 = arith.index_cast %82 : i32 to index
    %c0_28 = arith.constant 0 : index
    %84 = vector.load %arg6[%83, %c0_28] : memref<64x384xf32, #tpu.memory_space<vmem>>, vector<8x384xf32>
    %c0_29 = arith.constant 0 : index
    %c0_30 = arith.constant 0 : index
    %85 = vector.load %arg2[%c0_29, %c0_30] : memref<128x384xbf16, #tpu.memory_space<vmem>>, vector<128x384xbf16>
    %cst_31 = arith.constant dense<0.000000e+00> : vector<8x384xf32>
    %86 = tpu.matmul %80, %85, %cst_31 {dimension_numbers = #tpu.dot_dimension_numbers<[1], [0], [0], [1], [0, 0, 1, 1], [], []>} : vector<8x128xbf16>, vector<128x384xbf16>, vector<8x384xf32> -> vector<8x384xf32>
    %c0_32 = arith.constant 0 : index
    %c0_33 = arith.constant 0 : index
    %87 = vector.load %arg4[%c0_32, %c0_33] : memref<1x384xf32, #tpu.memory_space<vmem>>, vector<1x384xf32>
    %88 = vector.broadcast %87 : vector<1x384xf32> to vector<8x384xf32>
    %89 = arith.addf %86, %88 : vector<8x384xf32>
    %90 = vector.extract_strided_slice %84 {offsets = [0, 0], sizes = [8, 128], strides = [1, 1]} : vector<8x384xf32> to vector<8x128xf32>
    %91 = vector.extract_strided_slice %89 {offsets = [0, 0], sizes = [8, 128], strides = [1, 1]} : vector<8x384xf32> to vector<8x128xf32>
    %92 = arith.addf %90, %91 : vector<8x128xf32>
    %93 = arith.negf %92 : vector<8x128xf32>
    %94 = math.exp %93 : vector<8x128xf32>
    %cst_34 = arith.constant 1.000000e+00 : f32
    %95 = vector.broadcast %cst_34 : f32 to vector<8x128xf32>
    %96 = arith.addf %95, %94 : vector<8x128xf32>
    %97 = arith.divf %95, %96 : vector<8x128xf32>
    %98 = vector.extract_strided_slice %84 {offsets = [0, 128], sizes = [8, 128], strides = [1, 1]} : vector<8x384xf32> to vector<8x128xf32>
    %99 = vector.extract_strided_slice %89 {offsets = [0, 128], sizes = [8, 128], strides = [1, 1]} : vector<8x384xf32> to vector<8x128xf32>
    %100 = arith.addf %98, %99 : vector<8x128xf32>
    %101 = arith.negf %100 : vector<8x128xf32>
    %102 = math.exp %101 : vector<8x128xf32>
    %cst_35 = arith.constant 1.000000e+00 : f32
    %103 = vector.broadcast %cst_35 : f32 to vector<8x128xf32>
    %104 = arith.addf %103, %102 : vector<8x128xf32>
    %105 = arith.divf %103, %104 : vector<8x128xf32>
    %106 = vector.extract_strided_slice %84 {offsets = [0, 256], sizes = [8, 128], strides = [1, 1]} : vector<8x384xf32> to vector<8x128xf32>
    %107 = vector.extract_strided_slice %89 {offsets = [0, 256], sizes = [8, 128], strides = [1, 1]} : vector<8x384xf32> to vector<8x128xf32>
    %108 = arith.mulf %97, %107 : vector<8x128xf32>
    %109 = arith.addf %106, %108 : vector<8x128xf32>
    %110 = math.tanh %109 : vector<8x128xf32>
    %cst_36 = arith.constant 1.000000e+00 : f32
    %111 = vector.broadcast %cst_36 : f32 to vector<8x128xf32>
    %112 = arith.subf %111, %105 : vector<8x128xf32>
    %113 = arith.mulf %112, %110 : vector<8x128xf32>
    %114 = arith.mulf %105, %79 : vector<8x128xf32>
    %115 = arith.addf %113, %114 : vector<8x128xf32>
    %c3_i32 = arith.constant 3 : i32
    %116 = arith.truncf %115 : vector<8x128xf32> to vector<8x128xbf16>
    %c8_i32_37 = arith.constant 8 : i32
    %117 = arith.muli %c3_i32, %c8_i32_37 : i32
    %118 = tpu.assume_multiple %117, 8 : i32
    %119 = arith.index_cast %118 : i32 to index
    %c0_38 = arith.constant 0 : index
    %120 = vector.load %arg6[%119, %c0_38] : memref<64x384xf32, #tpu.memory_space<vmem>>, vector<8x384xf32>
    %c0_39 = arith.constant 0 : index
    %c0_40 = arith.constant 0 : index
    %121 = vector.load %arg2[%c0_39, %c0_40] : memref<128x384xbf16, #tpu.memory_space<vmem>>, vector<128x384xbf16>
    %cst_41 = arith.constant dense<0.000000e+00> : vector<8x384xf32>
    %122 = tpu.matmul %116, %121, %cst_41 {dimension_numbers = #tpu.dot_dimension_numbers<[1], [0], [0], [1], [0, 0, 1, 1], [], []>} : vector<8x128xbf16>, vector<128x384xbf16>, vector<8x384xf32> -> vector<8x384xf32>
    %c0_42 = arith.constant 0 : index
    %c0_43 = arith.constant 0 : index
    %123 = vector.load %arg4[%c0_42, %c0_43] : memref<1x384xf32, #tpu.memory_space<vmem>>, vector<1x384xf32>
    %124 = vector.broadcast %123 : vector<1x384xf32> to vector<8x384xf32>
    %125 = arith.addf %122, %124 : vector<8x384xf32>
    %126 = vector.extract_strided_slice %120 {offsets = [0, 0], sizes = [8, 128], strides = [1, 1]} : vector<8x384xf32> to vector<8x128xf32>
    %127 = vector.extract_strided_slice %125 {offsets = [0, 0], sizes = [8, 128], strides = [1, 1]} : vector<8x384xf32> to vector<8x128xf32>
    %128 = arith.addf %126, %127 : vector<8x128xf32>
    %129 = arith.negf %128 : vector<8x128xf32>
    %130 = math.exp %129 : vector<8x128xf32>
    %cst_44 = arith.constant 1.000000e+00 : f32
    %131 = vector.broadcast %cst_44 : f32 to vector<8x128xf32>
    %132 = arith.addf %131, %130 : vector<8x128xf32>
    %133 = arith.divf %131, %132 : vector<8x128xf32>
    %134 = vector.extract_strided_slice %120 {offsets = [0, 128], sizes = [8, 128], strides = [1, 1]} : vector<8x384xf32> to vector<8x128xf32>
    %135 = vector.extract_strided_slice %125 {offsets = [0, 128], sizes = [8, 128], strides = [1, 1]} : vector<8x384xf32> to vector<8x128xf32>
    %136 = arith.addf %134, %135 : vector<8x128xf32>
    %137 = arith.negf %136 : vector<8x128xf32>
    %138 = math.exp %137 : vector<8x128xf32>
    %cst_45 = arith.constant 1.000000e+00 : f32
    %139 = vector.broadcast %cst_45 : f32 to vector<8x128xf32>
    %140 = arith.addf %139, %138 : vector<8x128xf32>
    %141 = arith.divf %139, %140 : vector<8x128xf32>
    %142 = vector.extract_strided_slice %120 {offsets = [0, 256], sizes = [8, 128], strides = [1, 1]} : vector<8x384xf32> to vector<8x128xf32>
    %143 = vector.extract_strided_slice %125 {offsets = [0, 256], sizes = [8, 128], strides = [1, 1]} : vector<8x384xf32> to vector<8x128xf32>
    %144 = arith.mulf %133, %143 : vector<8x128xf32>
    %145 = arith.addf %142, %144 : vector<8x128xf32>
    %146 = math.tanh %145 : vector<8x128xf32>
    %cst_46 = arith.constant 1.000000e+00 : f32
    %147 = vector.broadcast %cst_46 : f32 to vector<8x128xf32>
    %148 = arith.subf %147, %141 : vector<8x128xf32>
    %149 = arith.mulf %148, %146 : vector<8x128xf32>
    %150 = arith.mulf %141, %115 : vector<8x128xf32>
    %151 = arith.addf %149, %150 : vector<8x128xf32>
    %c4_i32 = arith.constant 4 : i32
    %152 = arith.truncf %151 : vector<8x128xf32> to vector<8x128xbf16>
    %c8_i32_47 = arith.constant 8 : i32
    %153 = arith.muli %c4_i32, %c8_i32_47 : i32
    %154 = tpu.assume_multiple %153, 8 : i32
    %155 = arith.index_cast %154 : i32 to index
    %c0_48 = arith.constant 0 : index
    %156 = vector.load %arg6[%155, %c0_48] : memref<64x384xf32, #tpu.memory_space<vmem>>, vector<8x384xf32>
    %c0_49 = arith.constant 0 : index
    %c0_50 = arith.constant 0 : index
    %157 = vector.load %arg2[%c0_49, %c0_50] : memref<128x384xbf16, #tpu.memory_space<vmem>>, vector<128x384xbf16>
    %cst_51 = arith.constant dense<0.000000e+00> : vector<8x384xf32>
    %158 = tpu.matmul %152, %157, %cst_51 {dimension_numbers = #tpu.dot_dimension_numbers<[1], [0], [0], [1], [0, 0, 1, 1], [], []>} : vector<8x128xbf16>, vector<128x384xbf16>, vector<8x384xf32> -> vector<8x384xf32>
    %c0_52 = arith.constant 0 : index
    %c0_53 = arith.constant 0 : index
    %159 = vector.load %arg4[%c0_52, %c0_53] : memref<1x384xf32, #tpu.memory_space<vmem>>, vector<1x384xf32>
    %160 = vector.broadcast %159 : vector<1x384xf32> to vector<8x384xf32>
    %161 = arith.addf %158, %160 : vector<8x384xf32>
    %162 = vector.extract_strided_slice %156 {offsets = [0, 0], sizes = [8, 128], strides = [1, 1]} : vector<8x384xf32> to vector<8x128xf32>
    %163 = vector.extract_strided_slice %161 {offsets = [0, 0], sizes = [8, 128], strides = [1, 1]} : vector<8x384xf32> to vector<8x128xf32>
    %164 = arith.addf %162, %163 : vector<8x128xf32>
    %165 = arith.negf %164 : vector<8x128xf32>
    %166 = math.exp %165 : vector<8x128xf32>
    %cst_54 = arith.constant 1.000000e+00 : f32
    %167 = vector.broadcast %cst_54 : f32 to vector<8x128xf32>
    %168 = arith.addf %167, %166 : vector<8x128xf32>
    %169 = arith.divf %167, %168 : vector<8x128xf32>
    %170 = vector.extract_strided_slice %156 {offsets = [0, 128], sizes = [8, 128], strides = [1, 1]} : vector<8x384xf32> to vector<8x128xf32>
    %171 = vector.extract_strided_slice %161 {offsets = [0, 128], sizes = [8, 128], strides = [1, 1]} : vector<8x384xf32> to vector<8x128xf32>
    %172 = arith.addf %170, %171 : vector<8x128xf32>
    %173 = arith.negf %172 : vector<8x128xf32>
    %174 = math.exp %173 : vector<8x128xf32>
    %cst_55 = arith.constant 1.000000e+00 : f32
    %175 = vector.broadcast %cst_55 : f32 to vector<8x128xf32>
    %176 = arith.addf %175, %174 : vector<8x128xf32>
    %177 = arith.divf %175, %176 : vector<8x128xf32>
    %178 = vector.extract_strided_slice %156 {offsets = [0, 256], sizes = [8, 128], strides = [1, 1]} : vector<8x384xf32> to vector<8x128xf32>
    %179 = vector.extract_strided_slice %161 {offsets = [0, 256], sizes = [8, 128], strides = [1, 1]} : vector<8x384xf32> to vector<8x128xf32>
    %180 = arith.mulf %169, %179 : vector<8x128xf32>
    %181 = arith.addf %178, %180 : vector<8x128xf32>
    %182 = math.tanh %181 : vector<8x128xf32>
    %cst_56 = arith.constant 1.000000e+00 : f32
    %183 = vector.broadcast %cst_56 : f32 to vector<8x128xf32>
    %184 = arith.subf %183, %177 : vector<8x128xf32>
    %185 = arith.mulf %184, %182 : vector<8x128xf32>
    %186 = arith.mulf %177, %151 : vector<8x128xf32>
    %187 = arith.addf %185, %186 : vector<8x128xf32>
    %c5_i32 = arith.constant 5 : i32
    %188 = arith.truncf %187 : vector<8x128xf32> to vector<8x128xbf16>
    %c8_i32_57 = arith.constant 8 : i32
    %189 = arith.muli %c5_i32, %c8_i32_57 : i32
    %190 = tpu.assume_multiple %189, 8 : i32
    %191 = arith.index_cast %190 : i32 to index
    %c0_58 = arith.constant 0 : index
    %192 = vector.load %arg6[%191, %c0_58] : memref<64x384xf32, #tpu.memory_space<vmem>>, vector<8x384xf32>
    %c0_59 = arith.constant 0 : index
    %c0_60 = arith.constant 0 : index
    %193 = vector.load %arg2[%c0_59, %c0_60] : memref<128x384xbf16, #tpu.memory_space<vmem>>, vector<128x384xbf16>
    %cst_61 = arith.constant dense<0.000000e+00> : vector<8x384xf32>
    %194 = tpu.matmul %188, %193, %cst_61 {dimension_numbers = #tpu.dot_dimension_numbers<[1], [0], [0], [1], [0, 0, 1, 1], [], []>} : vector<8x128xbf16>, vector<128x384xbf16>, vector<8x384xf32> -> vector<8x384xf32>
    %c0_62 = arith.constant 0 : index
    %c0_63 = arith.constant 0 : index
    %195 = vector.load %arg4[%c0_62, %c0_63] : memref<1x384xf32, #tpu.memory_space<vmem>>, vector<1x384xf32>
    %196 = vector.broadcast %195 : vector<1x384xf32> to vector<8x384xf32>
    %197 = arith.addf %194, %196 : vector<8x384xf32>
    %198 = vector.extract_strided_slice %192 {offsets = [0, 0], sizes = [8, 128], strides = [1, 1]} : vector<8x384xf32> to vector<8x128xf32>
    %199 = vector.extract_strided_slice %197 {offsets = [0, 0], sizes = [8, 128], strides = [1, 1]} : vector<8x384xf32> to vector<8x128xf32>
    %200 = arith.addf %198, %199 : vector<8x128xf32>
    %201 = arith.negf %200 : vector<8x128xf32>
    %202 = math.exp %201 : vector<8x128xf32>
    %cst_64 = arith.constant 1.000000e+00 : f32
    %203 = vector.broadcast %cst_64 : f32 to vector<8x128xf32>
    %204 = arith.addf %203, %202 : vector<8x128xf32>
    %205 = arith.divf %203, %204 : vector<8x128xf32>
    %206 = vector.extract_strided_slice %192 {offsets = [0, 128], sizes = [8, 128], strides = [1, 1]} : vector<8x384xf32> to vector<8x128xf32>
    %207 = vector.extract_strided_slice %197 {offsets = [0, 128], sizes = [8, 128], strides = [1, 1]} : vector<8x384xf32> to vector<8x128xf32>
    %208 = arith.addf %206, %207 : vector<8x128xf32>
    %209 = arith.negf %208 : vector<8x128xf32>
    %210 = math.exp %209 : vector<8x128xf32>
    %cst_65 = arith.constant 1.000000e+00 : f32
    %211 = vector.broadcast %cst_65 : f32 to vector<8x128xf32>
    %212 = arith.addf %211, %210 : vector<8x128xf32>
    %213 = arith.divf %211, %212 : vector<8x128xf32>
    %214 = vector.extract_strided_slice %192 {offsets = [0, 256], sizes = [8, 128], strides = [1, 1]} : vector<8x384xf32> to vector<8x128xf32>
    %215 = vector.extract_strided_slice %197 {offsets = [0, 256], sizes = [8, 128], strides = [1, 1]} : vector<8x384xf32> to vector<8x128xf32>
    %216 = arith.mulf %205, %215 : vector<8x128xf32>
    %217 = arith.addf %214, %216 : vector<8x128xf32>
    %218 = math.tanh %217 : vector<8x128xf32>
    %cst_66 = arith.constant 1.000000e+00 : f32
    %219 = vector.broadcast %cst_66 : f32 to vector<8x128xf32>
    %220 = arith.subf %219, %213 : vector<8x128xf32>
    %221 = arith.mulf %220, %218 : vector<8x128xf32>
    %222 = arith.mulf %213, %187 : vector<8x128xf32>
    %223 = arith.addf %221, %222 : vector<8x128xf32>
    %c6_i32 = arith.constant 6 : i32
    %224 = arith.truncf %223 : vector<8x128xf32> to vector<8x128xbf16>
    %c8_i32_67 = arith.constant 8 : i32
    %225 = arith.muli %c6_i32, %c8_i32_67 : i32
    %226 = tpu.assume_multiple %225, 8 : i32
    %227 = arith.index_cast %226 : i32 to index
    %c0_68 = arith.constant 0 : index
    %228 = vector.load %arg6[%227, %c0_68] : memref<64x384xf32, #tpu.memory_space<vmem>>, vector<8x384xf32>
    %c0_69 = arith.constant 0 : index
    %c0_70 = arith.constant 0 : index
    %229 = vector.load %arg2[%c0_69, %c0_70] : memref<128x384xbf16, #tpu.memory_space<vmem>>, vector<128x384xbf16>
    %cst_71 = arith.constant dense<0.000000e+00> : vector<8x384xf32>
    %230 = tpu.matmul %224, %229, %cst_71 {dimension_numbers = #tpu.dot_dimension_numbers<[1], [0], [0], [1], [0, 0, 1, 1], [], []>} : vector<8x128xbf16>, vector<128x384xbf16>, vector<8x384xf32> -> vector<8x384xf32>
    %c0_72 = arith.constant 0 : index
    %c0_73 = arith.constant 0 : index
    %231 = vector.load %arg4[%c0_72, %c0_73] : memref<1x384xf32, #tpu.memory_space<vmem>>, vector<1x384xf32>
    %232 = vector.broadcast %231 : vector<1x384xf32> to vector<8x384xf32>
    %233 = arith.addf %230, %232 : vector<8x384xf32>
    %234 = vector.extract_strided_slice %228 {offsets = [0, 0], sizes = [8, 128], strides = [1, 1]} : vector<8x384xf32> to vector<8x128xf32>
    %235 = vector.extract_strided_slice %233 {offsets = [0, 0], sizes = [8, 128], strides = [1, 1]} : vector<8x384xf32> to vector<8x128xf32>
    %236 = arith.addf %234, %235 : vector<8x128xf32>
    %237 = arith.negf %236 : vector<8x128xf32>
    %238 = math.exp %237 : vector<8x128xf32>
    %cst_74 = arith.constant 1.000000e+00 : f32
    %239 = vector.broadcast %cst_74 : f32 to vector<8x128xf32>
    %240 = arith.addf %239, %238 : vector<8x128xf32>
    %241 = arith.divf %239, %240 : vector<8x128xf32>
    %242 = vector.extract_strided_slice %228 {offsets = [0, 128], sizes = [8, 128], strides = [1, 1]} : vector<8x384xf32> to vector<8x128xf32>
    %243 = vector.extract_strided_slice %233 {offsets = [0, 128], sizes = [8, 128], strides = [1, 1]} : vector<8x384xf32> to vector<8x128xf32>
    %244 = arith.addf %242, %243 : vector<8x128xf32>
    %245 = arith.negf %244 : vector<8x128xf32>
    %246 = math.exp %245 : vector<8x128xf32>
    %cst_75 = arith.constant 1.000000e+00 : f32
    %247 = vector.broadcast %cst_75 : f32 to vector<8x128xf32>
    %248 = arith.addf %247, %246 : vector<8x128xf32>
    %249 = arith.divf %247, %248 : vector<8x128xf32>
    %250 = vector.extract_strided_slice %228 {offsets = [0, 256], sizes = [8, 128], strides = [1, 1]} : vector<8x384xf32> to vector<8x128xf32>
    %251 = vector.extract_strided_slice %233 {offsets = [0, 256], sizes = [8, 128], strides = [1, 1]} : vector<8x384xf32> to vector<8x128xf32>
    %252 = arith.mulf %241, %251 : vector<8x128xf32>
    %253 = arith.addf %250, %252 : vector<8x128xf32>
    %254 = math.tanh %253 : vector<8x128xf32>
    %cst_76 = arith.constant 1.000000e+00 : f32
    %255 = vector.broadcast %cst_76 : f32 to vector<8x128xf32>
    %256 = arith.subf %255, %249 : vector<8x128xf32>
    %257 = arith.mulf %256, %254 : vector<8x128xf32>
    %258 = arith.mulf %249, %223 : vector<8x128xf32>
    %259 = arith.addf %257, %258 : vector<8x128xf32>
    %c7_i32 = arith.constant 7 : i32
    %260 = arith.truncf %259 : vector<8x128xf32> to vector<8x128xbf16>
    %c8_i32_77 = arith.constant 8 : i32
    %261 = arith.muli %c7_i32, %c8_i32_77 : i32
    %262 = tpu.assume_multiple %261, 8 : i32
    %263 = arith.index_cast %262 : i32 to index
    %c0_78 = arith.constant 0 : index
    %264 = vector.load %arg6[%263, %c0_78] : memref<64x384xf32, #tpu.memory_space<vmem>>, vector<8x384xf32>
    %c0_79 = arith.constant 0 : index
    %c0_80 = arith.constant 0 : index
    %265 = vector.load %arg2[%c0_79, %c0_80] : memref<128x384xbf16, #tpu.memory_space<vmem>>, vector<128x384xbf16>
    %cst_81 = arith.constant dense<0.000000e+00> : vector<8x384xf32>
    %266 = tpu.matmul %260, %265, %cst_81 {dimension_numbers = #tpu.dot_dimension_numbers<[1], [0], [0], [1], [0, 0, 1, 1], [], []>} : vector<8x128xbf16>, vector<128x384xbf16>, vector<8x384xf32> -> vector<8x384xf32>
    %c0_82 = arith.constant 0 : index
    %c0_83 = arith.constant 0 : index
    %267 = vector.load %arg4[%c0_82, %c0_83] : memref<1x384xf32, #tpu.memory_space<vmem>>, vector<1x384xf32>
    %268 = vector.broadcast %267 : vector<1x384xf32> to vector<8x384xf32>
    %269 = arith.addf %266, %268 : vector<8x384xf32>
    %270 = vector.extract_strided_slice %264 {offsets = [0, 0], sizes = [8, 128], strides = [1, 1]} : vector<8x384xf32> to vector<8x128xf32>
    %271 = vector.extract_strided_slice %269 {offsets = [0, 0], sizes = [8, 128], strides = [1, 1]} : vector<8x384xf32> to vector<8x128xf32>
    %272 = arith.addf %270, %271 : vector<8x128xf32>
    %273 = arith.negf %272 : vector<8x128xf32>
    %274 = math.exp %273 : vector<8x128xf32>
    %cst_84 = arith.constant 1.000000e+00 : f32
    %275 = vector.broadcast %cst_84 : f32 to vector<8x128xf32>
    %276 = arith.addf %275, %274 : vector<8x128xf32>
    %277 = arith.divf %275, %276 : vector<8x128xf32>
    %278 = vector.extract_strided_slice %264 {offsets = [0, 128], sizes = [8, 128], strides = [1, 1]} : vector<8x384xf32> to vector<8x128xf32>
    %279 = vector.extract_strided_slice %269 {offsets = [0, 128], sizes = [8, 128], strides = [1, 1]} : vector<8x384xf32> to vector<8x128xf32>
    %280 = arith.addf %278, %279 : vector<8x128xf32>
    %281 = arith.negf %280 : vector<8x128xf32>
    %282 = math.exp %281 : vector<8x128xf32>
    %cst_85 = arith.constant 1.000000e+00 : f32
    %283 = vector.broadcast %cst_85 : f32 to vector<8x128xf32>
    %284 = arith.addf %283, %282 : vector<8x128xf32>
    %285 = arith.divf %283, %284 : vector<8x128xf32>
    %286 = vector.extract_strided_slice %264 {offsets = [0, 256], sizes = [8, 128], strides = [1, 1]} : vector<8x384xf32> to vector<8x128xf32>
    %287 = vector.extract_strided_slice %269 {offsets = [0, 256], sizes = [8, 128], strides = [1, 1]} : vector<8x384xf32> to vector<8x128xf32>
    %288 = arith.mulf %277, %287 : vector<8x128xf32>
    %289 = arith.addf %286, %288 : vector<8x128xf32>
    %290 = math.tanh %289 : vector<8x128xf32>
    %cst_86 = arith.constant 1.000000e+00 : f32
    %291 = vector.broadcast %cst_86 : f32 to vector<8x128xf32>
    %292 = arith.subf %291, %285 : vector<8x128xf32>
    %293 = arith.mulf %292, %290 : vector<8x128xf32>
    %294 = arith.mulf %285, %259 : vector<8x128xf32>
    %295 = arith.addf %293, %294 : vector<8x128xf32>
    %c8_i32_87 = arith.constant 8 : i32
    %c0_88 = arith.constant 0 : index
    %c0_89 = arith.constant 0 : index
    %296 = vector.load %arg5[%c0_88, %c0_89] : memref<8x128xf32, #tpu.memory_space<vmem>>, vector<8x128xf32>
    tpu.vector_store %arg5[%c0_88, %c0_89], %295 {strides = array<i32>} : memref<8x128xf32, #tpu.memory_space<vmem>>, vector<8x128xf32>,
    return
  }
}

module attributes {stable_mosaic.version = 11 : i64} {
  func.func @_proj_kernel(%arg0: i32, %arg1: i32, %arg2: i32, %arg3: memref<64x128xbf16, #tpu.memory_space<vmem>>, %arg4: memref<128x256xbf16, #tpu.memory_space<vmem>>, %arg5: memref<1x256xf32, #tpu.memory_space<vmem>>, %arg6: memref<64x256xf32, #tpu.memory_space<vmem>>, %arg7: memref<64x1xf32, #tpu.memory_space<vmem>>, %arg8: memref<64x1xf32, #tpu.memory_space<vmem>>) attributes {dimension_semantics = [#tpu.dimension_semantics<parallel>, #tpu.dimension_semantics<arbitrary>, #tpu.dimension_semantics<arbitrary>], iteration_bounds = array<i64: 1, 2, 1>, scalar_prefetch = 0 : i64, scratch_operands = 2 : i64, tpu.core_type = #tpu.core_type<tc>, window_params = [{transform_indices = @transform_0, window_bounds = array<i64: 64, 128>}, {transform_indices = @transform_1, window_bounds = array<i64: 128, 256>}, {transform_indices = @transform_2, window_bounds = array<i64: 1, 256>}, {transform_indices = @transform_3, window_bounds = array<i64: 64, 256>}]} {
    %c0_i32 = arith.constant 0 : i32
    %0 = arith.cmpi eq, %arg1, %c0_i32 : i32
    %c0_i32_0 = arith.constant 0 : i32
    %1 = arith.cmpi eq, %arg2, %c0_i32_0 : i32
    %2 = arith.andi %0, %1 : i1
    %3 = arith.extui %2 : i1 to i32
    %c0_i32_1 = arith.constant 0 : i32
    %4 = arith.cmpi ne, %3, %c0_i32_1 : i32
    scf.if %4 {
      %cst_10 = arith.constant 0xFF800000 : f32
      %17 = vector.broadcast %cst_10 : f32 to vector<64x1xf32>
      %c0_11 = arith.constant 0 : index
      %c0_12 = arith.constant 0 : index
      %18 = vector.load %arg7[%c0_11, %c0_12] : memref<64x1xf32, #tpu.memory_space<vmem>>, vector<64x1xf32>
      tpu.vector_store %arg7[%c0_11, %c0_12], %17 {strides = array<i32>} : memref<64x1xf32, #tpu.memory_space<vmem>>, vector<64x1xf32>,
      %cst_13 = arith.constant 0.000000e+00 : f32
      %19 = vector.broadcast %cst_13 : f32 to vector<64x1xf32>
      %c0_14 = arith.constant 0 : index
      %c0_15 = arith.constant 0 : index
      %20 = vector.load %arg8[%c0_14, %c0_15] : memref<64x1xf32, #tpu.memory_space<vmem>>, vector<64x1xf32>
      tpu.vector_store %arg8[%c0_14, %c0_15], %19 {strides = array<i32>} : memref<64x1xf32, #tpu.memory_space<vmem>>, vector<64x1xf32>,
    } else {
    }
    %c0 = arith.constant 0 : index
    %c0_2 = arith.constant 0 : index
    %5 = vector.load %arg3[%c0, %c0_2] : memref<64x128xbf16, #tpu.memory_space<vmem>>, vector<64x128xbf16>
    %c0_3 = arith.constant 0 : index
    %c0_4 = arith.constant 0 : index
    %6 = vector.load %arg4[%c0_3, %c0_4] : memref<128x256xbf16, #tpu.memory_space<vmem>>, vector<128x256xbf16>
    %cst = arith.constant dense<0.000000e+00> : vector<64x256xf32>
    %7 = tpu.matmul %5, %6, %cst {dimension_numbers = #tpu.dot_dimension_numbers<[1], [0], [0], [1], [0, 0, 1, 1], [], []>} : vector<64x128xbf16>, vector<128x256xbf16>, vector<64x256xf32> -> vector<64x256xf32>
    %c0_5 = arith.constant 0 : index
    %c0_6 = arith.constant 0 : index
    %8 = vector.load %arg5[%c0_5, %c0_6] : memref<1x256xf32, #tpu.memory_space<vmem>>, vector<1x256xf32>
    %9 = vector.broadcast %8 : vector<1x256xf32> to vector<64x256xf32>
    %10 = arith.addf %7, %9 : vector<64x256xf32>
    %c0_i32_7 = arith.constant 0 : i32
    %11 = arith.cmpi eq, %arg1, %c0_i32_7 : i32
    %12 = arith.extui %11 : i1 to i32
    %c0_i32_8 = arith.constant 0 : i32
    %13 = arith.cmpi ne, %12, %c0_i32_8 : i32
    scf.if %13 {
      %c0_10 = arith.constant 0 : index
      %c0_11 = arith.constant 0 : index
      %17 = vector.load %arg7[%c0_10, %c0_11] : memref<64x1xf32, #tpu.memory_space<vmem>>, vector<64x1xf32>
      %cst_12 = arith.constant dense<0xFF800000> : vector<64xf32>
      %18 = vector.multi_reduction <maximumf>, %10, %cst_12 [1] : vector<64x256xf32> to vector<64xf32>
      %19 = vector.shape_cast %18 : vector<64xf32> to vector<64x1xf32>
      %20 = arith.maximumf %17, %19 : vector<64x1xf32>
      %c0_13 = arith.constant 0 : index
      %c0_14 = arith.constant 0 : index
      %21 = vector.load %arg8[%c0_13, %c0_14] : memref<64x1xf32, #tpu.memory_space<vmem>>, vector<64x1xf32>
      %22 = arith.subf %17, %20 : vector<64x1xf32>
      %23 = math.exp %22 : vector<64x1xf32>
      %24 = arith.mulf %21, %23 : vector<64x1xf32>
      %25 = vector.broadcast %20 : vector<64x1xf32> to vector<64x256xf32>
      %26 = arith.subf %10, %25 : vector<64x256xf32>
      %27 = math.exp %26 : vector<64x256xf32>
      %cst_15 = arith.constant dense<0.000000e+00> : vector<64xf32>
      %28 = vector.multi_reduction <add>, %27, %cst_15 [1] : vector<64x256xf32> to vector<64xf32>
      %29 = vector.shape_cast %28 : vector<64xf32> to vector<64x1xf32>
      %30 = arith.addf %24, %29 : vector<64x1xf32>
      %c0_16 = arith.constant 0 : index
      %c0_17 = arith.constant 0 : index
      %31 = vector.load %arg8[%c0_16, %c0_17] : memref<64x1xf32, #tpu.memory_space<vmem>>, vector<64x1xf32>
      tpu.vector_store %arg8[%c0_16, %c0_17], %30 {strides = array<i32>} : memref<64x1xf32, #tpu.memory_space<vmem>>, vector<64x1xf32>,
      %c0_18 = arith.constant 0 : index
      %c0_19 = arith.constant 0 : index
      %32 = vector.load %arg7[%c0_18, %c0_19] : memref<64x1xf32, #tpu.memory_space<vmem>>, vector<64x1xf32>
      tpu.vector_store %arg7[%c0_18, %c0_19], %20 {strides = array<i32>} : memref<64x1xf32, #tpu.memory_space<vmem>>, vector<64x1xf32>,
    } else {
    }
    %c1_i32 = arith.constant 1 : i32
    %14 = arith.cmpi eq, %arg1, %c1_i32 : i32
    %15 = arith.extui %14 : i1 to i32
    %c0_i32_9 = arith.constant 0 : i32
    %16 = arith.cmpi ne, %15, %c0_i32_9 : i32
    scf.if %16 {
      %c0_10 = arith.constant 0 : index
      %c0_11 = arith.constant 0 : index
      %17 = vector.load %arg7[%c0_10, %c0_11] : memref<64x1xf32, #tpu.memory_space<vmem>>, vector<64x1xf32>
      %c0_12 = arith.constant 0 : index
      %c0_13 = arith.constant 0 : index
      %18 = vector.load %arg8[%c0_12, %c0_13] : memref<64x1xf32, #tpu.memory_space<vmem>>, vector<64x1xf32>
      %19 = math.log %18 : vector<64x1xf32>
      %20 = arith.addf %17, %19 : vector<64x1xf32>
      %21 = vector.broadcast %20 : vector<64x1xf32> to vector<64x256xf32>
      %22 = arith.subf %10, %21 : vector<64x256xf32>
      %c0_14 = arith.constant 0 : index
      %c0_15 = arith.constant 0 : index
      %23 = vector.load %arg6[%c0_14, %c0_15] : memref<64x256xf32, #tpu.memory_space<vmem>>, vector<64x256xf32>
      tpu.vector_store %arg6[%c0_14, %c0_15], %22 {strides = array<i32>} : memref<64x256xf32, #tpu.memory_space<vmem>>, vector<64x256xf32>,
    } else {
    }
    return
  }
  func.func @transform_0(%arg0: i32, %arg1: i32, %arg2: i32) -> (i32, i32) {
    %c0_i32 = arith.constant 0 : i32
    %c0_i32_0 = arith.constant 0 : i32
    return %arg0, %c0_i32 : i32, i32
  }
  func.func @transform_1(%arg0: i32, %arg1: i32, %arg2: i32) -> (i32, i32) {
    %c0_i32 = arith.constant 0 : i32
    %c0_i32_0 = arith.constant 0 : i32
    return %c0_i32, %arg2 : i32, i32
  }
  func.func @transform_2(%arg0: i32, %arg1: i32, %arg2: i32) -> (i32, i32) {
    %c0_i32 = arith.constant 0 : i32
    %c0_i32_0 = arith.constant 0 : i32
    return %c0_i32, %arg2 : i32, i32
  }
  func.func @transform_3(%arg0: i32, %arg1: i32, %arg2: i32) -> (i32, i32) {
    %c0_i32 = arith.constant 0 : i32
    return %arg0, %arg2 : i32, i32
  }
}

</mosaic_0001>

<bundles_post_ra>
// kernel: seq2seq_forward.5
= control target key start
LH: loop header
LB: loop body
LE: loop exit
PB: predicated region body
PF: predicated region fallthrough
CT: control target
= control target key end

     0   :  { %8 = vsyncpa [#allocation5], 0  ;;  %s1168_s12 = smov 0   ;;  %s1170_s13 = smov 0   ;;  %s1500_s0 = inlined_call_operand.vmem [shape: bf16[64,128], index: 0, kind: input, shape index: {}]   ;;  %s1501_s1 = inlined_call_operand.vmem [shape: bf16[128,256], index: 1, kind: input, shape index: {}]   ;;  %s1502_s2 = inlined_call_operand.vmem [shape: f32[1,256], index: 2, kind: input, shape index: {}]   ;;  %s1503_s3 = inlined_call_operand.hbm [shape: f32[64,256], index: 3, kind: output, shape index: {}]  }
   0x1   :  { %s1172_s14 = smov 0  }
   0x2 LB: > { %s902_s15 = sadd.s32 4294967295, %s1138_s14   ;;  %s29_s16 = sadd.s32 1, %s1134_s13  ;;  %s1138_s14 = sphi %s1172_s14, %s14_s14   ;;  %s1134_s13 = sphi %s1170_s13, %s1506_s13   ;;  %s1130_s12 = sphi %s1168_s12, %s1505_s12  }
   0x3   : > { %p31_p0 = scmp.ge.s32.totalorder %s29_s16, 2  ;;  %p907_p1 = scmp.ge.s32.totalorder %s1138_s14, 1 }
   0x4   : > { %p181_p2 = scmp.lt.s32.totalorder %s1138_s14, 3 }
   0x5   : > { %s1508_s16 = smov (%p31_p0, %s29_s16), 0 }
   0x6   : > { %p182_p3 = pnand %p907_p1, %p181_p2 }
   0x7   : > { %p229_p4 = scmp.eq.s32.totalorder (!%p182_p3), %s1130_s12, 0 }
   0x8   : > { %185 = sbr.rel (%p182_p3) target bundleno = 925 (0x39d), region = 32 }
   0xf   : > { %234 = sbr.rel (!%p229_p4) target bundleno = 24 (0x18), region = 36  ;;  %vm235_vm0 = vcmask (%p229_p4), 7168   ;;  %v1140_v0 = vmov (%p229_p4), -inf   ;;  %v1141_v1 = vmov (%p229_p4), 0.0  }
  0x10   : > { %236 = vst.msk [vmem:[#allocation2] sm:$0xff] (%p229_p4), %vm235_vm0, %v1140_v0  ;;  %237 = vst.msk [vmem:[#allocation2 + $0x8] sm:$0xff] (%p229_p4), %vm235_vm0, %v1140_v0 }
  0x11   : > { %238 = vst.msk [vmem:[#allocation2 + $0x10] sm:$0xff] (%p229_p4), %vm235_vm0, %v1140_v0  ;;  %239 = vst.msk [vmem:[#allocation2 + $0x18] sm:$0xff] (%p229_p4), %vm235_vm0, %v1140_v0 }
  0x12   : > { %240 = vst.msk [vmem:[#allocation2 + $0x20] sm:$0xff] (%p229_p4), %vm235_vm0, %v1140_v0  ;;  %241 = vst.msk [vmem:[#allocation2 + $0x28] sm:$0xff] (%p229_p4), %vm235_vm0, %v1140_v0 }
  0x13   : > { %242 = vst.msk [vmem:[#allocation2 + $0x30] sm:$0xff] (%p229_p4), %vm235_vm0, %v1140_v0  ;;  %243 = vst.msk [vmem:[#allocation2 + $0x38] sm:$0xff] (%p229_p4), %vm235_vm0, %v1140_v0 }
  0x14   : > { %244 = vst.msk [vmem:[#allocation3] sm:$0xff] (%p229_p4), %vm235_vm0, %v1141_v1  ;;  %245 = vst.msk [vmem:[#allocation3 + $0x8] sm:$0xff] (%p229_p4), %vm235_vm0, %v1141_v1 }
  0x15   : > { %246 = vst.msk [vmem:[#allocation3 + $0x10] sm:$0xff] (%p229_p4), %vm235_vm0, %v1141_v1  ;;  %247 = vst.msk [vmem:[#allocation3 + $0x18] sm:$0xff] (%p229_p4), %vm235_vm0, %v1141_v1 }
  0x16   : > { %248 = vst.msk [vmem:[#allocation3 + $0x20] sm:$0xff] %vm235_vm0, %v1141_v1  ;;  %249 = vst.msk [vmem:[#allocation3 + $0x28] sm:$0xff] %vm235_vm0, %v1141_v1 }
  0x17   : > { %250 = vst.msk [vmem:[#allocation3 + $0x30] sm:$0xff] %vm235_vm0, %v1141_v1  ;;  %251 = vst.msk [vmem:[#allocation3 + $0x38] sm:$0xff] %vm235_vm0, %v1141_v1 }
  0x18 PF: > { %v990_v2 = vld [vmem:[%s1501_s1 + $0x4] ss:$8 sps:$4 sm:$0xff]   ;;  %v992_v3 = vld [vmem:[%s1501_s1] ss:$8 sps:$4 sm:$0xff]   ;;  %v1142_v4 = vmov 0   ;;  %v1015_v20 = vld [vmem:[%s1500_s0 + $0x10] sm:$0xff]   ;;  %v278_v23 = vlaneseq }
  0x19   : > { %424 = vmatprep.mubr.bf16.mxu0 %v1142_v4  ;;  %444 = vmatprep.mubr.bf16.mxu1 %v1142_v4  ;;  %v993_v5 = vld [vmem:[%s1501_s1 + $0x14] ss:$8 sps:$4 sm:$0xff]   ;;  %v995_v6 = vld [vmem:[%s1501_s1 + $0x10] ss:$8 sps:$4 sm:$0xff]   ;;  %v996_v7 = vld [vmem:[%s1501_s1 + $0x24] ss:$8 sps:$4 sm:$0xff]  }
  0x1a   : > { %392 = vmatprep.subr.bf16.mxu0 %v990_v2  ;;  %936 = vmatprep.subr.bf16.mxu1 %v990_v2  ;;  %v998_v8 = vld [vmem:[%s1501_s1 + $0x20] ss:$8 sps:$4 sm:$0xff]   ;;  %v999_v9 = vld [vmem:[%s1501_s1 + $0x34] ss:$8 sps:$4 sm:$0xff]   ;;  %v1001_v10 = vld [vmem:[%s1501_s1 + $0x30] ss:$8 sps:$4 sm:$0xff]  }
  0x1b   : > { %393 = vmatpush1.bf16.msra.mxu0 %v992_v3  ;;  %944 = vmatpush1.bf16.msra.mxu1 %v992_v3  ;;  %v1002_v11 = vld [vmem:[%s1501_s1 + $0x44] ss:$8 sps:$4 sm:$0xff]   ;;  %v1004_v12 = vld [vmem:[%s1501_s1 + $0x40] ss:$8 sps:$4 sm:$0xff]   ;;  %v1005_v13 = vld [vmem:[%s1501_s1 + $0x54] ss:$8 sps:$4 sm:$0xff]  }
  0x1c   : > { %394 = vmatprep.subr.bf16.mxu0 %v993_v5  ;;  %937 = vmatprep.subr.bf16.mxu1 %v993_v5  ;;  %v1007_v14 = vld [vmem:[%s1501_s1 + $0x50] ss:$8 sps:$4 sm:$0xff]   ;;  %v1008_v15 = vld [vmem:[%s1501_s1 + $0x64] ss:$8 sps:$4 sm:$0xff]   ;;  %v1010_v16 = vld [vmem:[%s1501_s1 + $0x60] ss:$8 sps:$4 sm:$0xff]  }
  0x1d   : > { %v1011_v17 = vld [vmem:[%s1501_s1 + $0x74] ss:$8 sps:$4 sm:$0xff]   ;;  %v1013_v18 = vld [vmem:[%s1501_s1 + $0x70] ss:$8 sps:$4 sm:$0xff]   ;;  %v1014_v19 = vld [vmem:[%s1500_s0] sm:$0xff]   ;;  %v279_v24 = vshrl.u32 %v278_v23, 7 }
  0x1e   : > { %v1016_v21 = vld [vmem:[%s1500_s0 + $0x8] sm:$0xff]   ;;  %v1017_v22 = vld [vmem:[%s1500_s0 + $0x18] sm:$0xff]   ;;  %v276_v26 = vld [vmem:[%s1502_s2] sm:$0x3]  ;;  %p929_p5 = scmp.ne.s32.totalorder %s1130_s12, 0 }
  0x1f   : > { %395 = vmatpush1.bf16.msra.mxu0 %v995_v6  ;;  %945 = vmatpush1.bf16.msra.mxu1 %v995_v6  ;;  %v280_v25 = vsub.s32 0, %v279_v24  ;;  %v284_v27 = vsub.s32 1, %v279_v24  ;;  %v1143_v6 = vmov (!%p929_p5), 0   ;;  %vm668_vm1 = vcmask (!%p929_p5), 7168  }
  0x20   : > { %396 = vmatprep.subr.bf16.mxu0 %v996_v7  ;;  %938 = vmatprep.subr.bf16.mxu1 %v996_v7  ;;  %v1318_v7 = vld [vmem:[#allocation2] sm:$0xff] (!%p929_p5) }
  0x21   : > { %v281_v28 = vrot.slane %v276_v26, %v280_v25  ;;  %v285_v29 = vrot.slane %v276_v26, %v284_v27  ;;  %1018 = vset.pattern.permute.xlu0 (!%p929_p5), %v1143_v6  ;;  %1019 = vset.pattern.permute.xlu1 (!%p929_p5), %v1143_v6 }
  0x23   : > { %397 = vmatpush1.bf16.msra.mxu0 %v998_v8  ;;  %946 = vmatpush1.bf16.msra.mxu1 %v998_v8  ;;  %v1320_v8 = vld [vmem:[#allocation2 + $0x10] sm:$0xff] (!%p929_p5) }
  0x24   : > { %398 = vmatprep.subr.bf16.mxu0 %v999_v9  ;;  %939 = vmatprep.subr.bf16.mxu1 %v999_v9 }
  0x27   : > { %399 = vmatpush1.bf16.msra.mxu0 %v1001_v10  ;;  %947 = vmatpush1.bf16.msra.mxu1 %v1001_v10 }
  0x28   : > { %400 = vmatprep.subr.bf16.mxu0 %v1002_v11  ;;  %940 = vmatprep.subr.bf16.mxu1 %v1002_v11 }
  0x2b   : > { %401 = vmatpush1.bf16.msra.mxu0 %v1004_v12  ;;  %948 = vmatpush1.bf16.msra.mxu1 %v1004_v12 }
  0x2c   : > { %402 = vmatprep.subr.bf16.mxu0 %v1005_v13  ;;  %941 = vmatprep.subr.bf16.mxu1 %v1005_v13  ;;  %v1328_v13 = vld [vmem:[#allocation2 + $0x8] sm:$0xff] (!%p929_p5) }
  0x2f   : > { %403 = vmatpush1.bf16.msra.mxu0 %v1007_v14  ;;  %949 = vmatpush1.bf16.msra.mxu1 %v1007_v14  ;;  %v1330_v14 = vld [vmem:[#allocation2 + $0x18] sm:$0xff] (!%p929_p5) }
  0x30   : > { %404 = vmatprep.subr.bf16.mxu0 %v1008_v15  ;;  %942 = vmatprep.subr.bf16.mxu1 %v1008_v15 }
  0x33   : > { %405 = vmatpush1.bf16.msra.mxu0 %v1010_v16  ;;  %950 = vmatpush1.bf16.msra.mxu1 %v1010_v16 }
  0x34   : > { %406 = vmatprep.subr.bf16.mxu0 %v1011_v17  ;;  %943 = vmatprep.subr.bf16.mxu1 %v1011_v17 }
  0x37   : > { %407 = vmatpush1.bf16.msra.mxu0 %v1013_v18  ;;  %951 = vmatpush1.bf16.msra.mxu1 %v1013_v18 }
  0x3a   : > { %425 = vmatmul.mubr.bf16.vlgmr.msra.gmra.mrb[0].mxu0 %v1014_v19  ;;  %445 = vmatmul.mubr.bf16.vlgmr.msra.gmra.mrb[0].mxu1 %v1015_v20 }
  0x3b   : > { %434 = vmatprep.mubr.bf16.mxu0 %v1142_v4  ;;  %454 = vmatprep.mubr.bf16.mxu1 %v1142_v4 }
  0x42   : > { %435 = vmatmul.mubr.bf16.gmra.mrb[4].mxu0 %v1016_v21  ;;  %455 = vmatmul.mubr.bf16.gmra.mrb[4].mxu1 %v1017_v22  ;;  %v1347_v21 = vld [vmem:[#allocation2 + $0x20] sm:$0xff] (!%p929_p5)  ;;  %v1349_v22 = vld [vmem:[#allocation2 + $0x28] sm:$0xff] (!%p929_p5) }
 0x10d   : > { %v426_v30 = vpop.f32.mrb[0].mxu0  ;;  %v446_v31 = vpop.f32.mrb[0].mxu1 }
 0x10e   : > { %v1269_v32 = vadd.f32 %v426_v30, %v281_v28  ;;  %v1271_v33 = vadd.f32 %v446_v31, %v281_v28  ;;  %v428_v34 = vpop.f32.mrb[1].mxu0  ;;  %v448_v35 = vpop.f32.mrb[1].mxu1  ;;  %v1368_v30 = vld [vmem:[#allocation2 + $0x38] sm:$0xff] (!%p929_p5) }
 0x10f   : > { %v1273_v36 = vadd.f32 %v428_v34, %v285_v29  ;;  %v1275_v37 = vadd.f32 %v448_v35, %v285_v29  ;;  %v430_v38 = vpop.f32.mrb[2].mxu0  ;;  %v450_v39 = vpop.f32.mrb[2].mxu1 }
 0x110   : > { %v1277_v40 = vadd.f32 %v430_v38, %v281_v28  ;;  %v1279_v41 = vadd.f32 %v450_v39, %v281_v28  ;;  %v432_v42 = vpop.f32.mrb[3].mxu0  ;;  %v452_v43 = vpop.f32.mrb[3].mxu1 }
 0x111   : > { %v1281_v44 = vadd.f32 %v432_v42, %v285_v29  ;;  %v1283_v45 = vadd.f32 %v452_v43, %v285_v29  ;;  %v476_v62 = vmax.f32 (!%p929_p5), %v1269_v32, %v1273_v36  ;;  %v488_v2 = vmax.f32 (!%p929_p5), %v1271_v33, %v1275_v37 }
 0x113   : > { %467 = sbr.rel (%p929_p5) target bundleno = 738 (0x2e2), region = 40  ;;  %477 = vmax.xlane.f32.xlu0 (!%p929_p5), %v476_v62  ;;  %v479_v0 = vmax.f32 (!%p929_p5), %v1277_v40, %v1281_v44  ;;  %v491_v3 = vmax.f32 (!%p929_p5), %v1279_v41, %v1283_v45 }
 0x115   : > { %v436_v46 = vpop.f32.mrb[4].mxu0  ;;  %v456_v47 = vpop.f32.mrb[4].mxu1 }
 0x116   : > { %v1285_v48 = vadd.f32 %v436_v46, %v281_v28  ;;  %v1287_v49 = vadd.f32 %v456_v47, %v281_v28  ;;  %v438_v50 = vpop.f32.mrb[5].mxu0  ;;  %v458_v51 = vpop.f32.mrb[5].mxu1 }
 0x117   : > { %v1289_v52 = vadd.f32 %v438_v50, %v285_v29  ;;  %v1291_v53 = vadd.f32 %v458_v51, %v285_v29  ;;  %v440_v54 = vpop.f32.mrb[6].mxu0  ;;  %v460_v55 = vpop.f32.mrb[6].mxu1  ;;  %480 = vmax.xlane.f32.xlu0 (!%p929_p5), %v479_v0 }
 0x118   : > { %v1293_v56 = vadd.f32 %v440_v54, %v281_v28  ;;  %v1295_v57 = vadd.f32 %v460_v55, %v281_v28  ;;  %v442_v58 = vpop.f32.mrb[7].mxu0  ;;  %v462_v59 = vpop.f32.mrb[7].mxu1 }
 0x119   : > { %v1297_v60 = vadd.f32 %v442_v58, %v285_v29  ;;  %v1299_v61 = vadd.f32 %v462_v59, %v285_v29  ;;  %v482_v63 = vmax.f32 (!%p929_p5), %v1285_v48, %v1289_v52  ;;  %v494_v4 = vmax.f32 (!%p929_p5), %v1287_v49, %v1291_v53  ;;  %v1366_v29 = vld [vmem:[#allocation2 + $0x30] sm:$0xff] (!%p929_p5) }
 0x11b   : > { %483 = vmax.xlane.f32.xlu1 %v482_v63  ;;  %v485_v1 = vmax.f32 %v1293_v56, %v1297_v60  ;;  %489 = vmax.xlane.f32.xlu0 %v488_v2  ;;  %v497_v5 = vmax.f32 %v1295_v57, %v1299_v61 }
 0x11f   : > { %486 = vmax.xlane.f32.xlu1 %v485_v1  ;;  %495 = vmax.xlane.f32.xlu0 %v494_v4 }
 0x123   : > { %492 = vmax.xlane.f32.xlu1 %v491_v3 }
 0x127   : > { %498 = vmax.xlane.f32.xlu1 %v497_v5 }
 0x1a0   : > { %v478_v9 = vpop.xlane.xlu0 %477 }
 0x1a1   : > { %v1323_v11 = vmax.f32 %v1318_v7, %v478_v9 }
 0x1a3   : > { %v516_v15 = vsub.f32 %v1318_v7, %v1323_v11  ;;  %677 = vst.msk [vmem:[#allocation2] sm:$0xff] %vm668_vm1, %v1323_v11  ;;  %550 = vperm.xlu0 %1018, %v1323_v11  }
 0x1a4   : > { %v481_v17 = vpop.xlane.xlu0 %480 }
 0x1a5   : > { %v1342_v19 = vmax.f32 %v1328_v13, %v481_v17 }
 0x1a7   : > { %v517_v23 = vsub.f32 %v1328_v13, %v1342_v19  ;;  %678 = vst.msk [vmem:[#allocation2 + $0x8] sm:$0xff] %vm668_vm1, %v1342_v19  ;;  %555 = vperm.xlu1 %1019, %v1342_v19   ;;  %v509_v19 = vld [vmem:[#allocation3 + $0x8] sm:$0xff] }
 0x1a8   : > { %v484_v10 = vpop.xlane.xlu1 %483  ;;  %v490_v25 = vpop.xlane.xlu0 %489 }
 0x1a9   : > { %v1326_v12 = vmax.f32 %v1320_v8, %v484_v10  ;;  %v1361_v27 = vmax.f32 %v1347_v21, %v490_v25 }
 0x1ab   : > { %v518_v16 = vsub.f32 %v1320_v8, %v1326_v12  ;;  %679 = vst.msk [vmem:[#allocation2 + $0x10] sm:$0xff] %vm668_vm1, %v1326_v12  ;;  %560 = vperm.xlu1 %1019, %v1326_v12   ;;  %v520_v31 = vsub.f32 %v1347_v21, %v1361_v27  ;;  %681 = vst.msk [vmem:[#allocation2 + $0x20] sm:$0xff] %vm668_vm1, %v1361_v27 }
 0x1ac   : > { %v487_v18 = vpop.xlane.xlu1 %486  ;;  %v496_v35 = vpop.xlane.xlu0 %495 }
 0x1ad   : > { %v1345_v20 = vmax.f32 %v1330_v14, %v487_v18  ;;  %v1380_v39 = vmax.f32 %v1366_v29, %v496_v35  ;;  %v532_v7 = vmul.f32 1.442695, %v520_v31 }
 0x1af   : > { %v519_v24 = vsub.f32 %v1330_v14, %v1345_v20  ;;  %680 = vst.msk [vmem:[#allocation2 + $0x18] sm:$0xff] %vm668_vm1, %v1345_v20  ;;  %565 = vperm.xlu1 %1019, %v1345_v20   ;;  %v522_v43 = vsub.f32 %v1366_v29, %v1380_v39  ;;  %683 = vst.msk [vmem:[#allocation2 + $0x30] sm:$0xff] %vm668_vm1, %v1380_v39  ;;  %v510_v20 = vld [vmem:[#allocation3 + $0x10] sm:$0xff] }
 0x1b0   : > { %v493_v26 = vpop.xlane.xlu1 %492 }
 0x1b1   : > { %v1364_v28 = vmax.f32 %v1349_v22, %v493_v26  ;;  %v536_v21 = vmul.f32 1.442695, %v522_v43 }
 0x1b3   : > { %v521_v34 = vsub.f32 %v1349_v22, %v1364_v28  ;;  %682 = vst.msk [vmem:[#allocation2 + $0x28] sm:$0xff] %vm668_vm1, %v1364_v28  ;;  %570 = vperm.xlu1 %1019, %v1361_v27  }
 0x1b4   : > { %v499_v38 = vpop.xlane.xlu1 %498 }
 0x1b5   : > { %v1383_v42 = vmax.f32 %v1368_v30, %v499_v38  ;;  %v534_v8 = vmul.f32 1.442695, %v521_v34 }
 0x1b7   : > { %v523_v46 = vsub.f32 %v1368_v30, %v1383_v42  ;;  %684 = vst.msk [vmem:[#allocation2 + $0x38] sm:$0xff] %vm668_vm1, %v1383_v42  ;;  %575 = vperm.xlu1 %1019, %v1364_v28  }
 0x1b9   : > { %v538_v28 = vmul.f32 1.442695, %v523_v46  ;;  %v514_v46 = vld [vmem:[#allocation3 + $0x30] sm:$0xff] }
 0x1bb   : > { %580 = vperm.xlu1 %1019, %v1380_v39  }
 0x1bf   : > { %585 = vperm.xlu1 %1019, %v1383_v42  }
 0x222   : > { %v551_v47 = vpop.permute.xlu0 %550 }
 0x223   : > { %v588_v50 = vsub.f32 %v1269_v32, %v551_v47  ;;  %v589_v51 = vsub.f32 %v1273_v36, %v551_v47 }
 0x225   : > { %v604_v54 = vmul.f32 1.442695, %v588_v50  ;;  %v606_v55 = vmul.f32 1.442695, %v589_v51 }
 0x226   : > { %v556_v58 = vpop.permute.xlu1 %555 }
 0x227   : > { %1020 = vpow2.f32 %v604_v54  ;;  %v590_v59 = vsub.f32 %v1277_v40, %v556_v58  ;;  %v591_v62 = vsub.f32 %v1281_v44, %v556_v58 }
 0x228   : > { %1022 = vpow2.f32 %v606_v55 }
 0x229   : > { %v608_v63 = vmul.f32 1.442695, %v590_v59  ;;  %v610_v0 = vmul.f32 1.442695, %v591_v62 }
 0x22a   : > { %v561_v1 = vpop.permute.xlu1 %560 }
 0x22b   : > { %1024 = vpow2.f32 %v608_v63  ;;  %v592_v2 = vsub.f32 %v1285_v48, %v561_v1  ;;  %v593_v3 = vsub.f32 %v1289_v52, %v561_v1 }
 0x22c   : > { %1026 = vpow2.f32 %v610_v0 }
 0x22d   : > { %v612_v4 = vmul.f32 1.442695, %v592_v2  ;;  %v614_v5 = vmul.f32 1.442695, %v593_v3 }
 0x22e   : > { %v566_v6 = vpop.permute.xlu1 %565 }
 0x22f   : > { %1028 = vpow2.f32 %v612_v4  ;;  %v594_v9 = vsub.f32 %v1293_v56, %v566_v6  ;;  %v595_v10 = vsub.f32 %v1297_v60, %v566_v6 }
 0x230   : > { %1030 = vpow2.f32 %v614_v5 }
 0x231   : > { %v1021_v17 = vpop.eup %1020  ;;  %v616_v18 = vmul.f32 1.442695, %v594_v9  ;;  %v618_v25 = vmul.f32 1.442695, %v595_v10 }
 0x232   : > { %v1023_v26 = vpop.eup %1022  ;;  %v571_v35 = vpop.permute.xlu1 %570 }
 0x233   : > { %1032 = vpow2.f32 %v616_v18  ;;  %v596_v38 = vsub.f32 %v1271_v33, %v571_v35  ;;  %v597_v47 = vsub.f32 %v1275_v37, %v571_v35  ;;  %v636_v50 = vadd.f32 %v1023_v26, %v1021_v17 }
 0x234   : > { %1034 = vpow2.f32 %v618_v25 }
 0x235   : > { %v1025_v51 = vpop.eup %1024  ;;  %v620_v54 = vmul.f32 1.442695, %v596_v38  ;;  %v622_v55 = vmul.f32 1.442695, %v597_v47  ;;  %637 = vadd.xlane.f32.xlu1 %v636_v50 }
 0x236   : > { %v1027_v58 = vpop.eup %1026  ;;  %v576_v59 = vpop.permute.xlu1 %575 }
 0x237   : > { %1036 = vpow2.f32 %v620_v54  ;;  %v598_v62 = vsub.f32 %v1279_v41, %v576_v59  ;;  %v599_v63 = vsub.f32 %v1283_v45, %v576_v59  ;;  %v639_v0 = vadd.f32 %v1027_v58, %v1025_v51 }
 0x238   : > { %1038 = vpow2.f32 %v622_v55 }
 0x239   : > { %v1029_v1 = vpop.eup %1028  ;;  %v624_v2 = vmul.f32 1.442695, %v598_v62  ;;  %v626_v3 = vmul.f32 1.442695, %v599_v63  ;;  %640 = vadd.xlane.f32.xlu0 %v639_v0 }
 0x23a   : > { %v1031_v4 = vpop.eup %1030  ;;  %v581_v5 = vpop.permute.xlu1 %580 }
 0x23b   : > { %1040 = vpow2.f32 %v624_v2  ;;  %v600_v6 = vsub.f32 %v1287_v49, %v581_v5  ;;  %v601_v9 = vsub.f32 %v1291_v53, %v581_v5  ;;  %v642_v10 = vadd.f32 %v1031_v4, %v1029_v1 }
 0x23c   : > { %1042 = vpow2.f32 %v626_v3 }
 0x23d   : > { %v1033_v17 = vpop.eup %1032  ;;  %v628_v18 = vmul.f32 1.442695, %v600_v6  ;;  %v630_v25 = vmul.f32 1.442695, %v601_v9  ;;  %643 = vadd.xlane.f32.xlu0 %v642_v10  ;;  %v524_v9 = vmul.f32 1.442695, %v516_v15 }
 0x23e   : > { %v1035_v26 = vpop.eup %1034  ;;  %v586_v35 = vpop.permute.xlu1 %585  ;;  %v526_v10 = vmul.f32 1.442695, %v517_v23 }
 0x23f   : > { %1044 = vpow2.f32 %v628_v18  ;;  %v602_v38 = vsub.f32 %v1295_v57, %v586_v35  ;;  %v603_v47 = vsub.f32 %v1299_v61, %v586_v35  ;;  %v645_v50 = vadd.f32 %v1035_v26, %v1033_v17  ;;  %v508_v26 = vld [vmem:[#allocation3] sm:$0xff] }
 0x240   : > { %1046 = vpow2.f32 %v630_v25  ;;  %v528_v17 = vmul.f32 1.442695, %v518_v16  ;;  %v530_v18 = vmul.f32 1.442695, %v519_v24 }
 0x241   : > { %v1037_v51 = vpop.eup %1036  ;;  %v632_v54 = vmul.f32 1.442695, %v602_v38  ;;  %v634_v55 = vmul.f32 1.442695, %v603_v47  ;;  %646 = vadd.xlane.f32.xlu1 %v645_v50  ;;  %v511_v38 = vld [vmem:[#allocation3 + $0x18] sm:$0xff] }
 0x242   : > { %v1039_v58 = vpop.eup %1038 }
 0x243   : > { %1048 = vpow2.f32 %v632_v54  ;;  %v648_v59 = vadd.f32 %v1039_v58, %v1037_v51  ;;  %v512_v51 = vld [vmem:[#allocation3 + $0x20] sm:$0xff] }
 0x244   : > { %1050 = vpow2.f32 %v634_v55  ;;  %v513_v55 = vld [vmem:[#allocation3 + $0x28] sm:$0xff] }
 0x245   : > { %v1041_v62 = vpop.eup %1040  ;;  %649 = vadd.xlane.f32.xlu0 %v648_v59  ;;  %1052 = vpow2.f32 %v524_v9 }
 0x246   : > { %v1043_v63 = vpop.eup %1042  ;;  %1054 = vpow2.f32 %v526_v10 }
 0x247   : > { %v651_v0 = vadd.f32 %v1043_v63, %v1041_v62  ;;  %1056 = vpow2.f32 %v528_v17 }
 0x248   : > { %1058 = vpow2.f32 %v530_v18 }
 0x249   : > { %v1045_v1 = vpop.eup %1044  ;;  %652 = vadd.xlane.f32.xlu1 %v651_v0  ;;  %1060 = vpow2.f32 %v532_v7 }
 0x24a   : > { %v1047_v2 = vpop.eup %1046  ;;  %1062 = vpow2.f32 %v534_v8 }
 0x24b   : > { %v654_v3 = vadd.f32 %v1047_v2, %v1045_v1  ;;  %1064 = vpow2.f32 %v536_v21  ;;  %v515_v2 = vld [vmem:[#allocation3 + $0x38] sm:$0xff] }
 0x24c   : > { %1066 = vpow2.f32 %v538_v28 }
 0x24d   : > { %v1049_v4 = vpop.eup %1048  ;;  %655 = vadd.xlane.f32.xlu0 %v654_v3 }
 0x24e   : > { %v1051_v5 = vpop.eup %1050 }
 0x24f   : > { %v657_v6 = vadd.f32 %v1051_v5, %v1049_v4  ;;  %v1053_v25 = vpop.eup %1052 }
 0x250   : > { %v540_v11 = vmul.f32 %v1053_v25, %v508_v26  ;;  %v1055_v13 = vpop.eup %1054 }
 0x251   : > { %658 = vadd.xlane.f32.xlu1 %v657_v6  ;;  %v541_v12 = vmul.f32 %v1055_v13, %v509_v19  ;;  %v1057_v14 = vpop.eup %1056 }
 0x252   : > { %v542_v27 = vmul.f32 %v1057_v14, %v510_v20  ;;  %v1059_v31 = vpop.eup %1058 }
 0x253   : > { %v543_v34 = vmul.f32 %v1059_v31, %v511_v38  ;;  %v1061_v47 = vpop.eup %1060 }
 0x254   : > { %v544_v39 = vmul.f32 %v1061_v47, %v512_v51  ;;  %v1063_v43 = vpop.eup %1062 }
 0x255   : > { %v545_v59 = vmul.f32 %v1063_v43, %v513_v55  ;;  %v1065_v30 = vpop.eup %1064 }
 0x256   : > { %v546_v63 = vmul.f32 %v1065_v30, %v514_v46  ;;  %v1067_v0 = vpop.eup %1066 }
 0x257   : > { %v547_v4 = vmul.f32 %v1067_v0, %v515_v2 }
 0x2c2   : > { %v638_v15 = vpop.xlane.xlu1 %637 }
 0x2c3   : > { %v660_v23 = vadd.f32 %v638_v15, %v540_v11 }
 0x2c5   : > { %669 = vst.msk [vmem:[#allocation3] sm:$0xff] %vm668_vm1, %v660_v23 }
 0x2c6   : > { %v641_v16 = vpop.xlane.xlu0 %640 }
 0x2c7   : > { %v661_v24 = vadd.f32 %v641_v16, %v541_v12 }
 0x2c9   : > { %670 = vst.msk [vmem:[#allocation3 + $0x8] sm:$0xff] %vm668_vm1, %v661_v24 }
 0x2ca   : > { %v644_v35 = vpop.xlane.xlu0 %643 }
 0x2cb   : > { %v662_v22 = vadd.f32 %v644_v35, %v542_v27 }
 0x2cd   : > { %671 = vst.msk [vmem:[#allocation3 + $0x10] sm:$0xff] %vm668_vm1, %v662_v22 }
 0x2ce   : > { %v647_v50 = vpop.xlane.xlu1 %646 }
 0x2cf   : > { %v663_v29 = vadd.f32 %v647_v50, %v543_v34 }
 0x2d1   : > { %672 = vst.msk [vmem:[#allocation3 + $0x18] sm:$0xff] %vm668_vm1, %v663_v29 }
 0x2d2   : > { %v650_v54 = vpop.xlane.xlu0 %649 }
 0x2d3   : > { %v664_v58 = vadd.f32 %v650_v54, %v544_v39 }
 0x2d5   : > { %673 = vst.msk [vmem:[#allocation3 + $0x20] sm:$0xff] %vm668_vm1, %v664_v58 }
 0x2d6   : > { %v653_v42 = vpop.xlane.xlu1 %652 }
 0x2d7   : > { %v665_v62 = vadd.f32 %v653_v42, %v545_v59 }
 0x2d9   : > { %674 = vst.msk [vmem:[#allocation3 + $0x28] sm:$0xff] %vm668_vm1, %v665_v62 }
 0x2da   : > { %v656_v1 = vpop.xlane.xlu0 %655 }
 0x2db   : > { %v666_v3 = vadd.f32 %v656_v1, %v546_v63 }
 0x2dd   : > { %675 = vst.msk [vmem:[#allocation3 + $0x30] sm:$0xff] %vm668_vm1, %v666_v3 }
 0x2de   : > { %v659_v5 = vpop.xlane.xlu1 %658 }
 0x2df   : > { %v667_v6 = vadd.f32 %v659_v5, %v547_v4 }
 0x2e1   : > { %676 = vst.msk [vmem:[#allocation3 + $0x38] sm:$0xff] %vm668_vm1, %v667_v6 }
 0x2e2 PF: > { %p930_p6 = scmp.ne.s32.totalorder %s1130_s12, 1 }
 0x2e3   : > { %v699_v9 = vld [vmem:[#allocation3 + $0x10] sm:$0xff] (!%p930_p6)  ;;  %v1144_v10 = vmov (!%p930_p6), 0   ;;  %v697_v17 = vld [vmem:[#allocation3] sm:$0xff] (!%p930_p6)  ;;  %v700_v18 = vld [vmem:[#allocation3 + $0x18] sm:$0xff] (!%p930_p6) }
 0x2e4   : > { %688 = sbr.rel (%p930_p6) target bundleno = 899 (0x383), region = 44  ;;  %1069 = vset.pattern.permute.xlu1 (!%p930_p6), %v1144_v10  ;;  %1068 = vset.pattern.permute.xlu0 (!%p930_p6), %v1144_v10  ;;  %1070 = vlog2.f32 (!%p930_p6), %v699_v9  ;;  %v698_v25 = vld [vmem:[#allocation3 + $0x8] sm:$0xff] (!%p930_p6)  ;;  %v701_v7 = vld [vmem:[#allocation3 + $0x20] sm:$0xff] (!%p930_p6)  ;;  %v703_v13 = vld [vmem:[#allocation3 + $0x30] sm:$0xff] (!%p930_p6) }
 0x2e5   : > { %1072 = vlog2.f32 (!%p930_p6), %v697_v17  ;;  %v702_v26 = vld [vmem:[#allocation3 + $0x28] sm:$0xff] (!%p930_p6)  ;;  %v691_v19 = vld [vmem:[#allocation2 + $0x10] sm:$0xff] (!%p930_p6)  ;;  %v689_v12 = vld [vmem:[#allocation2] sm:$0xff] (!%p930_p6) }
 0x2e6   : > { %1074 = vlog2.f32 (!%p930_p6), %v700_v18  ;;  %v692_v20 = vld [vmem:[#allocation2 + $0x18] sm:$0xff] (!%p930_p6)  ;;  %v690_v31 = vld [vmem:[#allocation2 + $0x8] sm:$0xff] (!%p930_p6)  ;;  %v693_v54 = vld [vmem:[#allocation2 + $0x20] sm:$0xff] (!%p930_p6) }
 0x2e7   : > { %1076 = vlog2.f32 (!%p930_p6), %v698_v25  ;;  %v694_v29 = vld [vmem:[#allocation2 + $0x28] sm:$0xff] (!%p930_p6)  ;;  %v696_v30 = vld [vmem:[#allocation2 + $0x38] sm:$0xff] (!%p930_p6)  ;;  %v695_v46 = vld [vmem:[#allocation2 + $0x30] sm:$0xff] (!%p930_p6) }
 0x2e8   : > { %v704_v11 = vld [vmem:[#allocation3 + $0x38] sm:$0xff] (!%p930_p6)  ;;  %1078 = vlog2.f32 (!%p930_p6), %v702_v26 }
 0x2e9   : > { %1080 = vlog2.f32 (!%p930_p6), %v701_v7 }
 0x2ea   : > { %1082 = vlog2.f32 (!%p930_p6), %v704_v11 }
 0x2eb   : > { %1084 = vlog2.f32 %v703_v13 }
 0x2ee   : > { %v1071_v15 = vpop.eup %1070 }
 0x2ef   : > { %v1073_v23 = vpop.eup %1072  ;;  %v710_v8 = vmul.f32 0.6931472, %v1071_v15 }
 0x2f0   : > { %v1075_v14 = vpop.eup %1074  ;;  %v706_v16 = vmul.f32 0.6931472, %v1073_v23 }
 0x2f1   : > { %v1077_v24 = vpop.eup %1076  ;;  %v723_v21 = vadd.f32 %v710_v8, %v691_v19  ;;  %v712_v27 = vmul.f32 0.6931472, %v1075_v14 }
 0x2f2   : > { %v1079_v35 = vpop.eup %1078  ;;  %v721_v38 = vadd.f32 %v706_v16, %v689_v12  ;;  %v708_v22 = vmul.f32 0.6931472, %v1077_v24 }
 0x2f3   : > { %v1081_v28 = vpop.eup %1080  ;;  %741 = vperm.xlu1 %1069, %v723_v21   ;;  %v724_v34 = vadd.f32 %v712_v27, %v692_v20  ;;  %v716_v47 = vmul.f32 0.6931472, %v1079_v35 }
 0x2f4   : > { %v1083_v50 = vpop.eup %1082  ;;  %731 = vperm.xlu0 %1068, %v721_v38   ;;  %v722_v51 = vadd.f32 %v708_v22, %v690_v31  ;;  %v714_v39 = vmul.f32 0.6931472, %v1081_v28 }
 0x2f5   : > { %v1085_v43 = vpop.eup %1084  ;;  %v726_v55 = vadd.f32 %v716_v47, %v694_v29  ;;  %v720_v58 = vmul.f32 0.6931472, %v1083_v50 }
 0x2f6   : > { %v725_v59 = vadd.f32 %v714_v39, %v693_v54  ;;  %v718_v42 = vmul.f32 0.6931472, %v1085_v43 }
 0x2f7   : > { %746 = vperm.xlu1 %1069, %v724_v34   ;;  %v728_v62 = vadd.f32 %v720_v58, %v696_v30 }
 0x2f8   : > { %736 = vperm.xlu0 %1068, %v722_v51   ;;  %v727_v63 = vadd.f32 %v718_v42, %v695_v46 }
 0x2fb   : > { %756 = vperm.xlu1 %1069, %v726_v55  }
 0x2fc   : > { %751 = vperm.xlu0 %1068, %v725_v59  }
 0x2ff   : > { %766 = vperm.xlu1 %1069, %v728_v62  }
 0x300   : > { %761 = vperm.xlu0 %1068, %v727_v63  }
 0x372   : > { %v742_v0 = vpop.permute.xlu1 %741 }
 0x373   : > { %v773_v1 = vsub.f32 %v1285_v48, %v742_v0  ;;  %v774_v2 = vsub.f32 %v1289_v52, %v742_v0  ;;  %v732_v3 = vpop.permute.xlu0 %731 }
 0x374   : > { %v769_v4 = vsub.f32 %v1269_v32, %v732_v3  ;;  %v770_v5 = vsub.f32 %v1273_v36, %v732_v3 }
 0x375   : > { %789 = vst [vmem:[#allocation4 + $0x20] sm:$0xff] %v773_v1  ;;  %790 = vst [vmem:[#allocation4 + $0x28] sm:$0xff] %v774_v2 }
 0x376   : > { %785 = vst [vmem:[#allocation4] sm:$0xff] %v769_v4  ;;  %786 = vst [vmem:[#allocation4 + $0x8] sm:$0xff] %v770_v5  ;;  %v747_v6 = vpop.permute.xlu1 %746 }
 0x377   : > { %v775_v9 = vsub.f32 %v1293_v56, %v747_v6  ;;  %v776_v10 = vsub.f32 %v1297_v60, %v747_v6  ;;  %v737_v17 = vpop.permute.xlu0 %736 }
 0x378   : > { %v771_v18 = vsub.f32 %v1277_v40, %v737_v17  ;;  %v772_v48 = vsub.f32 %v1281_v44, %v737_v17 }
 0x379   : > { %791 = vst [vmem:[#allocation4 + $0x30] sm:$0xff] %v775_v9  ;;  %792 = vst [vmem:[#allocation4 + $0x38] sm:$0xff] %v776_v10 }
 0x37a   : > { %787 = vst [vmem:[#allocation4 + $0x10] sm:$0xff] %v771_v18  ;;  %788 = vst [vmem:[#allocation4 + $0x18] sm:$0xff] %v772_v48  ;;  %v757_v32 = vpop.permute.xlu1 %756 }
 0x37b   : > { %v779_v36 = vsub.f32 %v1279_v41, %v757_v32  ;;  %v780_v52 = vsub.f32 %v1283_v45, %v757_v32  ;;  %v752_v25 = vpop.permute.xlu0 %751 }
 0x37c   : > { %v777_v26 = vsub.f32 %v1271_v33, %v752_v25  ;;  %v778_v56 = vsub.f32 %v1275_v37, %v752_v25 }
 0x37d   : > { %795 = vst [vmem:[#allocation4 + $0x50] sm:$0xff] %v779_v36  ;;  %796 = vst [vmem:[#allocation4 + $0x58] sm:$0xff] %v780_v52 }
 0x37e   : > { %793 = vst [vmem:[#allocation4 + $0x40] sm:$0xff] %v777_v26  ;;  %794 = vst [vmem:[#allocation4 + $0x48] sm:$0xff] %v778_v56  ;;  %v767_v40 = vpop.permute.xlu1 %766 }
 0x37f   : > { %v783_v44 = vsub.f32 %v1295_v57, %v767_v40  ;;  %v784_v60 = vsub.f32 %v1299_v61, %v767_v40  ;;  %v762_v7 = vpop.permute.xlu0 %761 }
 0x380   : > { %v781_v11 = vsub.f32 %v1287_v49, %v762_v7  ;;  %v782_v41 = vsub.f32 %v1291_v53, %v762_v7 }
 0x381   : > { %799 = vst [vmem:[#allocation4 + $0x70] sm:$0xff] %v783_v44  ;;  %800 = vst [vmem:[#allocation4 + $0x78] sm:$0xff] %v784_v60 }
 0x382   : > { %797 = vst [vmem:[#allocation4 + $0x60] sm:$0xff] %v781_v11  ;;  %798 = vst [vmem:[#allocation4 + $0x68] sm:$0xff] %v782_v41 }
 0x383 PF: > { %p1465_p7 = scmp.eq.s32.totalorder %s902_s15, 1  ;;  %s1145_s10 = smov [#allocation4]  }
 0x384   : > { %s813_s11 = sshll.u32 %s1145_s10, 4  ;;  %s814_s11 = int_to_ptr.vmem [resolvable:$true] %s813_s11 }
 0x385   : > { %s1086_s17 = scalar_lea.vmem %s814_s11, 2048  ;;  %p1093_p11 = scmp.lt.s32.totalorder %s814_s11, %s814_s11 }
 0x386   : > { %p1087_p8 = scmp.ne.s32.totalorder %s814_s11, %s1086_s17  ;;  %p1094_p12 = scmp.lt.s32.totalorder %s1086_s17, %s1086_s17 }
 0x388   : > { %p1088_p9 = pnand %p1087_p8, %p1465_p7  ;;  %p1095_p13 = por %p1094_p12, %p1093_p11 }
 0x38a   : > { %p1089_p10 = pneg %p1088_p9 }
 0x38c   : > { %p1096_p0 = pnand %p1095_p13, %p1089_p10 }
 0x38e   : > { %1099 = shalt.err (!%p1096_p0)
}
 0x38f   : > { %s1100_s15 = scalar_lea.hbm %s1503_s3, 2048 }
 0x390   : > { %p1101_p1 = scmp.ne.s32.totalorder %s1503_s3, %s1100_s15  ;;  %p1106_p4 = scmp.lt.u32.totalorder %s1100_s15, %s1503_s3 }
 0x392   : > { %p1102_p2 = pnand %p1101_p1, %p1465_p7 }
 0x394   : > { %p1103_p3 = pneg %p1102_p2 }
 0x396   : > { %p1108_p5 = pnand %p1106_p4, %p1103_p3 }
 0x398   : > { %1111 = shalt.err (!%p1108_p5)
}
 0x399   : > { %s1146_s24 = smov 256   ;;  %s1147_s25 = smov 16  }
 0x39a   : > { %953 = dma.vmem_to_hbm [thread:$0]  (%p1465_p7), %s814_s11, 2048, %s1503_s3, [#allocation5], %s1146_s24, %s1146_s24, %s1147_s25  }
 0x39b   : > { %1125 = dma.done.wait (%p1465_p7), [#allocation5], 2048  }
 0x39c   : > { %1127 = vsyncadd (%p1465_p7), [#allocation5], 4294965248 }
 0x39d PF: > { %s14_s14 = sadd.s32 1, %s1138_s14   ;;  %s1505_s12 = smov %s1134_s13 }
 0x39e   : > { %p11_p6 = scmp.ge.s32.totalorder %s14_s14, 4   ;;  %s1506_s13 = smov %s1508_s16 }
 0x3a0   :  { %13 = sbr.rel (!%p11_p6) target bundleno = 2 (0x2), region = 78 }
 0x3a7   :  { %829 = vsyncpa [#allocation5], 1 }
 0x3a8   :  { %831 = vsyncpa [#allocation5 + $0x1], 1 }

// kernel: seq2seq_forward.3
= control target key start
LH: loop header
LB: loop body
LE: loop exit
PB: predicated region body
PF: predicated region fallthrough
CT: control target
= control target key end

     0   :  { %v2697_v1 = vmov 0   ;;  %v2699_v35 = vmov 0.0   ;;  %vm1965_vm0 = vmmov 0   ;;  %v63_v54 = vlaneseq  ;;  %s2691_s1 = inlined_call_operand.vmem [shape: bf16[128,384], index: 1, kind: input, shape index: {}]   ;;  %s2692_s0 = inlined_call_operand.vmem [shape: bf16[64,128], index: 0, kind: input, shape index: {}]   ;;  %s2693_s2 = inlined_call_operand.vmem [shape: bf16[128,384], index: 2, kind: input, shape index: {}]   ;;  %s2694_s3 = inlined_call_operand.vmem [shape: f32[1,384], index: 3, kind: input, shape index: {}]   ;;  %s2695_s4 = inlined_call_operand.vmem [shape: f32[1,384], index: 4, kind: input, shape index: {}]   ;;  %s2696_s5 = inlined_call_operand.vmem [shape: f32[8,128], index: 5, kind: output, shape index: {}]  }
   0x1   :  { %v1791_v0 = vld [vmem:[%s2691_s1 + $0x4] ss:$12 sps:$4 sm:$0xff]   ;;  %262 = vmatprep.mubr.bf16.mxu0 %v2697_v1  ;;  %v1793_v2 = vld [vmem:[%s2691_s1] ss:$12 sps:$4 sm:$0xff]   ;;  %v1794_v3 = vld [vmem:[%s2691_s1 + $0x1c] ss:$12 sps:$4 sm:$0xff]  }
   0x2   :  { %230 = vmatprep.subr.bf16.mxu0 %v1791_v0  ;;  %v1796_v4 = vld [vmem:[%s2691_s1 + $0x18] ss:$12 sps:$4 sm:$0xff]   ;;  %v1797_v5 = vld [vmem:[%s2691_s1 + $0x34] ss:$12 sps:$4 sm:$0xff]   ;;  %v1799_v6 = vld [vmem:[%s2691_s1 + $0x30] ss:$12 sps:$4 sm:$0xff]  }
   0x3   :  { %231 = vmatpush1.bf16.msra.mxu0 %v1793_v2  ;;  %v1800_v7 = vld [vmem:[%s2691_s1 + $0x4c] ss:$12 sps:$4 sm:$0xff]   ;;  %v1812_v8 = vld [vmem:[%s2691_s1 + $0x8] ss:$12 sps:$4 sm:$0xff]   ;;  %v1803_v10 = vld [vmem:[%s2691_s1 + $0x64] ss:$12 sps:$4 sm:$0xff]  }
   0x4   :  { %232 = vmatprep.subr.bf16.mxu0 %v1794_v3  ;;  %v1802_v9 = vld [vmem:[%s2691_s1 + $0x48] ss:$12 sps:$4 sm:$0xff]   ;;  %1604 = vmatprep.subr.bf16.mxu1 %v1812_v8  ;;  %v1816_v11 = vld [vmem:[%s2691_s1 + $0x20] ss:$12 sps:$4 sm:$0xff]   ;;  %v1821_v14 = vld [vmem:[%s2691_s1 + $0x38] ss:$12 sps:$4 sm:$0xff]  }
   0x5   :  { %1605 = vmatpush3.bf16.msra.mxu1 %v1812_v8  ;;  %v1817_v12 = vld [vmem:[%s2692_s0] sm:$0xff]   ;;  %v1806_v15 = vld [vmem:[%s2691_s1 + $0x7c] ss:$12 sps:$4 sm:$0xff]   ;;  %v1813_v21 = vld [vmem:[%s2691_s1 + $0xac] ss:$12 sps:$4 sm:$0xff]   ;;  %v2278_v55 = vshrl.u32 %v63_v54, 7 }
   0x6   :  { %v1805_v13 = vld [vmem:[%s2691_s1 + $0x60] ss:$12 sps:$4 sm:$0xff]   ;;  %1606 = vmatprep.subr.bf16.mxu1 %v1816_v11  ;;  %1620 = vmatprep.mubr.bf16.mxu1 %v1817_v12  ;;  %v1825_v16 = vld [vmem:[%s2691_s1 + $0x50] ss:$12 sps:$4 sm:$0xff]   ;;  %v1808_v17 = vld [vmem:[%s2691_s1 + $0x78] ss:$12 sps:$4 sm:$0xff]  }
   0x7   :  { %233 = vmatpush1.bf16.msra.mxu0 %v1796_v4  ;;  %v1809_v18 = vld [vmem:[%s2691_s1 + $0x94] ss:$12 sps:$4 sm:$0xff]   ;;  %v1811_v20 = vld [vmem:[%s2691_s1 + $0x90] ss:$12 sps:$4 sm:$0xff]   ;;  %v1839_v25 = vld [vmem:[%s2691_s1 + $0x98] ss:$12 sps:$4 sm:$0xff]  }
   0x8   :  { %234 = vmatprep.subr.bf16.mxu0 %v1797_v5  ;;  %v1830_v19 = vld [vmem:[%s2691_s1 + $0x68] ss:$12 sps:$4 sm:$0xff]   ;;  %v1834_v22 = vld [vmem:[%s2691_s1 + $0x80] ss:$12 sps:$4 sm:$0xff]   ;;  %v2069_v24 = vld [vmem:[%s2693_s2 + $0x4] ss:$12 sps:$4 sm:$0xff]  }
   0x9   :  { %1607 = vmatpush3.bf16.msra.mxu1 %v1816_v11  ;;  %v1815_v23 = vld [vmem:[%s2691_s1 + $0xa8] ss:$12 sps:$4 sm:$0xff]   ;;  %v2077_v26 = vld [vmem:[%s2693_s2] ss:$12 sps:$4 sm:$0xff]   ;;  %v1843_v28 = vld [vmem:[%s2691_s1 + $0xb0] ss:$12 sps:$4 sm:$0xff]  }
   0xa   :  { %1608 = vmatprep.subr.bf16.mxu1 %v1821_v14  ;;  %v2083_v27 = vld [vmem:[%s2693_s2 + $0x1c] ss:$12 sps:$4 sm:$0xff]   ;;  %v2092_v29 = vld [vmem:[%s2693_s2 + $0x18] ss:$12 sps:$4 sm:$0xff]   ;;  %v2099_v30 = vld [vmem:[%s2693_s2 + $0x34] ss:$12 sps:$4 sm:$0xff]  }
   0xb   :  { %235 = vmatpush1.bf16.msra.mxu0 %v1799_v6  ;;  %v1826_v31 = vld [vmem:[%s2692_s0 + $0x8] sm:$0xff]   ;;  %v2108_v32 = vld [vmem:[%s2693_s2 + $0x30] ss:$12 sps:$4 sm:$0xff]   ;;  %v2161_v42 = vld [vmem:[%s2693_s2 + $0x38] ss:$12 sps:$4 sm:$0xff]   ;;  %v65_v56 = vsub.s32 0, %v2278_v55 }
   0xc   :  { %236 = vmatprep.subr.bf16.mxu0 %v1800_v7  ;;  %v2114_v33 = vld [vmem:[%s2693_s2 + $0x4c] ss:$12 sps:$4 sm:$0xff]   ;;  %v2119_v34 = vld [vmem:[%s2693_s2 + $0x8] ss:$12 sps:$4 sm:$0xff]   ;;  %v2136_v38 = vld [vmem:[%s2693_s2 + $0x64] ss:$12 sps:$4 sm:$0xff]  }
   0xd   :  { %1609 = vmatpush3.bf16.msra.mxu1 %v1821_v14  ;;  %v2126_v36 = vld [vmem:[%s2693_s2 + $0x48] ss:$12 sps:$4 sm:$0xff]   ;;  %v2142_v39 = vld [vmem:[%s2693_s2 + $0x20] ss:$12 sps:$4 sm:$0xff]   ;;  %v1844_v43 = vld [vmem:[%s2692_s0 + $0x18] sm:$0xff]   ;;  %v69_v58 = vsub.s32 1, %v2278_v55 }
   0xe   :  { %1610 = vmatprep.subr.bf16.mxu1 %v1825_v16  ;;  %v1835_v37 = vld [vmem:[%s2692_s0 + $0x10] sm:$0xff]   ;;  %v2149_v40 = vld [vmem:[%s2693_s2 + $0x60] ss:$12 sps:$4 sm:$0xff]   ;;  %v2155_v41 = vld [vmem:[%s2693_s2 + $0x7c] ss:$12 sps:$4 sm:$0xff]   ;;  %v2701_v3 = vsub.s32 2, %v2278_v55 }
   0xf   :  { %237 = vmatpush1.bf16.msra.mxu0 %v1802_v9  ;;  %v2171_v44 = vld [vmem:[%s2693_s2 + $0x78] ss:$12 sps:$4 sm:$0xff]   ;;  %v2178_v45 = vld [vmem:[%s2693_s2 + $0x94] ss:$12 sps:$4 sm:$0xff]   ;;  %v2184_v46 = vld [vmem:[%s2693_s2 + $0x50] ss:$12 sps:$4 sm:$0xff]  }
  0x10   :  { %238 = vmatprep.subr.bf16.mxu0 %v1803_v10  ;;  %v2193_v47 = vld [vmem:[%s2693_s2 + $0x90] ss:$12 sps:$4 sm:$0xff]   ;;  %v2199_v48 = vld [vmem:[%s2693_s2 + $0xac] ss:$12 sps:$4 sm:$0xff]   ;;  %v2205_v49 = vld [vmem:[%s2693_s2 + $0x68] ss:$12 sps:$4 sm:$0xff]  }
  0x11   :  { %1611 = vmatpush3.bf16.msra.mxu1 %v1825_v16  ;;  %v2212_v50 = vld [vmem:[%s2693_s2 + $0xa8] ss:$12 sps:$4 sm:$0xff]   ;;  %v2220_v51 = vld [vmem:[%s2693_s2 + $0x80] ss:$12 sps:$4 sm:$0xff]   ;;  %v2229_v52 = vld [vmem:[%s2693_s2 + $0x98] ss:$12 sps:$4 sm:$0xff]  }
  0x12   :  { %1612 = vmatprep.subr.bf16.mxu1 %v1830_v19  ;;  %v2240_v53 = vld [vmem:[%s2693_s2 + $0xb0] ss:$12 sps:$4 sm:$0xff]   ;;  %v61_v57 = vld [vmem:[%s2694_s3] sm:$0x7] }
  0x13   :  { %239 = vmatpush1.bf16.msra.mxu0 %v1805_v13  ;;  %v66_v60 = vrot.slane %v61_v57, %v65_v56  ;;  %v70_v62 = vrot.slane %v61_v57, %v69_v58  ;;  %v2292_v5 = vrot.slane %v61_v57, %v2701_v3 }
  0x14   :  { %240 = vmatprep.subr.bf16.mxu0 %v1806_v15 }
  0x15   :  { %1613 = vmatpush3.bf16.msra.mxu1 %v1830_v19 }
  0x16   :  { %1614 = vmatprep.subr.bf16.mxu1 %v1834_v22 }
  0x17   :  { %241 = vmatpush1.bf16.msra.mxu0 %v1808_v17 }
  0x18   :  { %242 = vmatprep.subr.bf16.mxu0 %v1809_v18 }
  0x19   :  { %1615 = vmatpush3.bf16.msra.mxu1 %v1834_v22 }
  0x1a   :  { %1616 = vmatprep.subr.bf16.mxu1 %v1839_v25 }
  0x1b   :  { %243 = vmatpush1.bf16.msra.mxu0 %v1811_v20 }
  0x1c   :  { %244 = vmatprep.subr.bf16.mxu0 %v1813_v21 }
  0x1d   :  { %1617 = vmatpush3.bf16.msra.mxu1 %v1839_v25 }
  0x1e   :  { %1618 = vmatprep.subr.bf16.mxu1 %v1843_v28 }
  0x1f   :  { %245 = vmatpush1.bf16.msra.mxu0 %v1815_v23 }
  0x20   :  { %575 = vmatprep.subr.bf16.mxu0 %v2069_v24 }
  0x21   :  { %1619 = vmatpush3.bf16.msra.mxu1 %v1843_v28 }
  0x22   :  { %263 = vmatmul.mubr.bf16.vlgmr.msra.gmra.mrb[0].mxu0 %v1817_v12  ;;  %1628 = vmatprep.subr.bf16.mxu1 %v2699_v35 }
  0x23   :  { %576 = vmatpush1.bf16.msra.mxu0 %v2077_v26  ;;  %272 = vmatprep.mubr.bf16.mxu0 %v2697_v1 }
  0x24   :  { %577 = vmatprep.subr.bf16.mxu0 %v2083_v27  ;;  %1621 = vmatmul.mubr.bf16.vlgmr.msra.gmra.mrb[0].mxu1 %v1826_v31 }
  0x25   :  { %1629 = vmatpush3.bf16.msra.mxu1 %v2119_v34  ;;  %1624 = vmatprep.mubr.bf16.mxu1 %v1835_v37 }
  0x26   :  { %1630 = vmatprep.subr.bf16.mxu1 %v2699_v35 }
  0x27   :  { %578 = vmatpush1.bf16.msra.mxu0 %v2092_v29 }
  0x28   :  { %579 = vmatprep.subr.bf16.mxu0 %v2099_v30 }
  0x29   :  { %1631 = vmatpush3.bf16.msra.mxu1 %v2142_v39 }
  0x2a   :  { %273 = vmatmul.mubr.bf16.gmra.mrb[4].mxu0 %v1826_v31  ;;  %1632 = vmatprep.subr.bf16.mxu1 %v2699_v35 }
  0x2b   :  { %580 = vmatpush1.bf16.msra.mxu0 %v2108_v32  ;;  %282 = vmatprep.mubr.bf16.mxu0 %v2697_v1 }
  0x2c   :  { %581 = vmatprep.subr.bf16.mxu0 %v2114_v33  ;;  %1625 = vmatmul.mubr.bf16.gmra.mrb[4].mxu1 %v1844_v43 }
  0x2d   :  { %1633 = vmatpush3.bf16.msra.mxu1 %v2161_v42  ;;  %1644 = vmatprep.mubr.msk.bf16.mxu1 %vm1965_vm0, %v2699_v35 }
  0x2e   :  { %1634 = vmatprep.subr.bf16.mxu1 %v2699_v35 }
  0x2f   :  { %582 = vmatpush1.bf16.msra.mxu0 %v2126_v36 }
  0x30   :  { %583 = vmatprep.subr.bf16.mxu0 %v2136_v38 }
  0x31   :  { %1635 = vmatpush3.bf16.msra.mxu1 %v2184_v46 }
  0x32   :  { %283 = vmatmul.mubr.bf16.gmra.mrb[8].mxu0 %v1835_v37  ;;  %1636 = vmatprep.subr.bf16.mxu1 %v2699_v35 }
  0x33   :  { %584 = vmatpush1.bf16.msra.mxu0 %v2149_v40  ;;  %292 = vmatprep.mubr.bf16.mxu0 %v2697_v1 }
  0x34   :  { %585 = vmatprep.subr.bf16.mxu0 %v2155_v41 }
  0x35   :  { %1637 = vmatpush3.bf16.msra.mxu1 %v2205_v49 }
  0x36   :  { %1638 = vmatprep.subr.bf16.mxu1 %v2699_v35 }
  0x37   :  { %586 = vmatpush1.bf16.msra.mxu0 %v2171_v44 }
  0x38   :  { %587 = vmatprep.subr.bf16.mxu0 %v2178_v45 }
  0x39   :  { %1639 = vmatpush3.bf16.msra.mxu1 %v2220_v51 }
  0x3a   :  { %293 = vmatmul.mubr.bf16.gmra.mrb[12].mxu0 %v1844_v43  ;;  %1640 = vmatprep.subr.bf16.mxu1 %v2699_v35 }
  0x3b   :  { %588 = vmatpush1.bf16.msra.mxu0 %v2193_v47  ;;  %607 = vmatprep.mubr.bf16.mxu0 %v2697_v1 }
  0x3c   :  { %589 = vmatprep.subr.bf16.mxu0 %v2199_v48 }
  0x3d   :  { %1641 = vmatpush3.bf16.msra.mxu1 %v2229_v52 }
  0x3e   :  { %1642 = vmatprep.subr.bf16.mxu1 %v2699_v35 }
  0x3f   :  { %590 = vmatpush1.bf16.msra.mxu0 %v2212_v50 }
  0x40   :  { %684 = vmatprep.subr.bf16.mxu0 %v2069_v24 }
  0x41   :  { %1643 = vmatpush3.bf16.msra.mxu1 %v2240_v53 }
  0x42   :  { %608 = vmatmul.mubr.bf16.vlgmr.msra.gmra.mrb[16].mxu0 %v2697_v1  ;;  %1648 = vmatprep.subr.bf16.mxu1 %v2699_v35 }
  0x43   :  { %685 = vmatpush1.bf16.msra.mxu0 %v2077_v26  ;;  %716 = vmatprep.mubr.bf16.mxu0 %v2697_v1 }
  0x44   :  { %686 = vmatprep.subr.bf16.mxu0 %v2083_v27  ;;  %1645 = vmatmul.mubr.bf16.vlgmr.msra.gmra.mrb[8].mxu1 %v2697_v1 }
  0x45   :  { %1649 = vmatpush3.bf16.msra.mxu1 %v2119_v34  ;;  %1664 = vmatprep.mubr.msk.bf16.mxu1 %vm1965_vm0, %v2699_v35 }
  0x46   :  { %1650 = vmatprep.subr.bf16.mxu1 %v2699_v35 }
  0x47   :  { %687 = vmatpush1.bf16.msra.mxu0 %v2092_v29 }
  0x48   :  { %688 = vmatprep.subr.bf16.mxu0 %v2099_v30 }
  0x49   :  { %1651 = vmatpush3.bf16.msra.mxu1 %v2142_v39 }
  0x4a   :  { %1652 = vmatprep.subr.bf16.mxu1 %v2699_v35 }
  0x4b   :  { %689 = vmatpush1.bf16.msra.mxu0 %v2108_v32 }
  0x4c   :  { %690 = vmatprep.subr.bf16.mxu0 %v2114_v33 }
  0x4d   :  { %1653 = vmatpush3.bf16.msra.mxu1 %v2161_v42 }
  0x4e   :  { %1654 = vmatprep.subr.bf16.mxu1 %v2699_v35 }
  0x4f   :  { %691 = vmatpush1.bf16.msra.mxu0 %v2126_v36 }
  0x50   :  { %692 = vmatprep.subr.bf16.mxu0 %v2136_v38 }
  0x51   :  { %1655 = vmatpush3.bf16.msra.mxu1 %v2184_v46 }
  0x52   :  { %1656 = vmatprep.subr.bf16.mxu1 %v2699_v35 }
  0x53   :  { %693 = vmatpush1.bf16.msra.mxu0 %v2149_v40 }
  0x54   :  { %694 = vmatprep.subr.bf16.mxu0 %v2155_v41 }
  0x55   :  { %1657 = vmatpush3.bf16.msra.mxu1 %v2205_v49 }
  0x56   :  { %1658 = vmatprep.subr.bf16.mxu1 %v2699_v35 }
  0x57   :  { %695 = vmatpush1.bf16.msra.mxu0 %v2171_v44 }
  0x58   :  { %696 = vmatprep.subr.bf16.mxu0 %v2178_v45 }
  0x59   :  { %1659 = vmatpush3.bf16.msra.mxu1 %v2220_v51 }
  0x5a   :  { %1660 = vmatprep.subr.bf16.mxu1 %v2699_v35 }
  0x5b   :  { %697 = vmatpush1.bf16.msra.mxu0 %v2193_v47 }
  0x5c   :  { %698 = vmatprep.subr.bf16.mxu0 %v2199_v48 }
  0x5d   :  { %1661 = vmatpush3.bf16.msra.mxu1 %v2229_v52 }
  0x5e   :  { %1662 = vmatprep.subr.bf16.mxu1 %v2699_v35 }
  0x5f   :  { %699 = vmatpush1.bf16.msra.mxu0 %v2212_v50 }
  0x60   :  { %793 = vmatprep.subr.bf16.mxu0 %v2069_v24 }
  0x61   :  { %1663 = vmatpush3.bf16.msra.mxu1 %v2240_v53 }
  0x62   :  { %1668 = vmatprep.subr.bf16.mxu1 %v2699_v35 }
  0xf5   :  { %v264_v59 = vpop.f32.mrb[0].mxu0 }
  0xf6   :  { %v266_v61 = vpop.f32.mrb[1].mxu0 }
  0xf7   :  { %v268_v63 = vpop.f32.mrb[2].mxu0  ;;  %v1622_v11 = vpop.f32.mrb[0].mxu1  ;;  %v267_v3 = vadd.f32 %v266_v61, %v70_v62 }
  0xf8   :  { %v2285_v0 = vadd.f32 %v268_v63, %v66_v60  ;;  %v270_v2 = vpop.f32.mrb[3].mxu0  ;;  %v2301_v14 = vadd.f32 %v1622_v11, %v2292_v5  ;;  %v337_v15 = vpop.f32.mrb[1].mxu1 }
  0xf9   :  { %v2288_v4 = vadd.f32 %v270_v2, %v70_v62  ;;  %v1623_v17 = vpop.f32.mrb[2].mxu1 }
  0xfa   :  { %v2306_v18 = vadd.f32 %v1623_v17, %v2292_v5  ;;  %v340_v19 = vpop.f32.mrb[3].mxu1 }
  0xfb   :  { %v2309_v20 = vadd.f32 %v340_v19, %v2292_v5 }
  0xfd   :  { %v274_v6 = vpop.f32.mrb[4].mxu0 }
  0xfe   :  { %v2294_v7 = vadd.f32 %v274_v6, %v66_v60  ;;  %v276_v8 = vpop.f32.mrb[5].mxu0 }
  0xff   :  { %v2296_v9 = vadd.f32 %v276_v8, %v70_v62  ;;  %v278_v10 = vpop.f32.mrb[6].mxu0  ;;  %v1626_v31 = vpop.f32.mrb[4].mxu1 }
 0x100   :  { %v2298_v12 = vadd.f32 %v278_v10, %v66_v60  ;;  %v280_v13 = vpop.f32.mrb[7].mxu0  ;;  %v2318_v54 = vadd.f32 %v1626_v31, %v2292_v5  ;;  %v353_v57 = vpop.f32.mrb[5].mxu1 }
 0x101   :  { %v2303_v16 = vadd.f32 %v280_v13, %v70_v62  ;;  %v2323_v2 = vadd.f32 %v353_v57, %v2292_v5  ;;  %v1627_v6 = vpop.f32.mrb[6].mxu1 }
 0x102   :  { %2702 = vst [vmem:[#allocation3_spill] sm:$0xff] %v2318_v54  ;;  %v2326_v8 = vadd.f32 %v1627_v6, %v2292_v5  ;;  %v356_v10 = vpop.f32.mrb[7].mxu1 }
 0x103   :  { %v2329_v11 = vadd.f32 %v356_v10, %v2292_v5 }
 0x104   :  { %2704 = vst [vmem:[#allocation5_spill] sm:$0xff] %v2326_v8 }
 0x105   :  { %v284_v21 = vpop.f32.mrb[8].mxu0  ;;  %2705 = vst [vmem:[#allocation6_spill] sm:$0xff] %v2329_v11 }
 0x106   :  { %v2311_v22 = vadd.f32 %v284_v21, %v66_v60  ;;  %v286_v23 = vpop.f32.mrb[9].mxu0 }
 0x107   :  { %v2313_v25 = vadd.f32 %v286_v23, %v70_v62  ;;  %v288_v28 = vpop.f32.mrb[10].mxu0 }
 0x108   :  { %v2315_v37 = vadd.f32 %v288_v28, %v66_v60  ;;  %v290_v43 = vpop.f32.mrb[11].mxu0  ;;  %v430_v28 = vld [vmem:[%s2695_s4] sm:$0x7] }
 0x109   :  { %v2320_v63 = vadd.f32 %v290_v43, %v70_v62  ;;  %v2342_v6 = vrot.slane %v430_v28, %v65_v56  ;;  %v2344_v10 = vrot.slane %v430_v28, %v69_v58 }
 0x10b   :  { %2703 = vst [vmem:[#allocation4_spill] sm:$0xff] %v2320_v63 }
 0x10d   :  { %v294_v13 = vpop.f32.mrb[12].mxu0 }
 0x10e   :  { %v2331_v17 = vadd.f32 %v294_v13, %v66_v60  ;;  %v296_v19 = vpop.f32.mrb[13].mxu0  ;;  %v265_v13 = vadd.f32 %v264_v59, %v66_v60 }
 0x10f   :  { %v2333_v21 = vadd.f32 %v296_v19, %v70_v62  ;;  %v298_v23 = vpop.f32.mrb[14].mxu0 }
 0x110   :  { %2706 = vst [vmem:[#allocation7_spill] sm:$0xff] %v2331_v17  ;;  %v2338_v31 = vadd.f32 %v298_v23, %v66_v60  ;;  %v300_v43 = vpop.f32.mrb[15].mxu0 }
 0x111   :  { %2707 = vst [vmem:[#allocation8_spill] sm:$0xff] %v2333_v21  ;;  %v2340_v57 = vadd.f32 %v300_v43, %v70_v62 }
 0x112   :  { %2708 = vst [vmem:[#allocation9_spill] sm:$0xff] %v2338_v31 }
 0x113   :  { %2709 = vst [vmem:[#allocation10_spill] sm:$0xff] %v2340_v57 }
 0x115   :  { %v609_v1 = vpop.f32.mrb[16].mxu0 }
 0x116   :  { %v610_v35 = vadd.f32 %v609_v1, %v2342_v6  ;;  %v611_v19 = vpop.f32.mrb[17].mxu0  ;;  %v2710_v1 = vsub.s32 2, %v2278_v55 }
 0x117   :  { %v612_v8 = vadd.f32 %v611_v19, %v2344_v10  ;;  %v613_v54 = vpop.f32.mrb[18].mxu0  ;;  %v650_v57 = vpop.f32.mrb[8].mxu1 }
 0x118   :  { %v656_v21 = vadd.f32 %v610_v35, %v265_v13  ;;  %v614_v17 = vpop.f32.mrb[19].mxu0  ;;  %v1646_v56 = vpop.f32.mrb[9].mxu1  ;;  %v2350_v60 = vrot.slane %v430_v28, %v2710_v1  ;;  %v338_v54 = vadd.f32 %v337_v15, %v2292_v5  ;;  %v2711_v5 = vmov 0.0  }
 0x119   :  { %v663_v23 = vadd.f32 %v612_v8, %v267_v3  ;;  %v653_v11 = vpop.f32.mrb[10].mxu1  ;;  %v2712_v15 = vmov 0  }
 0x11a   :  { %v1504_v31 = vmul.f32 -1.442695, %v656_v21  ;;  %v1647_v58 = vpop.f32.mrb[11].mxu1  ;;  %v651_v35 = vadd.f32 %v650_v57, %v2350_v60 }
 0x11b   :  { %v1505_v43 = vmul.f32 -1.442695, %v663_v23 }
 0x11c   :  { %1859 = vpow2.f32 %v1504_v31 }
 0x11d   :  { %1861 = vpow2.f32 %v1505_v43 }
 0x126   :  { %v1860_v63 = vpop.eup %1859 }
 0x127   :  { %v660_v59 = vadd.f32 1.0, %v1860_v63  ;;  %v1862_v61 = vpop.eup %1861 }
 0x128   :  { %v667_v62 = vadd.f32 1.0, %v1862_v61 }
 0x129   :  { %1863 = vrcp.f32 %v660_v59 }
 0x12a   :  { %1865 = vrcp.f32 %v667_v62 }
 0x133   :  { %v1864_v3 = vpop.eup %1863 }
 0x134   :  { %v670_v8 = vmul.f32 %v1864_v3, %v651_v35  ;;  %v1866_v11 = vpop.eup %1865 }
 0x135   :  { %v673_v21 = vsub.f32 1.0, %v1866_v11  ;;  %v675_v13 = vmul.f32 0.0, %v1866_v11 }
 0x136   :  { %v671_v17 = vadd.f32 %v670_v8, %v338_v54 }
 0x138   :  { %1867 = vtanh.f32 %v671_v17 }
 0x142   :  { %v1868_v31 = vpop.eup %1867 }
 0x143   :  { %v674_v63 = vmul.f32 %v1868_v31, %v673_v21 }
 0x145   :  { %v2354_v19 = vadd.f32 %v675_v13, %v674_v63 }
 0x147   :  { %v677_v55 = vpack.c.bf16 %v2354_v19, %v2354_v19 }
 0x149   :  { %717 = vmatmul.mubr.bf16.vlgmr.msra.gmra.mrb[20].mxu0 %v677_v55  ;;  %1665 = vmatmul.mubr.bf16.vlgmr.msra.gmra.mrb[12].mxu1 %v677_v55 }
 0x14a   :  { %794 = vmatpush1.bf16.msra.mxu0 %v2077_v26  ;;  %1669 = vmatpush3.bf16.msra.mxu1 %v2119_v34 }
 0x14b   :  { %795 = vmatprep.subr.bf16.mxu0 %v2083_v27  ;;  %1670 = vmatprep.subr.bf16.mxu1 %v2711_v5 }
 0x14c   :  { %825 = vmatprep.mubr.bf16.mxu0 %v2712_v15  ;;  %1684 = vmatprep.mubr.msk.bf16.mxu1 %vm1965_vm0, %v2711_v5 }
 0x14e   :  { %796 = vmatpush1.bf16.msra.mxu0 %v2092_v29  ;;  %1671 = vmatpush3.bf16.msra.mxu1 %v2142_v39 }
 0x14f   :  { %797 = vmatprep.subr.bf16.mxu0 %v2099_v30  ;;  %1672 = vmatprep.subr.bf16.mxu1 %v2711_v5 }
 0x152   :  { %798 = vmatpush1.bf16.msra.mxu0 %v2108_v32  ;;  %1673 = vmatpush3.bf16.msra.mxu1 %v2161_v42 }
 0x153   :  { %799 = vmatprep.subr.bf16.mxu0 %v2114_v33  ;;  %1674 = vmatprep.subr.bf16.mxu1 %v2711_v5 }
 0x156   :  { %800 = vmatpush1.bf16.msra.mxu0 %v2126_v36  ;;  %1675 = vmatpush3.bf16.msra.mxu1 %v2184_v46 }
 0x157   :  { %801 = vmatprep.subr.bf16.mxu0 %v2136_v38  ;;  %1676 = vmatprep.subr.bf16.mxu1 %v2711_v5 }
 0x15a   :  { %802 = vmatpush1.bf16.msra.mxu0 %v2149_v40  ;;  %1677 = vmatpush3.bf16.msra.mxu1 %v2205_v49 }
 0x15b   :  { %803 = vmatprep.subr.bf16.mxu0 %v2155_v41  ;;  %1678 = vmatprep.subr.bf16.mxu1 %v2711_v5 }
 0x15e   :  { %804 = vmatpush1.bf16.msra.mxu0 %v2171_v44  ;;  %1679 = vmatpush3.bf16.msra.mxu1 %v2220_v51 }
 0x15f   :  { %805 = vmatprep.subr.bf16.mxu0 %v2178_v45  ;;  %1680 = vmatprep.subr.bf16.mxu1 %v2711_v5 }
 0x162   :  { %806 = vmatpush1.bf16.msra.mxu0 %v2193_v47  ;;  %1681 = vmatpush3.bf16.msra.mxu1 %v2229_v52 }
 0x163   :  { %807 = vmatprep.subr.bf16.mxu0 %v2199_v48  ;;  %1682 = vmatprep.subr.bf16.mxu1 %v2711_v5 }
 0x166   :  { %808 = vmatpush1.bf16.msra.mxu0 %v2212_v50  ;;  %1683 = vmatpush3.bf16.msra.mxu1 %v2240_v53 }
 0x167   :  { %902 = vmatprep.subr.bf16.mxu0 %v2069_v24  ;;  %1688 = vmatprep.subr.bf16.mxu1 %v2711_v5 }
 0x21c   :  { %v718_v28 = vpop.f32.mrb[20].mxu0  ;;  %v759_v57 = vpop.f32.mrb[12].mxu1 }
 0x21d   :  { %v719_v23 = vadd.f32 %v718_v28, %v2342_v6  ;;  %v720_v43 = vpop.f32.mrb[21].mxu0  ;;  %v1666_v56 = vpop.f32.mrb[13].mxu1  ;;  %v760_v63 = vadd.f32 %v759_v57, %v2350_v60 }
 0x21e   :  { %v721_v58 = vadd.f32 %v720_v43, %v2344_v10  ;;  %v722_v59 = vpop.f32.mrb[22].mxu0  ;;  %v762_v1 = vpop.f32.mrb[14].mxu1 }
 0x21f   :  { %v765_v61 = vadd.f32 %v719_v23, %v2285_v0  ;;  %v723_v62 = vpop.f32.mrb[23].mxu0  ;;  %v1667_v35 = vpop.f32.mrb[15].mxu1 }
 0x220   :  { %v772_v3 = vadd.f32 %v721_v58, %v2288_v4 }
 0x221   :  { %v1506_v54 = vmul.f32 -1.442695, %v765_v61 }
 0x222   :  { %v1507_v8 = vmul.f32 -1.442695, %v772_v3 }
 0x223   :  { %1869 = vpow2.f32 %v1506_v54 }
 0x224   :  { %1871 = vpow2.f32 %v1507_v8 }
 0x22d   :  { %v1870_v17 = vpop.eup %1869 }
 0x22e   :  { %v769_v11 = vadd.f32 1.0, %v1870_v17  ;;  %v1872_v21 = vpop.eup %1871 }
 0x22f   :  { %v776_v31 = vadd.f32 1.0, %v1872_v21 }
 0x230   :  { %1873 = vrcp.f32 %v769_v11 }
 0x231   :  { %1875 = vrcp.f32 %v776_v31 }
 0x23a   :  { %v1874_v13 = vpop.eup %1873 }
 0x23b   :  { %v779_v55 = vmul.f32 %v1874_v13, %v760_v63  ;;  %v1876_v28 = vpop.eup %1875 }
 0x23c   :  { %v782_v23 = vsub.f32 1.0, %v1876_v28  ;;  %v784_v56 = vmul.f32 %v1876_v28, %v2354_v19 }
 0x23d   :  { %v780_v0 = vadd.f32 %v779_v55, %v2309_v20 }
 0x23f   :  { %1877 = vtanh.f32 %v780_v0 }
 0x249   :  { %v1878_v4 = vpop.eup %1877 }
 0x24a   :  { %v783_v43 = vmul.f32 %v1878_v4, %v782_v23 }
 0x24c   :  { %v2400_v58 = vadd.f32 %v784_v56, %v783_v43 }
 0x24e   :  { %v786_v59 = vpack.c.bf16 %v2400_v58, %v2400_v58 }
 0x250   :  { %826 = vmatmul.mubr.bf16.vlgmr.msra.gmra.mrb[24].mxu0 %v786_v59  ;;  %1685 = vmatmul.mubr.bf16.vlgmr.msra.gmra.mrb[16].mxu1 %v786_v59 }
 0x251   :  { %903 = vmatpush1.bf16.msra.mxu0 %v2077_v26  ;;  %1689 = vmatpush3.bf16.msra.mxu1 %v2119_v34 }
 0x252   :  { %904 = vmatprep.subr.bf16.mxu0 %v2083_v27  ;;  %1690 = vmatprep.subr.bf16.mxu1 %v2711_v5 }
 0x253   :  { %934 = vmatprep.mubr.bf16.mxu0 %v2712_v15  ;;  %1704 = vmatprep.mubr.msk.bf16.mxu1 %vm1965_vm0, %v2711_v5 }
 0x255   :  { %905 = vmatpush1.bf16.msra.mxu0 %v2092_v29  ;;  %1691 = vmatpush3.bf16.msra.mxu1 %v2142_v39 }
 0x256   :  { %906 = vmatprep.subr.bf16.mxu0 %v2099_v30  ;;  %1692 = vmatprep.subr.bf16.mxu1 %v2711_v5 }
 0x259   :  { %907 = vmatpush1.bf16.msra.mxu0 %v2108_v32  ;;  %1693 = vmatpush3.bf16.msra.mxu1 %v2161_v42 }
 0x25a   :  { %908 = vmatprep.subr.bf16.mxu0 %v2114_v33  ;;  %1694 = vmatprep.subr.bf16.mxu1 %v2711_v5 }
 0x25d   :  { %909 = vmatpush1.bf16.msra.mxu0 %v2126_v36  ;;  %1695 = vmatpush3.bf16.msra.mxu1 %v2184_v46 }
 0x25e   :  { %910 = vmatprep.subr.bf16.mxu0 %v2136_v38  ;;  %1696 = vmatprep.subr.bf16.mxu1 %v2711_v5 }
 0x261   :  { %911 = vmatpush1.bf16.msra.mxu0 %v2149_v40  ;;  %1697 = vmatpush3.bf16.msra.mxu1 %v2205_v49 }
 0x262   :  { %912 = vmatprep.subr.bf16.mxu0 %v2155_v41  ;;  %1698 = vmatprep.subr.bf16.mxu1 %v2711_v5 }
 0x265   :  { %913 = vmatpush1.bf16.msra.mxu0 %v2171_v44  ;;  %1699 = vmatpush3.bf16.msra.mxu1 %v2220_v51 }
 0x266   :  { %914 = vmatprep.subr.bf16.mxu0 %v2178_v45  ;;  %1700 = vmatprep.subr.bf16.mxu1 %v2711_v5 }
 0x269   :  { %915 = vmatpush1.bf16.msra.mxu0 %v2193_v47  ;;  %1701 = vmatpush3.bf16.msra.mxu1 %v2229_v52 }
 0x26a   :  { %916 = vmatprep.subr.bf16.mxu0 %v2199_v48  ;;  %1702 = vmatprep.subr.bf16.mxu1 %v2711_v5 }
 0x26d   :  { %917 = vmatpush1.bf16.msra.mxu0 %v2212_v50  ;;  %1703 = vmatpush3.bf16.msra.mxu1 %v2240_v53 }
 0x26e   :  { %1011 = vmatprep.subr.bf16.mxu0 %v2069_v24  ;;  %1708 = vmatprep.subr.bf16.mxu1 %v2711_v5 }
 0x323   :  { %v827_v20 = vpop.f32.mrb[24].mxu0  ;;  %v868_v19 = vpop.f32.mrb[16].mxu1 }
 0x324   :  { %v828_v57 = vadd.f32 %v827_v20, %v2342_v6  ;;  %v829_v1 = vpop.f32.mrb[25].mxu0  ;;  %v1686_v61 = vpop.f32.mrb[17].mxu1  ;;  %v869_v28 = vadd.f32 %v868_v19, %v2350_v60 }
 0x325   :  { %v830_v62 = vadd.f32 %v829_v1, %v2344_v10  ;;  %v831_v35 = vpop.f32.mrb[26].mxu0  ;;  %v871_v3 = vpop.f32.mrb[18].mxu1 }
 0x326   :  { %v874_v54 = vadd.f32 %v828_v57, %v2294_v7  ;;  %v832_v8 = vpop.f32.mrb[27].mxu0  ;;  %v1687_v17 = vpop.f32.mrb[19].mxu1 }
 0x327   :  { %v881_v11 = vadd.f32 %v830_v62, %v2296_v9 }
 0x328   :  { %v1508_v21 = vmul.f32 -1.442695, %v874_v54 }
 0x329   :  { %v1509_v31 = vmul.f32 -1.442695, %v881_v11 }
 0x32a   :  { %1879 = vpow2.f32 %v1508_v21 }
 0x32b   :  { %1881 = vpow2.f32 %v1509_v31 }
 0x334   :  { %v1880_v63 = vpop.eup %1879 }
 0x335   :  { %v878_v13 = vadd.f32 1.0, %v1880_v63  ;;  %v1882_v55 = vpop.eup %1881 }
 0x336   :  { %v885_v0 = vadd.f32 1.0, %v1882_v55 }
 0x337   :  { %1883 = vrcp.f32 %v878_v13 }
 0x338   :  { %1885 = vrcp.f32 %v885_v0 }
 0x341   :  { %v1884_v23 = vpop.eup %1883 }
 0x342   :  { %v888_v4 = vmul.f32 %v1884_v23, %v869_v28  ;;  %v1886_v43 = vpop.eup %1885 }
 0x343   :  { %v891_v56 = vsub.f32 1.0, %v1886_v43  ;;  %v893_v20 = vmul.f32 %v1886_v43, %v2400_v58 }
 0x344   :  { %v889_v7 = vadd.f32 %v888_v4, %v2301_v14 }
 0x346   :  { %1887 = vtanh.f32 %v889_v7 }
 0x350   :  { %v1888_v9 = vpop.eup %1887 }
 0x351   :  { %v892_v59 = vmul.f32 %v1888_v9, %v891_v56 }
 0x353   :  { %v2446_v57 = vadd.f32 %v893_v20, %v892_v59 }
 0x355   :  { %v895_v1 = vpack.c.bf16 %v2446_v57, %v2446_v57 }
 0x357   :  { %935 = vmatmul.mubr.bf16.vlgmr.msra.gmra.mrb[28].mxu0 %v895_v1  ;;  %1705 = vmatmul.mubr.bf16.vlgmr.msra.gmra.mrb[20].mxu1 %v895_v1 }
 0x358   :  { %1012 = vmatpush1.bf16.msra.mxu0 %v2077_v26  ;;  %1709 = vmatpush3.bf16.msra.mxu1 %v2119_v34 }
 0x359   :  { %1013 = vmatprep.subr.bf16.mxu0 %v2083_v27  ;;  %1710 = vmatprep.subr.bf16.mxu1 %v2711_v5 }
 0x35a   :  { %1043 = vmatprep.mubr.bf16.mxu0 %v2712_v15  ;;  %1724 = vmatprep.mubr.msk.bf16.mxu1 %vm1965_vm0, %v2711_v5 }
 0x35c   :  { %1014 = vmatpush1.bf16.msra.mxu0 %v2092_v29  ;;  %1711 = vmatpush3.bf16.msra.mxu1 %v2142_v39 }
 0x35d   :  { %1015 = vmatprep.subr.bf16.mxu0 %v2099_v30  ;;  %1712 = vmatprep.subr.bf16.mxu1 %v2711_v5 }
 0x360   :  { %1016 = vmatpush1.bf16.msra.mxu0 %v2108_v32  ;;  %1713 = vmatpush3.bf16.msra.mxu1 %v2161_v42 }
 0x361   :  { %1017 = vmatprep.subr.bf16.mxu0 %v2114_v33  ;;  %1714 = vmatprep.subr.bf16.mxu1 %v2711_v5 }
 0x364   :  { %1018 = vmatpush1.bf16.msra.mxu0 %v2126_v36  ;;  %1715 = vmatpush3.bf16.msra.mxu1 %v2184_v46 }
 0x365   :  { %1019 = vmatprep.subr.bf16.mxu0 %v2136_v38  ;;  %1716 = vmatprep.subr.bf16.mxu1 %v2711_v5 }
 0x368   :  { %1020 = vmatpush1.bf16.msra.mxu0 %v2149_v40  ;;  %1717 = vmatpush3.bf16.msra.mxu1 %v2205_v49 }
 0x369   :  { %1021 = vmatprep.subr.bf16.mxu0 %v2155_v41  ;;  %1718 = vmatprep.subr.bf16.mxu1 %v2711_v5 }
 0x36c   :  { %1022 = vmatpush1.bf16.msra.mxu0 %v2171_v44  ;;  %1719 = vmatpush3.bf16.msra.mxu1 %v2220_v51 }
 0x36d   :  { %1023 = vmatprep.subr.bf16.mxu0 %v2178_v45  ;;  %1720 = vmatprep.subr.bf16.mxu1 %v2711_v5 }
 0x370   :  { %1024 = vmatpush1.bf16.msra.mxu0 %v2193_v47  ;;  %1721 = vmatpush3.bf16.msra.mxu1 %v2229_v52 }
 0x371   :  { %1025 = vmatprep.subr.bf16.mxu0 %v2199_v48  ;;  %1722 = vmatprep.subr.bf16.mxu1 %v2711_v5 }
 0x374   :  { %1026 = vmatpush1.bf16.msra.mxu0 %v2212_v50  ;;  %1723 = vmatpush3.bf16.msra.mxu1 %v2240_v53 }
 0x375   :  { %1120 = vmatprep.subr.bf16.mxu0 %v2069_v24  ;;  %1728 = vmatprep.subr.bf16.mxu1 %v2711_v5 }
 0x42a   :  { %v936_v14 = vpop.f32.mrb[28].mxu0  ;;  %v977_v58 = vpop.f32.mrb[20].mxu1 }
 0x42b   :  { %v937_v19 = vadd.f32 %v936_v14, %v2342_v6  ;;  %v938_v61 = vpop.f32.mrb[29].mxu0  ;;  %v1706_v62 = vpop.f32.mrb[21].mxu1  ;;  %v978_v23 = vadd.f32 %v977_v58, %v2350_v60 }
 0x42c   :  { %v939_v35 = vadd.f32 %v938_v61, %v2344_v10  ;;  %v940_v3 = vpop.f32.mrb[30].mxu0  ;;  %v980_v54 = vpop.f32.mrb[22].mxu1 }
 0x42d   :  { %v983_v8 = vadd.f32 %v937_v19, %v2298_v12  ;;  %v941_v17 = vpop.f32.mrb[31].mxu0  ;;  %v1707_v11 = vpop.f32.mrb[23].mxu1 }
 0x42e   :  { %v990_v21 = vadd.f32 %v939_v35, %v2303_v16 }
 0x42f   :  { %v1510_v31 = vmul.f32 -1.442695, %v983_v8 }
 0x430   :  { %v1511_v63 = vmul.f32 -1.442695, %v990_v21 }
 0x431   :  { %1889 = vpow2.f32 %v1510_v31 }
 0x432   :  { %1891 = vpow2.f32 %v1511_v63 }
 0x43b   :  { %v1890_v13 = vpop.eup %1889 }
 0x43c   :  { %v987_v55 = vadd.f32 1.0, %v1890_v13  ;;  %v1892_v0 = vpop.eup %1891 }
 0x43d   :  { %v994_v28 = vadd.f32 1.0, %v1892_v0 }
 0x43e   :  { %1893 = vrcp.f32 %v987_v55 }
 0x43f   :  { %1895 = vrcp.f32 %v994_v28 }
 0x448   :  { %v1894_v4 = vpop.eup %1893 }
 0x449   :  { %v997_v7 = vmul.f32 %v1894_v4, %v978_v23  ;;  %v1896_v43 = vpop.eup %1895 }
 0x44a   :  { %v1000_v56 = vsub.f32 1.0, %v1896_v43  ;;  %v1002_v59 = vmul.f32 %v1896_v43, %v2446_v57  ;;  %v2545_v43 = vld [vmem:[%s2693_s2] ss:$12 sps:$4 sm:$0xff]  }
 0x44b   :  { %v998_v12 = vadd.f32 %v997_v7, %v2306_v18 }
 0x44d   :  { %1897 = vtanh.f32 %v998_v12 }
 0x457   :  { %v1898_v16 = vpop.eup %1897 }
 0x458   :  { %v1001_v9 = vmul.f32 %v1898_v16, %v1000_v56 }
 0x45a   :  { %v2492_v20 = vadd.f32 %v1002_v59, %v1001_v9  ;;  %v2714_v9 = vld [vmem:[#allocation6_spill] sm:$0xff] }
 0x45c   :  { %v1004_v1 = vpack.c.bf16 %v2492_v20, %v2492_v20 }
 0x45e   :  { %1044 = vmatmul.mubr.bf16.vlgmr.msra.gmra.mrb[32].mxu0 %v1004_v1  ;;  %1725 = vmatmul.mubr.bf16.vlgmr.msra.gmra.mrb[24].mxu1 %v1004_v1 }
 0x45f   :  { %1121 = vmatpush1.bf16.msra.mxu0 %v2077_v26  ;;  %1729 = vmatpush3.bf16.msra.mxu1 %v2119_v34 }
 0x460   :  { %1122 = vmatprep.subr.bf16.mxu0 %v2083_v27  ;;  %1730 = vmatprep.subr.bf16.mxu1 %v2711_v5 }
 0x461   :  { %1152 = vmatprep.mubr.bf16.mxu0 %v2712_v15  ;;  %1744 = vmatprep.mubr.msk.bf16.mxu1 %vm1965_vm0, %v2711_v5 }
 0x463   :  { %1123 = vmatpush1.bf16.msra.mxu0 %v2092_v29  ;;  %1731 = vmatpush3.bf16.msra.mxu1 %v2142_v39 }
 0x464   :  { %1124 = vmatprep.subr.bf16.mxu0 %v2099_v30  ;;  %1732 = vmatprep.subr.bf16.mxu1 %v2711_v5 }
 0x467   :  { %1125 = vmatpush1.bf16.msra.mxu0 %v2108_v32  ;;  %1733 = vmatpush3.bf16.msra.mxu1 %v2161_v42 }
 0x468   :  { %1126 = vmatprep.subr.bf16.mxu0 %v2114_v33  ;;  %1734 = vmatprep.subr.bf16.mxu1 %v2711_v5 }
 0x46b   :  { %1127 = vmatpush1.bf16.msra.mxu0 %v2126_v36  ;;  %1735 = vmatpush3.bf16.msra.mxu1 %v2184_v46 }
 0x46c   :  { %1128 = vmatprep.subr.bf16.mxu0 %v2136_v38  ;;  %1736 = vmatprep.subr.bf16.mxu1 %v2711_v5 }
 0x46f   :  { %1129 = vmatpush1.bf16.msra.mxu0 %v2149_v40  ;;  %1737 = vmatpush3.bf16.msra.mxu1 %v2205_v49 }
 0x470   :  { %1130 = vmatprep.subr.bf16.mxu0 %v2155_v41  ;;  %1738 = vmatprep.subr.bf16.mxu1 %v2711_v5 }
 0x473   :  { %1131 = vmatpush1.bf16.msra.mxu0 %v2171_v44  ;;  %1739 = vmatpush3.bf16.msra.mxu1 %v2220_v51 }
 0x474   :  { %1132 = vmatprep.subr.bf16.mxu0 %v2178_v45  ;;  %1740 = vmatprep.subr.bf16.mxu1 %v2711_v5 }
 0x477   :  { %1133 = vmatpush1.bf16.msra.mxu0 %v2193_v47  ;;  %1741 = vmatpush3.bf16.msra.mxu1 %v2229_v52 }
 0x478   :  { %1134 = vmatprep.subr.bf16.mxu0 %v2199_v48  ;;  %1742 = vmatprep.subr.bf16.mxu1 %v2711_v5 }
 0x47b   :  { %1135 = vmatpush1.bf16.msra.mxu0 %v2212_v50  ;;  %1743 = vmatpush3.bf16.msra.mxu1 %v2240_v53 }
 0x47c   :  { %1229 = vmatprep.subr.bf16.mxu0 %v2069_v24  ;;  %1748 = vmatprep.subr.bf16.mxu1 %v2711_v5 }
 0x531   :  { %v1045_v26 = vpop.f32.mrb[32].mxu0  ;;  %v1086_v27 = vpop.f32.mrb[24].mxu1 }
 0x532   :  { %v1046_v18 = vadd.f32 %v1045_v26, %v2342_v6  ;;  %v1047_v57 = vpop.f32.mrb[33].mxu0  ;;  %v1726_v14 = vpop.f32.mrb[25].mxu1  ;;  %v1087_v63 = vadd.f32 %v1086_v27, %v2350_v60 }
 0x533   :  { %v1048_v58 = vadd.f32 %v1047_v57, %v2344_v10  ;;  %v1049_v19 = vpop.f32.mrb[34].mxu0  ;;  %v1089_v61 = vpop.f32.mrb[26].mxu1  ;;  %v1942_v14 = vld [vmem:[%s2693_s2 + $0x8] ss:$12 sps:$4 sm:$0xff]  }
 0x534   :  { %v1092_v62 = vadd.f32 %v1046_v18, %v2311_v22  ;;  %v1050_v35 = vpop.f32.mrb[35].mxu0  ;;  %v1727_v3 = vpop.f32.mrb[27].mxu1  ;;  %v1944_v19 = vld [vmem:[%s2693_s2 + $0x20] ss:$12 sps:$4 sm:$0xff]  }
 0x535   :  { %v1099_v54 = vadd.f32 %v1048_v58, %v2313_v25  ;;  %v1943_v58 = vld [vmem:[%s2693_s2 + $0x18] ss:$12 sps:$4 sm:$0xff]   ;;  %v1945_v61 = vld [vmem:[%s2693_s2 + $0x34] ss:$12 sps:$4 sm:$0xff]  }
 0x536   :  { %v1512_v8 = vmul.f32 -1.442695, %v1092_v62  ;;  %v1947_v62 = vld [vmem:[%s2693_s2 + $0x38] ss:$12 sps:$4 sm:$0xff]   ;;  %v1949_v3 = vld [vmem:[%s2693_s2 + $0x48] ss:$12 sps:$4 sm:$0xff]  }
 0x537   :  { %v1513_v24 = vmul.f32 -1.442695, %v1099_v54  ;;  %v1948_v35 = vld [vmem:[%s2693_s2 + $0x4c] ss:$12 sps:$4 sm:$0xff]   ;;  %v1950_v54 = vld [vmem:[%s2693_s2 + $0x50] ss:$12 sps:$4 sm:$0xff]  }
 0x538   :  { %1899 = vpow2.f32 %v1512_v8  ;;  %v1951_v8 = vld [vmem:[%s2693_s2 + $0x64] ss:$12 sps:$4 sm:$0xff]  }
 0x539   :  { %1901 = vpow2.f32 %v1513_v24  ;;  %v1952_v24 = vld [vmem:[%s2693_s2 + $0x60] ss:$12 sps:$4 sm:$0xff]  }
 0x542   :  { %v1900_v17 = vpop.eup %1899 }
 0x543   :  { %v1096_v11 = vadd.f32 1.0, %v1900_v17  ;;  %v1902_v21 = vpop.eup %1901  ;;  %v1953_v17 = vld [vmem:[%s2693_s2 + $0x68] ss:$12 sps:$4 sm:$0xff]  }
 0x544   :  { %v1103_v31 = vadd.f32 1.0, %v1902_v21  ;;  %v1955_v21 = vld [vmem:[%s2693_s2 + $0x78] ss:$12 sps:$4 sm:$0xff]  }
 0x545   :  { %1903 = vrcp.f32 %v1096_v11  ;;  %v1954_v11 = vld [vmem:[%s2693_s2 + $0x7c] ss:$12 sps:$4 sm:$0xff]  }
 0x546   :  { %1905 = vrcp.f32 %v1103_v31  ;;  %v1956_v31 = vld [vmem:[%s2693_s2 + $0x80] ss:$12 sps:$4 sm:$0xff]  }
 0x54f   :  { %v1904_v13 = vpop.eup %1903 }
 0x550   :  { %v1106_v55 = vmul.f32 %v1904_v13, %v1087_v63  ;;  %v1906_v0 = vpop.eup %1905  ;;  %v1957_v63 = vld [vmem:[%s2693_s2 + $0x94] ss:$12 sps:$4 sm:$0xff]   ;;  %v1958_v13 = vld [vmem:[%s2693_s2 + $0x90] ss:$12 sps:$4 sm:$0xff]  }
 0x551   :  { %v1109_v28 = vsub.f32 1.0, %v1906_v0  ;;  %v1111_v4 = vmul.f32 %v1906_v0, %v2492_v20  ;;  %v1961_v0 = vld [vmem:[%s2693_s2 + $0xa8] ss:$12 sps:$4 sm:$0xff]  }
 0x552   :  { %v1107_v22 = vadd.f32 %v1106_v55, %v2323_v2  ;;  %v2552_v2 = vld [vmem:[%s2693_s2 + $0x1c] ss:$12 sps:$4 sm:$0xff]   ;;  %v1959_v55 = vld [vmem:[%s2693_s2 + $0x98] ss:$12 sps:$4 sm:$0xff]  }
 0x554   :  { %1907 = vtanh.f32 %v1107_v22  ;;  %v1960_v22 = vld [vmem:[%s2693_s2 + $0xac] ss:$12 sps:$4 sm:$0xff]  }
 0x55e   :  { %v1908_v25 = vpop.eup %1907 }
 0x55f   :  { %v1110_v23 = vmul.f32 %v1908_v25, %v1109_v28  ;;  %v1962_v28 = vld [vmem:[%s2693_s2 + $0xb0] ss:$12 sps:$4 sm:$0xff]  }
 0x561   :  { %v2538_v7 = vadd.f32 %v1111_v4, %v1110_v23 }
 0x563   :  { %v1113_v12 = vpack.c.bf16 %v2538_v7, %v2538_v7 }
 0x565   :  { %1153 = vmatmul.mubr.bf16.vlgmr.msra.gmra.mrb[36].mxu0 %v1113_v12  ;;  %1745 = vmatmul.mubr.bf16.vlgmr.msra.gmra.mrb[28].mxu1 %v1113_v12 }
 0x566   :  { %1230 = vmatpush1.bf16.msra.mxu0 %v2545_v43  ;;  %1749 = vmatpush3.bf16.msra.mxu1 %v2119_v34 }
 0x567   :  { %1231 = vmatprep.subr.bf16.mxu0 %v2552_v2  ;;  %1750 = vmatprep.subr.bf16.mxu1 %v2711_v5 }
 0x568   :  { %1261 = vmatprep.mubr.bf16.mxu0 %v2712_v15  ;;  %1764 = vmatprep.mubr.msk.bf16.mxu1 %vm1965_vm0, %v2711_v5 }
 0x56a   :  { %1232 = vmatpush1.bf16.msra.mxu0 %v2092_v29  ;;  %1751 = vmatpush3.bf16.msra.mxu1 %v2142_v39  ;;  %v1941_v29 = vld [vmem:[%s2693_s2 + $0x4] ss:$12 sps:$4 sm:$0xff]  }
 0x56b   :  { %1233 = vmatprep.subr.bf16.mxu0 %v2099_v30  ;;  %1752 = vmatprep.subr.bf16.mxu1 %v2711_v5 }
 0x56e   :  { %1234 = vmatpush1.bf16.msra.mxu0 %v2108_v32  ;;  %1753 = vmatpush3.bf16.msra.mxu1 %v2161_v42 }
 0x56f   :  { %1235 = vmatprep.subr.bf16.mxu0 %v2114_v33  ;;  %1754 = vmatprep.subr.bf16.mxu1 %v2711_v5 }
 0x572   :  { %1236 = vmatpush1.bf16.msra.mxu0 %v2126_v36  ;;  %1755 = vmatpush3.bf16.msra.mxu1 %v2184_v46 }
 0x573   :  { %1237 = vmatprep.subr.bf16.mxu0 %v2136_v38  ;;  %1756 = vmatprep.subr.bf16.mxu1 %v2711_v5 }
 0x576   :  { %1238 = vmatpush1.bf16.msra.mxu0 %v2149_v40  ;;  %1757 = vmatpush3.bf16.msra.mxu1 %v2205_v49 }
 0x577   :  { %1239 = vmatprep.subr.bf16.mxu0 %v2155_v41  ;;  %1758 = vmatprep.subr.bf16.mxu1 %v2711_v5 }
 0x57a   :  { %1240 = vmatpush1.bf16.msra.mxu0 %v2171_v44  ;;  %1759 = vmatpush3.bf16.msra.mxu1 %v2220_v51 }
 0x57b   :  { %1241 = vmatprep.subr.bf16.mxu0 %v2178_v45  ;;  %1760 = vmatprep.subr.bf16.mxu1 %v2711_v5  ;;  %v2713_v45 = vld [vmem:[#allocation4_spill] sm:$0xff] }
 0x57e   :  { %1242 = vmatpush1.bf16.msra.mxu0 %v2193_v47  ;;  %1761 = vmatpush3.bf16.msra.mxu1 %v2229_v52 }
 0x57f   :  { %1243 = vmatprep.subr.bf16.mxu0 %v2199_v48  ;;  %1762 = vmatprep.subr.bf16.mxu1 %v2711_v5 }
 0x582   :  { %1244 = vmatpush1.bf16.msra.mxu0 %v2212_v50  ;;  %1763 = vmatpush3.bf16.msra.mxu1 %v2240_v53 }
 0x583   :  { %1338 = vmatprep.subr.bf16.mxu0 %v1941_v29  ;;  %1768 = vmatprep.subr.bf16.mxu1 %v2711_v5  ;;  %v2715_v29 = vld [vmem:[#allocation7_spill] sm:$0xff] }
 0x638   :  { %v1154_v30 = vpop.f32.mrb[36].mxu0  ;;  %v1195_v32 = vpop.f32.mrb[28].mxu1 }
 0x639   :  { %v1155_v33 = vadd.f32 %v1154_v30, %v2342_v6  ;;  %v1156_v34 = vpop.f32.mrb[37].mxu0  ;;  %v1746_v36 = vpop.f32.mrb[29].mxu1  ;;  %v1196_v53 = vadd.f32 %v1195_v32, %v2350_v60 }
 0x63a   :  { %v1157_v38 = vadd.f32 %v1156_v34, %v2344_v10  ;;  %v1158_v39 = vpop.f32.mrb[38].mxu0  ;;  %v1198_v40 = vpop.f32.mrb[30].mxu1  ;;  %v2716_v34 = vld [vmem:[#allocation8_spill] sm:$0xff] }
 0x63b   :  { %v1201_v41 = vadd.f32 %v1155_v33, %v2315_v37  ;;  %v1159_v42 = vpop.f32.mrb[39].mxu0  ;;  %v1747_v44 = vpop.f32.mrb[31].mxu1 }
 0x63c   :  { %v1208_v46 = vadd.f32 %v1157_v38, %v2713_v45 }
 0x63d   :  { %v1514_v47 = vmul.f32 -1.442695, %v1201_v41 }
 0x63e   :  { %v1515_v48 = vmul.f32 -1.442695, %v1208_v46 }
 0x63f   :  { %1909 = vpow2.f32 %v1514_v47 }
 0x640   :  { %1911 = vpow2.f32 %v1515_v48  ;;  %v2717_v48 = vld [vmem:[#allocation3_spill] sm:$0xff] }
 0x649   :  { %v1910_v49 = vpop.eup %1909 }
 0x64a   :  { %v1205_v50 = vadd.f32 1.0, %v1910_v49  ;;  %v1912_v51 = vpop.eup %1911 }
 0x64b   :  { %v1212_v52 = vadd.f32 1.0, %v1912_v51 }
 0x64c   :  { %1913 = vrcp.f32 %v1205_v50 }
 0x64d   :  { %1915 = vrcp.f32 %v1212_v52 }
 0x656   :  { %v1914_v56 = vpop.eup %1913 }
 0x657   :  { %v1215_v16 = vmul.f32 %v1914_v56, %v1196_v53  ;;  %v1916_v59 = vpop.eup %1915 }
 0x658   :  { %v1218_v20 = vsub.f32 1.0, %v1916_v59  ;;  %v1220_v27 = vmul.f32 %v1916_v59, %v2538_v7 }
 0x659   :  { %v1216_v37 = vadd.f32 %v1215_v16, %v2714_v9 }
 0x65b   :  { %1917 = vtanh.f32 %v1216_v37 }
 0x665   :  { %v1918_v1 = vpop.eup %1917 }
 0x666   :  { %v1219_v26 = vmul.f32 %v1918_v1, %v1218_v20 }
 0x668   :  { %v2596_v18 = vadd.f32 %v1220_v27, %v1219_v26 }
 0x66a   :  { %v1222_v57 = vpack.c.bf16 %v2596_v18, %v2596_v18 }
 0x66c   :  { %1262 = vmatmul.mubr.bf16.vlgmr.msra.gmra.mrb[40].mxu0 %v1222_v57  ;;  %1765 = vmatmul.mubr.bf16.vlgmr.msra.gmra.mrb[32].mxu1 %v1222_v57 }
 0x66d   :  { %1339 = vmatpush1.bf16.msra.mxu0 %v2545_v43  ;;  %1769 = vmatpush3.bf16.msra.mxu1 %v1942_v14 }
 0x66e   :  { %1340 = vmatprep.subr.bf16.mxu0 %v2552_v2  ;;  %1770 = vmatprep.subr.bf16.mxu1 %v2711_v5 }
 0x66f   :  { %1370 = vmatprep.mubr.bf16.mxu0 %v2712_v15  ;;  %1784 = vmatprep.mubr.msk.bf16.mxu1 %vm1965_vm0, %v2711_v5  ;;  %v1946_v15 = vld [vmem:[%s2693_s2 + $0x30] ss:$12 sps:$4 sm:$0xff]  }
 0x671   :  { %1341 = vmatpush1.bf16.msra.mxu0 %v1943_v58  ;;  %1771 = vmatpush3.bf16.msra.mxu1 %v1944_v19  ;;  %v2718_v58 = vld [vmem:[#allocation9_spill] sm:$0xff] }
 0x672   :  { %1342 = vmatprep.subr.bf16.mxu0 %v1945_v61  ;;  %1772 = vmatprep.subr.bf16.mxu1 %v2711_v5 }
 0x675   :  { %1343 = vmatpush1.bf16.msra.mxu0 %v1946_v15  ;;  %1773 = vmatpush3.bf16.msra.mxu1 %v1947_v62  ;;  %v2719_v62 = vld [vmem:[#allocation10_spill] sm:$0xff] }
 0x676   :  { %1344 = vmatprep.subr.bf16.mxu0 %v1948_v35  ;;  %1774 = vmatprep.subr.bf16.mxu1 %v2711_v5 }
 0x679   :  { %1345 = vmatpush1.bf16.msra.mxu0 %v1949_v3  ;;  %1775 = vmatpush3.bf16.msra.mxu1 %v1950_v54 }
 0x67a   :  { %1346 = vmatprep.subr.bf16.mxu0 %v1951_v8  ;;  %1776 = vmatprep.subr.bf16.mxu1 %v2711_v5 }
 0x67d   :  { %1347 = vmatpush1.bf16.msra.mxu0 %v1952_v24  ;;  %1777 = vmatpush3.bf16.msra.mxu1 %v1953_v17 }
 0x67e   :  { %1348 = vmatprep.subr.bf16.mxu0 %v1954_v11  ;;  %1778 = vmatprep.subr.bf16.mxu1 %v2711_v5 }
 0x681   :  { %1349 = vmatpush1.bf16.msra.mxu0 %v1955_v21  ;;  %1779 = vmatpush3.bf16.msra.mxu1 %v1956_v31  ;;  %v2720_v21 = vld [vmem:[#allocation5_spill] sm:$0xff] }
 0x682   :  { %1350 = vmatprep.subr.bf16.mxu0 %v1957_v63  ;;  %1780 = vmatprep.subr.bf16.mxu1 %v2711_v5 }
 0x685   :  { %1351 = vmatpush1.bf16.msra.mxu0 %v1958_v13  ;;  %1781 = vmatpush3.bf16.msra.mxu1 %v1959_v55 }
 0x686   :  { %1352 = vmatprep.subr.bf16.mxu0 %v1960_v22  ;;  %1782 = vmatprep.subr.bf16.mxu1 %v2711_v5 }
 0x689   :  { %1353 = vmatpush1.bf16.msra.mxu0 %v1961_v0  ;;  %1783 = vmatpush3.bf16.msra.mxu1 %v1962_v28 }
 0x73f   :  { %v1263_v25 = vpop.f32.mrb[40].mxu0  ;;  %v1304_v23 = vpop.f32.mrb[32].mxu1 }
 0x740   :  { %v1264_v4 = vadd.f32 %v1263_v25, %v2342_v6  ;;  %v1265_v7 = vpop.f32.mrb[41].mxu0  ;;  %v1766_v12 = vpop.f32.mrb[33].mxu1  ;;  %v1305_v45 = vadd.f32 %v1304_v23, %v2350_v60 }
 0x741   :  { %v1266_v43 = vadd.f32 %v1265_v7, %v2344_v10  ;;  %v1267_v2 = vpop.f32.mrb[42].mxu0  ;;  %v1307_v5 = vpop.f32.mrb[34].mxu1 }
 0x742   :  { %v1310_v30 = vadd.f32 %v1264_v4, %v2715_v29  ;;  %v1268_v32 = vpop.f32.mrb[43].mxu0  ;;  %v1767_v33 = vpop.f32.mrb[35].mxu1 }
 0x743   :  { %v1317_v36 = vadd.f32 %v1266_v43, %v2716_v34 }
 0x744   :  { %v1516_v38 = vmul.f32 -1.442695, %v1310_v30 }
 0x745   :  { %v1517_v39 = vmul.f32 -1.442695, %v1317_v36 }
 0x746   :  { %1919 = vpow2.f32 %v1516_v38 }
 0x747   :  { %1921 = vpow2.f32 %v1517_v39 }
 0x750   :  { %v1920_v40 = vpop.eup %1919 }
 0x751   :  { %v1314_v41 = vadd.f32 1.0, %v1920_v40  ;;  %v1922_v42 = vpop.eup %1921 }
 0x752   :  { %v1321_v44 = vadd.f32 1.0, %v1922_v42 }
 0x753   :  { %1923 = vrcp.f32 %v1314_v41 }
 0x754   :  { %1925 = vrcp.f32 %v1321_v44 }
 0x75d   :  { %v1924_v46 = vpop.eup %1923 }
 0x75e   :  { %v1324_v47 = vmul.f32 %v1924_v46, %v1305_v45  ;;  %v1926_v50 = vpop.eup %1925 }
 0x75f   :  { %v1327_v51 = vsub.f32 1.0, %v1926_v50  ;;  %v1329_v56 = vmul.f32 %v1926_v50, %v2596_v18 }
 0x760   :  { %v1325_v49 = vadd.f32 %v1324_v47, %v2717_v48 }
 0x762   :  { %1927 = vtanh.f32 %v1325_v49 }
 0x76c   :  { %v1928_v52 = vpop.eup %1927 }
 0x76d   :  { %v1328_v53 = vmul.f32 %v1928_v52, %v1327_v51 }
 0x76f   :  { %v1330_v16 = vadd.f32 %v1329_v56, %v1328_v53 }
 0x771   :  { %v1331_v9 = vpack.c.bf16 %v1330_v16, %v1330_v16 }
 0x773   :  { %1371 = vmatmul.mubr.bf16.vlgmr.msra.gmra.mrb[44].mxu0 %v1331_v9  ;;  %1785 = vmatmul.mubr.bf16.vlgmr.msra.gmra.mrb[36].mxu1 %v1331_v9 }
 0x846   :  { %v1372_v37 = vpop.f32.mrb[44].mxu0  ;;  %v1413_v59 = vpop.f32.mrb[36].mxu1 }
 0x847   :  { %v1373_v20 = vadd.f32 %v1372_v37, %v2342_v6  ;;  %v1374_v1 = vpop.f32.mrb[45].mxu0  ;;  %v1786_v26 = vpop.f32.mrb[37].mxu1  ;;  %v1414_v17 = vadd.f32 %v1413_v59, %v2350_v60 }
 0x848   :  { %v1375_v27 = vadd.f32 %v1374_v1, %v2344_v10  ;;  %v1376_v57 = vpop.f32.mrb[46].mxu0  ;;  %v1416_v14 = vpop.f32.mrb[38].mxu1 }
 0x849   :  { %v1419_v19 = vadd.f32 %v1373_v20, %v2718_v58  ;;  %v1377_v61 = vpop.f32.mrb[47].mxu0  ;;  %v1787_v15 = vpop.f32.mrb[39].mxu1 }
 0x84a   :  { %v1426_v18 = vadd.f32 %v1375_v27, %v2719_v62 }
 0x84b   :  { %v1518_v35 = vmul.f32 -1.442695, %v1419_v19 }
 0x84c   :  { %v1519_v3 = vmul.f32 -1.442695, %v1426_v18 }
 0x84d   :  { %1929 = vpow2.f32 %v1518_v35 }
 0x84e   :  { %1931 = vpow2.f32 %v1519_v3 }
 0x857   :  { %v1930_v54 = vpop.eup %1929 }
 0x858   :  { %v1423_v8 = vadd.f32 1.0, %v1930_v54  ;;  %v1932_v6 = vpop.eup %1931 }
 0x859   :  { %v1430_v24 = vadd.f32 1.0, %v1932_v6 }
 0x85a   :  { %1933 = vrcp.f32 %v1423_v8 }
 0x85b   :  { %1935 = vrcp.f32 %v1430_v24 }
 0x864   :  { %v1934_v10 = vpop.eup %1933 }
 0x865   :  { %v1433_v11 = vmul.f32 %v1934_v10, %v1414_v17  ;;  %v1936_v63 = vpop.eup %1935 }
 0x866   :  { %v1436_v13 = vsub.f32 1.0, %v1936_v63  ;;  %v1438_v0 = vmul.f32 %v1936_v63, %v1330_v16 }
 0x867   :  { %v1434_v31 = vadd.f32 %v1433_v11, %v2720_v21 }
 0x869   :  { %1937 = vtanh.f32 %v1434_v31 }
 0x873   :  { %v1938_v55 = vpop.eup %1937 }
 0x874   :  { %v1437_v22 = vmul.f32 %v1938_v55, %v1436_v13 }
 0x876   :  { %v1439_v28 = vadd.f32 %v1438_v0, %v1437_v22 }
 0x878   :  { %1440 = vst [vmem:[%s2696_s5] sm:$0xff] %v1439_v28 }

// kernel: seq2seq_forward.4
= control target key start
LH: loop header
LB: loop body
LE: loop exit
PB: predicated region body
PF: predicated region fallthrough
CT: control target
= control target key end

     0   :  { %v4448_v1 = vmov 0   ;;  %v4446_v51 = vmov 0.0   ;;  %vm3538_vm0 = vmmov 0   ;;  %s4439_s2 = inlined_call_operand.vmem [shape: bf16[128,384], index: 2, kind: input, shape index: {}]   ;;  %s4440_s0 = inlined_call_operand.vmem [shape: bf16[64,128], index: 0, kind: input, shape index: {}]   ;;  %s4441_s3 = inlined_call_operand.vmem [shape: bf16[128,384], index: 3, kind: input, shape index: {}]   ;;  %s4442_s1 = inlined_call_operand.vmem [shape: f32[8,128], index: 1, kind: input, shape index: {}]   ;;  %s4443_s4 = inlined_call_operand.vmem [shape: f32[1,384], index: 4, kind: input, shape index: {}]   ;;  %s4444_s5 = inlined_call_operand.vmem [shape: f32[1,384], index: 5, kind: input, shape index: {}]   ;;  %s4445_s6 = inlined_call_operand.vmem [shape: bf16[64,128], index: 6, kind: output, shape index: {}]  }
   0x1   :  { %v3312_v0 = vld [vmem:[%s4439_s2 + $0x4] ss:$12 sps:$4 sm:$0xff]   ;;  %273 = vmatprep.mubr.bf16.mxu0 %v4448_v1  ;;  %v3314_v2 = vld [vmem:[%s4439_s2] ss:$12 sps:$4 sm:$0xff]   ;;  %v3315_v3 = vld [vmem:[%s4439_s2 + $0x1c] ss:$12 sps:$4 sm:$0xff]  }
   0x2   :  { %241 = vmatprep.subr.bf16.mxu0 %v3312_v0  ;;  %v3317_v4 = vld [vmem:[%s4439_s2 + $0x18] ss:$12 sps:$4 sm:$0xff]   ;;  %v3318_v5 = vld [vmem:[%s4439_s2 + $0x34] ss:$12 sps:$4 sm:$0xff]   ;;  %v3320_v6 = vld [vmem:[%s4439_s2 + $0x30] ss:$12 sps:$4 sm:$0xff]  }
   0x3   :  { %242 = vmatpush1.bf16.msra.mxu0 %v3314_v2  ;;  %v3321_v7 = vld [vmem:[%s4439_s2 + $0x4c] ss:$12 sps:$4 sm:$0xff]   ;;  %v3333_v8 = vld [vmem:[%s4439_s2 + $0x8] ss:$12 sps:$4 sm:$0xff]   ;;  %v3324_v10 = vld [vmem:[%s4439_s2 + $0x64] ss:$12 sps:$4 sm:$0xff]  }
   0x4   :  { %243 = vmatprep.subr.bf16.mxu0 %v3315_v3  ;;  %v3323_v9 = vld [vmem:[%s4439_s2 + $0x48] ss:$12 sps:$4 sm:$0xff]   ;;  %3125 = vmatprep.subr.bf16.mxu1 %v3333_v8  ;;  %v3337_v11 = vld [vmem:[%s4439_s2 + $0x20] ss:$12 sps:$4 sm:$0xff]   ;;  %v25_v13 = vld [vmem:[%s4440_s0 + $0x4] sm:$0xf] }
   0x5   :  { %v24_v12 = vld [vmem:[%s4440_s0] sm:$0xf]  ;;  %3126 = vmatpush3.bf16.msra.mxu1 %v3333_v8  ;;  %v33_v16 = vmax.bf16 %v4448_v1, %v25_v13  ;;  %v3341_v17 = vld [vmem:[%s4439_s2 + $0x38] ss:$12 sps:$4 sm:$0xff]   ;;  %v3327_v18 = vld [vmem:[%s4439_s2 + $0x7c] ss:$12 sps:$4 sm:$0xff]  }
   0x6   :  { %v32_v14 = vmax.bf16 %v4448_v1, %v24_v12  ;;  %v3326_v15 = vld [vmem:[%s4439_s2 + $0x60] ss:$12 sps:$4 sm:$0xff]   ;;  %3127 = vmatprep.subr.bf16.mxu1 %v3337_v11  ;;  %v3345_v20 = vld [vmem:[%s4439_s2 + $0x50] ss:$12 sps:$4 sm:$0xff]   ;;  %v3329_v21 = vld [vmem:[%s4439_s2 + $0x78] ss:$12 sps:$4 sm:$0xff]  }
   0x7   :  { %244 = vmatpush1.bf16.msra.mxu0 %v3317_v4  ;;  %v3330_v22 = vld [vmem:[%s4439_s2 + $0x94] ss:$12 sps:$4 sm:$0xff]   ;;  %v3332_v24 = vld [vmem:[%s4439_s2 + $0x90] ss:$12 sps:$4 sm:$0xff]   ;;  %v3334_v25 = vld [vmem:[%s4439_s2 + $0xac] ss:$12 sps:$4 sm:$0xff]  }
   0x8   :  { %245 = vmatprep.subr.bf16.mxu0 %v3318_v5  ;;  %v2766_v19 = vcombine.low %v32_v14, %v33_v16  ;;  %v3349_v23 = vld [vmem:[%s4439_s2 + $0x68] ss:$12 sps:$4 sm:$0xff]   ;;  %v3353_v26 = vld [vmem:[%s4439_s2 + $0x80] ss:$12 sps:$4 sm:$0xff]   ;;  %v3652_v28 = vld [vmem:[%s4441_s3 + $0x4] ss:$12 sps:$4 sm:$0xff]  }
   0x9   :  { %3128 = vmatpush3.bf16.msra.mxu1 %v3337_v11  ;;  %v3336_v27 = vld [vmem:[%s4439_s2 + $0xa8] ss:$12 sps:$4 sm:$0xff]   ;;  %v3657_v29 = vld [vmem:[%s4441_s3] ss:$12 sps:$4 sm:$0xff]   ;;  %v3357_v31 = vld [vmem:[%s4439_s2 + $0x98] ss:$12 sps:$4 sm:$0xff]  }
   0xa   :  { %3129 = vmatprep.subr.bf16.mxu1 %v3341_v17  ;;  %3141 = vmatprep.mubr.bf16.mxu1 %v2766_v19  ;;  %v26_v30 = vld [vmem:[%s4440_s0 + $0x8] sm:$0xf]  ;;  %v27_v32 = vld [vmem:[%s4440_s0 + $0xc] sm:$0xf]  ;;  %v3677_v34 = vld [vmem:[%s4441_s3 + $0x18] ss:$12 sps:$4 sm:$0xff]  }
   0xb   :  { %246 = vmatpush1.bf16.msra.mxu0 %v3320_v6  ;;  %v3672_v33 = vld [vmem:[%s4441_s3 + $0x1c] ss:$12 sps:$4 sm:$0xff]   ;;  %v34_v35 = vmax.bf16 %v4448_v1, %v26_v30  ;;  %v35_v36 = vmax.bf16 %v4448_v1, %v27_v32  ;;  %v3684_v37 = vld [vmem:[%s4441_s3 + $0x34] ss:$12 sps:$4 sm:$0xff]   ;;  %v28_v39 = vld [vmem:[%s4440_s0 + $0x10] sm:$0xf] }
   0xc   :  { %247 = vmatprep.subr.bf16.mxu0 %v3321_v7  ;;  %v3361_v38 = vld [vmem:[%s4439_s2 + $0xb0] ss:$12 sps:$4 sm:$0xff]   ;;  %v29_v40 = vld [vmem:[%s4440_s0 + $0x14] sm:$0xf]  ;;  %v36_v43 = vmax.bf16 %v4448_v1, %v28_v39  ;;  %v3710_v45 = vld [vmem:[%s4441_s3 + $0x4c] ss:$12 sps:$4 sm:$0xff]  }
   0xd   :  { %3130 = vmatpush3.bf16.msra.mxu1 %v3341_v17  ;;  %v2767_v41 = vcombine.low %v34_v35, %v35_v36  ;;  %v3702_v42 = vld [vmem:[%s4441_s3 + $0x30] ss:$12 sps:$4 sm:$0xff]   ;;  %v37_v44 = vmax.bf16 %v4448_v1, %v29_v40  ;;  %v3365_v46 = vld [vmem:[%s4441_s3 + $0x8] ss:$12 sps:$4 sm:$0xff]   ;;  %v30_v48 = vld [vmem:[%s4440_s0 + $0x18] sm:$0xf]  ;;  %v74_v17 = vlaneseq }
   0xe   :  { %3131 = vmatprep.subr.bf16.mxu1 %v3345_v20  ;;  %v3718_v47 = vld [vmem:[%s4441_s3 + $0x48] ss:$12 sps:$4 sm:$0xff]   ;;  %v31_v49 = vld [vmem:[%s4440_s0 + $0x1c] sm:$0xf]  ;;  %v3729_v50 = vld [vmem:[%s4441_s3 + $0x64] ss:$12 sps:$4 sm:$0xff]   ;;  %v38_v56 = vmax.bf16 %v4448_v1, %v30_v48 }
   0xf   :  { %248 = vmatpush1.bf16.msra.mxu0 %v3323_v9  ;;  %v2768_v52 = vcombine.low %v36_v43, %v37_v44  ;;  %v3369_v53 = vld [vmem:[%s4441_s3 + $0x20] ss:$12 sps:$4 sm:$0xff]   ;;  %v3746_v55 = vld [vmem:[%s4441_s3 + $0x7c] ss:$12 sps:$4 sm:$0xff]   ;;  %v39_v57 = vmax.bf16 %v4448_v1, %v31_v49  ;;  %v3370_v58 = vld [vmem:[%s4441_s3 + $0x38] ss:$12 sps:$4 sm:$0xff]  }
  0x10   :  { %249 = vmatprep.subr.bf16.mxu0 %v3324_v10  ;;  %v3741_v54 = vld [vmem:[%s4441_s3 + $0x60] ss:$12 sps:$4 sm:$0xff]   ;;  %v3759_v59 = vld [vmem:[%s4441_s3 + $0x78] ss:$12 sps:$4 sm:$0xff]   ;;  %v3371_v62 = vld [vmem:[%s4441_s3 + $0x50] ss:$12 sps:$4 sm:$0xff]  }
  0x11   :  { %3132 = vmatpush3.bf16.msra.mxu1 %v3345_v20  ;;  %v2769_v60 = vcombine.low %v38_v56, %v39_v57  ;;  %v3764_v61 = vld [vmem:[%s4441_s3 + $0x94] ss:$12 sps:$4 sm:$0xff]   ;;  %v3776_v63 = vld [vmem:[%s4441_s3 + $0x90] ss:$12 sps:$4 sm:$0xff]   ;;  %v3783_v0 = vld [vmem:[%s4441_s3 + $0xac] ss:$12 sps:$4 sm:$0xff]  }
  0x12   :  { %3133 = vmatprep.subr.bf16.mxu1 %v3349_v23  ;;  %v3372_v2 = vld [vmem:[%s4441_s3 + $0x68] ss:$12 sps:$4 sm:$0xff]   ;;  %v3799_v4 = vld [vmem:[%s4442_s1] sm:$0xff]  ;;  %v3375_v8 = vld [vmem:[%s4441_s3 + $0xb0] ss:$12 sps:$4 sm:$0xff]  }
  0x13   :  { %250 = vmatpush1.bf16.msra.mxu0 %v3326_v15  ;;  %v3794_v3 = vld [vmem:[%s4441_s3 + $0xa8] ss:$12 sps:$4 sm:$0xff]   ;;  %v3373_v5 = vld [vmem:[%s4441_s3 + $0x80] ss:$12 sps:$4 sm:$0xff]   ;;  %v404_v6 = vpack.c.bf16 %v3799_v4, %v3799_v4  ;;  %v3374_v7 = vld [vmem:[%s4441_s3 + $0x98] ss:$12 sps:$4 sm:$0xff]  }
  0x14   :  { %251 = vmatprep.subr.bf16.mxu0 %v3327_v18  ;;  %v3376_v9 = vld [vmem:[%s4441_s3 + $0x8] ss:$12 sps:$4 sm:$0xff]   ;;  %v3377_v10 = vld [vmem:[%s4441_s3 + $0x20] ss:$12 sps:$4 sm:$0xff]   ;;  %v3378_v11 = vld [vmem:[%s4441_s3 + $0x38] ss:$12 sps:$4 sm:$0xff]  }
  0x15   :  { %3134 = vmatpush3.bf16.msra.mxu1 %v3349_v23  ;;  %v3379_v12 = vld [vmem:[%s4441_s3 + $0x50] ss:$12 sps:$4 sm:$0xff]   ;;  %v3380_v13 = vld [vmem:[%s4441_s3 + $0x68] ss:$12 sps:$4 sm:$0xff]   ;;  %v3381_v14 = vld [vmem:[%s4441_s3 + $0x80] ss:$12 sps:$4 sm:$0xff]  }
  0x16   :  { %3135 = vmatprep.subr.bf16.mxu1 %v3353_v26  ;;  %v3382_v15 = vld [vmem:[%s4441_s3 + $0x98] ss:$12 sps:$4 sm:$0xff]   ;;  %v3383_v16 = vld [vmem:[%s4441_s3 + $0xb0] ss:$12 sps:$4 sm:$0xff]   ;;  %v75_v18 = vshrl.u32 %v74_v17, 7 }
  0x17   :  { %252 = vmatpush1.bf16.msra.mxu0 %v3329_v21  ;;  %v72_v20 = vld [vmem:[%s4443_s4] sm:$0x7] }
  0x18   :  { %253 = vmatprep.subr.bf16.mxu0 %v3330_v22  ;;  %v3878_v21 = vsub.s32 1, %v75_v18 }
  0x19   :  { %3136 = vmatpush3.bf16.msra.mxu1 %v3353_v26 }
  0x1a   :  { %3137 = vmatprep.subr.bf16.mxu1 %v3357_v31 }
  0x1b   :  { %254 = vmatpush1.bf16.msra.mxu0 %v3332_v24 }
  0x1c   :  { %255 = vmatprep.subr.bf16.mxu0 %v3334_v25  ;;  %v81_v25 = vrot.slane %v72_v20, %v3878_v21 }
  0x1d   :  { %3138 = vmatpush3.bf16.msra.mxu1 %v3357_v31  ;;  %v3884_v31 = vsub.s32 2, %v75_v18 }
  0x1e   :  { %3139 = vmatprep.subr.bf16.mxu1 %v3361_v38 }
  0x1f   :  { %256 = vmatpush1.bf16.msra.mxu0 %v3336_v27  ;;  %v3889_v35 = vrot.slane %v72_v20, %v3884_v31 }
  0x20   :  { %588 = vmatprep.subr.bf16.mxu0 %v3652_v28 }
  0x21   :  { %3140 = vmatpush3.bf16.msra.mxu1 %v3361_v38 }
  0x22   :  { %274 = vmatmul.mubr.bf16.vlgmr.msra.gmra.mrb[0].mxu0 %v2766_v19  ;;  %3149 = vmatprep.subr.bf16.mxu1 %v4446_v51  ;;  %v3873_v19 = vsub.s32 0, %v75_v18 }
  0x23   :  { %589 = vmatpush1.bf16.msra.mxu0 %v3657_v29  ;;  %283 = vmatprep.mubr.bf16.mxu0 %v4448_v1 }
  0x24   :  { %590 = vmatprep.subr.bf16.mxu0 %v3672_v33  ;;  %3142 = vmatmul.mubr.bf16.vlgmr.msra.gmra.mrb[0].mxu1 %v2767_v41  ;;  %v77_v23 = vrot.slane %v72_v20, %v3873_v19 }
  0x25   :  { %3150 = vmatpush3.bf16.msra.mxu1 %v3365_v46  ;;  %3145 = vmatprep.mubr.bf16.mxu1 %v2768_v52 }
  0x26   :  { %3151 = vmatprep.subr.bf16.mxu1 %v4446_v51 }
  0x27   :  { %591 = vmatpush1.bf16.msra.mxu0 %v3677_v34 }
  0x28   :  { %592 = vmatprep.subr.bf16.mxu0 %v3684_v37 }
  0x29   :  { %3152 = vmatpush3.bf16.msra.mxu1 %v3369_v53 }
  0x2a   :  { %284 = vmatmul.mubr.bf16.gmra.mrb[4].mxu0 %v2767_v41  ;;  %3153 = vmatprep.subr.bf16.mxu1 %v4446_v51 }
  0x2b   :  { %593 = vmatpush1.bf16.msra.mxu0 %v3702_v42  ;;  %293 = vmatprep.mubr.bf16.mxu0 %v4448_v1 }
  0x2c   :  { %594 = vmatprep.subr.bf16.mxu0 %v3710_v45  ;;  %3146 = vmatmul.mubr.bf16.gmra.mrb[4].mxu1 %v2769_v60 }
  0x2d   :  { %3154 = vmatpush3.bf16.msra.mxu1 %v3370_v58  ;;  %3165 = vmatprep.mubr.msk.bf16.mxu1 %vm3538_vm0, %v4446_v51 }
  0x2e   :  { %3155 = vmatprep.subr.bf16.mxu1 %v4446_v51 }
  0x2f   :  { %595 = vmatpush1.bf16.msra.mxu0 %v3718_v47 }
  0x30   :  { %596 = vmatprep.subr.bf16.mxu0 %v3729_v50 }
  0x31   :  { %3156 = vmatpush3.bf16.msra.mxu1 %v3371_v62 }
  0x32   :  { %294 = vmatmul.mubr.bf16.gmra.mrb[8].mxu0 %v2768_v52  ;;  %3157 = vmatprep.subr.bf16.mxu1 %v4446_v51 }
  0x33   :  { %597 = vmatpush1.bf16.msra.mxu0 %v3741_v54  ;;  %303 = vmatprep.mubr.bf16.mxu0 %v4448_v1 }
  0x34   :  { %598 = vmatprep.subr.bf16.mxu0 %v3746_v55 }
  0x35   :  { %3158 = vmatpush3.bf16.msra.mxu1 %v3372_v2 }
  0x36   :  { %3159 = vmatprep.subr.bf16.mxu1 %v4446_v51 }
  0x37   :  { %599 = vmatpush1.bf16.msra.mxu0 %v3759_v59 }
  0x38   :  { %600 = vmatprep.subr.bf16.mxu0 %v3764_v61 }
  0x39   :  { %3160 = vmatpush3.bf16.msra.mxu1 %v3373_v5 }
  0x3a   :  { %304 = vmatmul.mubr.bf16.gmra.mrb[12].mxu0 %v2769_v60  ;;  %3161 = vmatprep.subr.bf16.mxu1 %v4446_v51 }
  0x3b   :  { %601 = vmatpush1.bf16.msra.mxu0 %v3776_v63  ;;  %620 = vmatprep.mubr.bf16.mxu0 %v4448_v1 }
  0x3c   :  { %602 = vmatprep.subr.bf16.mxu0 %v3783_v0 }
  0x3d   :  { %3162 = vmatpush3.bf16.msra.mxu1 %v3374_v7 }
  0x3e   :  { %3163 = vmatprep.subr.bf16.mxu1 %v4446_v51 }
  0x3f   :  { %603 = vmatpush1.bf16.msra.mxu0 %v3794_v3 }
  0x40   :  { %875 = vmatprep.subr.bf16.mxu0 %v3652_v28 }
  0x41   :  { %3164 = vmatpush3.bf16.msra.mxu1 %v3375_v8 }
  0x42   :  { %621 = vmatmul.mubr.bf16.vlgmr.msra.gmra.mrb[16].mxu0 %v404_v6  ;;  %3169 = vmatprep.subr.bf16.mxu1 %v4446_v51 }
  0x43   :  { %876 = vmatpush1.bf16.msra.mxu0 %v3657_v29  ;;  %907 = vmatprep.mubr.bf16.mxu0 %v4448_v1 }
  0x44   :  { %877 = vmatprep.subr.bf16.mxu0 %v3672_v33  ;;  %3166 = vmatmul.mubr.bf16.vlgmr.msra.gmra.mrb[8].mxu1 %v404_v6 }
  0x45   :  { %3185 = vmatprep.mubr.msk.bf16.mxu1 %vm3538_vm0, %v4446_v51  ;;  %3170 = vmatpush3.bf16.msra.mxu1 %v3376_v9 }
  0x46   :  { %3171 = vmatprep.subr.bf16.mxu1 %v4446_v51 }
  0x47   :  { %878 = vmatpush1.bf16.msra.mxu0 %v3677_v34 }
  0x48   :  { %879 = vmatprep.subr.bf16.mxu0 %v3684_v37 }
  0x49   :  { %3172 = vmatpush3.bf16.msra.mxu1 %v3377_v10 }
  0x4a   :  { %3173 = vmatprep.subr.bf16.mxu1 %v4446_v51 }
  0x4b   :  { %880 = vmatpush1.bf16.msra.mxu0 %v3702_v42 }
  0x4c   :  { %881 = vmatprep.subr.bf16.mxu0 %v3710_v45 }
  0x4d   :  { %3174 = vmatpush3.bf16.msra.mxu1 %v3378_v11 }
  0x4e   :  { %3175 = vmatprep.subr.bf16.mxu1 %v4446_v51 }
  0x4f   :  { %882 = vmatpush1.bf16.msra.mxu0 %v3718_v47 }
  0x50   :  { %883 = vmatprep.subr.bf16.mxu0 %v3729_v50 }
  0x51   :  { %3176 = vmatpush3.bf16.msra.mxu1 %v3379_v12 }
  0x52   :  { %3177 = vmatprep.subr.bf16.mxu1 %v4446_v51 }
  0x53   :  { %884 = vmatpush1.bf16.msra.mxu0 %v3741_v54 }
  0x54   :  { %885 = vmatprep.subr.bf16.mxu0 %v3746_v55 }
  0x55   :  { %3178 = vmatpush3.bf16.msra.mxu1 %v3380_v13 }
  0x56   :  { %3179 = vmatprep.subr.bf16.mxu1 %v4446_v51 }
  0x57   :  { %886 = vmatpush1.bf16.msra.mxu0 %v3759_v59 }
  0x58   :  { %887 = vmatprep.subr.bf16.mxu0 %v3764_v61 }
  0x59   :  { %3180 = vmatpush3.bf16.msra.mxu1 %v3381_v14 }
  0x5a   :  { %3181 = vmatprep.subr.bf16.mxu1 %v4446_v51 }
  0x5b   :  { %888 = vmatpush1.bf16.msra.mxu0 %v3776_v63 }
  0x5c   :  { %889 = vmatprep.subr.bf16.mxu0 %v3783_v0 }
  0x5d   :  { %3182 = vmatpush3.bf16.msra.mxu1 %v3382_v15 }
  0x5e   :  { %3183 = vmatprep.subr.bf16.mxu1 %v4446_v51 }
  0x5f   :  { %890 = vmatpush1.bf16.msra.mxu0 %v3794_v3 }
  0x60   :  { %1163 = vmatprep.subr.bf16.mxu0 %v3652_v28 }
  0x61   :  { %3184 = vmatpush3.bf16.msra.mxu1 %v3383_v16 }
  0x62   :  { %3189 = vmatprep.subr.bf16.mxu1 %v4446_v51 }
  0xf5   :  { %v275_v22 = vpop.f32.mrb[0].mxu0 }
  0xf6   :  { %v277_v24 = vpop.f32.mrb[1].mxu0 }
  0xf7   :  { %v279_v26 = vpop.f32.mrb[2].mxu0  ;;  %v3143_v43 = vpop.f32.mrb[0].mxu1 }
  0xf8   :  { %v3882_v27 = vadd.f32 %v279_v26, %v77_v23  ;;  %v281_v30 = vpop.f32.mrb[3].mxu0  ;;  %v3898_v48 = vadd.f32 %v3143_v43, %v3889_v35  ;;  %v348_v49 = vpop.f32.mrb[1].mxu1 }
  0xf9   :  { %v3886_v32 = vadd.f32 %v281_v30, %v81_v25  ;;  %v3144_v53 = vpop.f32.mrb[2].mxu1 }
  0xfa   :  { %v3903_v56 = vadd.f32 %v3144_v53, %v3889_v35  ;;  %v351_v57 = vpop.f32.mrb[3].mxu1 }
  0xfb   :  { %v3906_v58 = vadd.f32 %v351_v57, %v3889_v35 }
  0xfd   :  { %v285_v36 = vpop.f32.mrb[4].mxu0 }
  0xfe   :  { %v3891_v38 = vadd.f32 %v285_v36, %v77_v23  ;;  %v287_v39 = vpop.f32.mrb[5].mxu0 }
  0xff   :  { %v3893_v40 = vadd.f32 %v287_v39, %v81_v25  ;;  %v289_v41 = vpop.f32.mrb[6].mxu0  ;;  %v3147_v7 = vpop.f32.mrb[4].mxu1  ;;  %v443_v39 = vld [vmem:[%s4444_s5] sm:$0x7] }
 0x100   :  { %v3895_v44 = vadd.f32 %v289_v41, %v77_v23  ;;  %v291_v46 = vpop.f32.mrb[7].mxu0  ;;  %v3915_v10 = vadd.f32 %v3147_v7, %v3889_v35  ;;  %v364_v11 = vpop.f32.mrb[5].mxu1  ;;  %v448_v53 = vrot.slane %v443_v39, %v3873_v19  ;;  %v452_v57 = vrot.slane %v443_v39, %v3878_v21 }
 0x101   :  { %v3900_v52 = vadd.f32 %v291_v46, %v81_v25  ;;  %v3920_v13 = vadd.f32 %v364_v11, %v3889_v35  ;;  %v3148_v14 = vpop.f32.mrb[6].mxu1 }
 0x102   :  { %4450 = vst [vmem:[#allocation4_spill] sm:$0xff] %v3915_v10  ;;  %v3923_v15 = vadd.f32 %v3148_v14, %v3889_v35  ;;  %v367_v16 = vpop.f32.mrb[7].mxu1 }
 0x103   :  { %v3926_v17 = vadd.f32 %v367_v16, %v3889_v35 }
 0x104   :  { %4451 = vst [vmem:[#allocation5_spill] sm:$0xff] %v3923_v15 }
 0x105   :  { %v295_v60 = vpop.f32.mrb[8].mxu0 }
 0x106   :  { %v3908_v62 = vadd.f32 %v295_v60, %v77_v23  ;;  %v297_v2 = vpop.f32.mrb[9].mxu0 }
 0x107   :  { %v3910_v5 = vadd.f32 %v297_v2, %v81_v25  ;;  %v299_v6 = vpop.f32.mrb[10].mxu0  ;;  %v276_v2 = vadd.f32 %v275_v22, %v77_v23  ;;  %v456_v22 = vrot.slane %v443_v39, %v3884_v31  ;;  %v3386_v39 = vld [vmem:[%s4441_s3 + $0x38] ss:$12 sps:$4 sm:$0xff]  }
 0x108   :  { %v3912_v8 = vadd.f32 %v299_v6, %v77_v23  ;;  %v301_v9 = vpop.f32.mrb[11].mxu0 }
 0x109   :  { %v3917_v12 = vadd.f32 %v301_v9, %v81_v25  ;;  %v278_v9 = vadd.f32 %v277_v24, %v81_v25 }
 0x10d   :  { %v305_v18 = vpop.f32.mrb[12].mxu0 }
 0x10e   :  { %v3928_v20 = vadd.f32 %v305_v18, %v77_v23  ;;  %v307_v26 = vpop.f32.mrb[13].mxu0 }
 0x10f   :  { %v3930_v30 = vadd.f32 %v307_v26, %v81_v25  ;;  %v309_v36 = vpop.f32.mrb[14].mxu0 }
 0x110   :  { %v3935_v41 = vadd.f32 %v309_v36, %v77_v23  ;;  %v311_v43 = vpop.f32.mrb[15].mxu0 }
 0x111   :  { %v3937_v46 = vadd.f32 %v311_v43, %v81_v25 }
 0x112   :  { %4452 = vst [vmem:[#allocation6_spill] sm:$0xff] %v3935_v41 }
 0x113   :  { %4453 = vst [vmem:[#allocation7_spill] sm:$0xff] %v3937_v46 }
 0x115   :  { %v622_v60 = vpop.f32.mrb[16].mxu0 }
 0x116   :  { %v623_v6 = vadd.f32 %v622_v60, %v448_v53  ;;  %v624_v7 = vpop.f32.mrb[17].mxu0 }
 0x117   :  { %v625_v11 = vadd.f32 %v624_v7, %v452_v57  ;;  %v626_v14 = vpop.f32.mrb[18].mxu0  ;;  %v663_v1 = vpop.f32.mrb[8].mxu1  ;;  %v349_v57 = vadd.f32 %v348_v49, %v3889_v35  ;;  %v4455_v35 = vmov 0.0   ;;  %v3385_v49 = vld [vmem:[%s4441_s3 + $0x20] ss:$12 sps:$4 sm:$0xff]  }
 0x118   :  { %v669_v16 = vadd.f32 %v623_v6, %v276_v2  ;;  %v627_v18 = vpop.f32.mrb[19].mxu0  ;;  %v3167_v43 = vpop.f32.mrb[9].mxu1  ;;  %v664_v25 = vadd.f32 %v663_v1, %v456_v22  ;;  %v4454_v1 = vmov 0   ;;  %v3390_v14 = vld [vmem:[%s4441_s3 + $0x98] ss:$12 sps:$4 sm:$0xff]  }
 0x119   :  { %v676_v26 = vadd.f32 %v625_v11, %v278_v9  ;;  %v666_v15 = vpop.f32.mrb[10].mxu1  ;;  %v3388_v9 = vld [vmem:[%s4441_s3 + $0x68] ss:$12 sps:$4 sm:$0xff]   ;;  %v3389_v11 = vld [vmem:[%s4441_s3 + $0x80] ss:$12 sps:$4 sm:$0xff]  }
 0x11a   :  { %v2818_v51 = vmul.f32 -1.442695, %v669_v16  ;;  %v3168_v46 = vpop.f32.mrb[11].mxu1  ;;  %v3391_v16 = vld [vmem:[%s4441_s3 + $0xb0] ss:$12 sps:$4 sm:$0xff]  }
 0x11b   :  { %v2819_v36 = vmul.f32 -1.442695, %v676_v26  ;;  %v730_v18 = vld [vmem:[%s4444_s5] sm:$0x7] }
 0x11c   :  { %3456 = vpow2.f32 %v2818_v51  ;;  %v735_v26 = vrot.slane %v730_v18, %v3873_v19 }
 0x11d   :  { %3458 = vpow2.f32 %v2819_v36  ;;  %v739_v36 = vrot.slane %v730_v18, %v3878_v21 }
 0x126   :  { %v3457_v41 = vpop.eup %3456 }
 0x127   :  { %v673_v10 = vadd.f32 1.0, %v3457_v41  ;;  %v3459_v23 = vpop.eup %3458 }
 0x128   :  { %v680_v24 = vadd.f32 1.0, %v3459_v23 }
 0x129   :  { %3460 = vrcp.f32 %v673_v10 }
 0x12a   :  { %3462 = vrcp.f32 %v680_v24 }
 0x133   :  { %v3461_v53 = vpop.eup %3460 }
 0x134   :  { %v683_v60 = vmul.f32 %v3461_v53, %v664_v25  ;;  %v3463_v2 = vpop.eup %3462 }
 0x135   :  { %v686_v6 = vsub.f32 1.0, %v3463_v2  ;;  %v688_v7 = vmul.f32 %v3463_v2, %v3799_v4  ;;  %v3384_v4 = vld [vmem:[%s4441_s3 + $0x8] ss:$12 sps:$4 sm:$0xff]  }
 0x136   :  { %v684_v51 = vadd.f32 %v683_v60, %v349_v57 }
 0x138   :  { %3464 = vtanh.f32 %v684_v51 }
 0x142   :  { %v3465_v15 = vpop.eup %3464 }
 0x143   :  { %v687_v46 = vmul.f32 %v3465_v15, %v686_v6 }
 0x145   :  { %v3944_v41 = vadd.f32 %v688_v7, %v687_v46 }
 0x147   :  { %v691_v10 = vpack.c.bf16 %v3944_v41, %v3944_v41 }
 0x149   :  { %908 = vmatmul.mubr.bf16.vlgmr.msra.gmra.mrb[20].mxu0 %v691_v10  ;;  %3186 = vmatmul.mubr.bf16.vlgmr.msra.gmra.mrb[12].mxu1 %v691_v10 }
 0x14a   :  { %1164 = vmatpush1.bf16.msra.mxu0 %v3657_v29  ;;  %1195 = vmatprep.mubr.bf16.mxu0 %v4454_v1 }
 0x14b   :  { %1165 = vmatprep.subr.bf16.mxu0 %v3672_v33  ;;  %3205 = vmatprep.mubr.msk.bf16.mxu1 %vm3538_vm0, %v4455_v35 }
 0x14c   :  { %3190 = vmatpush3.bf16.msra.mxu1 %v3384_v4 }
 0x14d   :  { %3191 = vmatprep.subr.bf16.mxu1 %v4455_v35 }
 0x14e   :  { %1166 = vmatpush1.bf16.msra.mxu0 %v3677_v34 }
 0x14f   :  { %1167 = vmatprep.subr.bf16.mxu0 %v3684_v37 }
 0x150   :  { %3192 = vmatpush3.bf16.msra.mxu1 %v3385_v49 }
 0x151   :  { %3193 = vmatprep.subr.bf16.mxu1 %v4455_v35 }
 0x152   :  { %1168 = vmatpush1.bf16.msra.mxu0 %v3702_v42 }
 0x153   :  { %1169 = vmatprep.subr.bf16.mxu0 %v3710_v45 }
 0x154   :  { %3194 = vmatpush3.bf16.msra.mxu1 %v3386_v39  ;;  %v743_v39 = vrot.slane %v730_v18, %v3884_v31 }
 0x155   :  { %3195 = vmatprep.subr.bf16.mxu1 %v4455_v35 }
 0x156   :  { %1170 = vmatpush1.bf16.msra.mxu0 %v3718_v47 }
 0x157   :  { %1171 = vmatprep.subr.bf16.mxu0 %v3729_v50 }
 0x15a   :  { %1172 = vmatpush1.bf16.msra.mxu0 %v3741_v54 }
 0x15b   :  { %1173 = vmatprep.subr.bf16.mxu0 %v3746_v55 }
 0x15e   :  { %1174 = vmatpush1.bf16.msra.mxu0 %v3759_v59 }
 0x15f   :  { %1175 = vmatprep.subr.bf16.mxu0 %v3764_v61 }
 0x162   :  { %1176 = vmatpush1.bf16.msra.mxu0 %v3776_v63 }
 0x163   :  { %1177 = vmatprep.subr.bf16.mxu0 %v3783_v0 }
 0x166   :  { %1178 = vmatpush1.bf16.msra.mxu0 %v3794_v3 }
 0x167   :  { %1451 = vmatprep.subr.bf16.mxu0 %v3652_v28  ;;  %v3387_v28 = vld [vmem:[%s4441_s3 + $0x50] ss:$12 sps:$4 sm:$0xff]  }
 0x168   :  { %3196 = vmatpush3.bf16.msra.mxu1 %v3387_v28 }
 0x169   :  { %3197 = vmatprep.subr.bf16.mxu1 %v4455_v35 }
 0x16c   :  { %3198 = vmatpush3.bf16.msra.mxu1 %v3388_v9 }
 0x16d   :  { %3199 = vmatprep.subr.bf16.mxu1 %v4455_v35 }
 0x170   :  { %3200 = vmatpush3.bf16.msra.mxu1 %v3389_v11 }
 0x171   :  { %3201 = vmatprep.subr.bf16.mxu1 %v4455_v35 }
 0x174   :  { %3202 = vmatpush3.bf16.msra.mxu1 %v3390_v14 }
 0x175   :  { %3203 = vmatprep.subr.bf16.mxu1 %v4455_v35 }
 0x178   :  { %3204 = vmatpush3.bf16.msra.mxu1 %v3391_v16 }
 0x179   :  { %3209 = vmatprep.subr.bf16.mxu1 %v4455_v35 }
 0x21c   :  { %v909_v43 = vpop.f32.mrb[20].mxu0  ;;  %v950_v22 = vpop.f32.mrb[12].mxu1 }
 0x21d   :  { %v910_v23 = vadd.f32 %v909_v43, %v735_v26  ;;  %v911_v24 = vpop.f32.mrb[21].mxu0  ;;  %v3187_v25 = vpop.f32.mrb[13].mxu1  ;;  %v951_v9 = vadd.f32 %v950_v22, %v743_v39 }
 0x21e   :  { %v912_v53 = vadd.f32 %v911_v24, %v739_v36  ;;  %v913_v57 = vpop.f32.mrb[22].mxu0  ;;  %v953_v60 = vpop.f32.mrb[14].mxu1 }
 0x21f   :  { %v956_v51 = vadd.f32 %v910_v23, %v3882_v27  ;;  %v914_v2 = vpop.f32.mrb[23].mxu0  ;;  %v3188_v6 = vpop.f32.mrb[15].mxu1 }
 0x220   :  { %v963_v15 = vadd.f32 %v912_v53, %v3886_v32 }
 0x221   :  { %v2844_v46 = vmul.f32 -1.442695, %v956_v51 }
 0x222   :  { %v2845_v7 = vmul.f32 -1.442695, %v963_v15 }
 0x223   :  { %3466 = vpow2.f32 %v2844_v46 }
 0x224   :  { %3468 = vpow2.f32 %v2845_v7 }
 0x22d   :  { %v3467_v10 = vpop.eup %3466 }
 0x22e   :  { %v960_v4 = vadd.f32 1.0, %v3467_v10  ;;  %v3469_v49 = vpop.eup %3468 }
 0x22f   :  { %v967_v28 = vadd.f32 1.0, %v3469_v49 }
 0x230   :  { %3470 = vrcp.f32 %v960_v4 }
 0x231   :  { %3472 = vrcp.f32 %v967_v28 }
 0x23a   :  { %v3471_v11 = vpop.eup %3470 }
 0x23b   :  { %v970_v14 = vmul.f32 %v3471_v11, %v951_v9  ;;  %v3473_v16 = vpop.eup %3472 }
 0x23c   :  { %v973_v32 = vsub.f32 1.0, %v3473_v16  ;;  %v975_v43 = vmul.f32 %v3473_v16, %v3944_v41 }
 0x23d   :  { %v971_v27 = vadd.f32 %v970_v14, %v3906_v58 }
 0x23f   :  { %3474 = vtanh.f32 %v971_v27 }
 0x249   :  { %v3475_v26 = vpop.eup %3474 }
 0x24a   :  { %v974_v36 = vmul.f32 %v3475_v26, %v973_v32  ;;  %v4093_v26 = vld [vmem:[%s4441_s3] ss:$12 sps:$4 sm:$0xff]  }
 0x24c   :  { %v4009_v23 = vadd.f32 %v975_v43, %v974_v36  ;;  %v3403_v36 = vld [vmem:[%s4441_s3 + $0x8] ss:$12 sps:$4 sm:$0xff]  }
 0x24d   :  { %v4103_v43 = vld [vmem:[%s4441_s3 + $0x1c] ss:$12 sps:$4 sm:$0xff]  }
 0x24e   :  { %v979_v24 = vpack.c.bf16 %v4009_v23, %v4009_v23  ;;  %v3021_v18 = vpack.c.bf16 %v4009_v23, %v3944_v41 }
 0x250   :  { %1196 = vmatmul.mubr.bf16.vlgmr.msra.gmra.mrb[24].mxu0 %v979_v24  ;;  %3022 = vst [vmem:[%s4445_s6] sm:$0xff] %v3021_v18   ;;  %3206 = vmatmul.mubr.bf16.vlgmr.msra.gmra.mrb[16].mxu1 %v979_v24  ;;  %v3407_v24 = vld [vmem:[%s4441_s3 + $0x20] ss:$12 sps:$4 sm:$0xff]  }
 0x251   :  { %1452 = vmatpush1.bf16.msra.mxu0 %v3657_v29  ;;  %1483 = vmatprep.mubr.bf16.mxu0 %v4454_v1  ;;  %v3392_v29 = vld [vmem:[%s4441_s3 + $0x8] ss:$12 sps:$4 sm:$0xff]  }
 0x252   :  { %1453 = vmatprep.subr.bf16.mxu0 %v3672_v33  ;;  %3225 = vmatprep.mubr.msk.bf16.mxu1 %vm3538_vm0, %v4455_v35  ;;  %v3393_v33 = vld [vmem:[%s4441_s3 + $0x20] ss:$12 sps:$4 sm:$0xff]  }
 0x253   :  { %3210 = vmatpush3.bf16.msra.mxu1 %v3392_v29  ;;  %v4119_v18 = vld [vmem:[%s4441_s3 + $0x34] ss:$12 sps:$4 sm:$0xff]   ;;  %v4125_v29 = vld [vmem:[%s4441_s3 + $0x30] ss:$12 sps:$4 sm:$0xff]  }
 0x254   :  { %3211 = vmatprep.subr.bf16.mxu1 %v4455_v35 }
 0x255   :  { %1454 = vmatpush1.bf16.msra.mxu0 %v3677_v34  ;;  %v3394_v34 = vld [vmem:[%s4441_s3 + $0x38] ss:$12 sps:$4 sm:$0xff]  }
 0x256   :  { %1455 = vmatprep.subr.bf16.mxu0 %v3684_v37  ;;  %v3395_v37 = vld [vmem:[%s4441_s3 + $0x50] ss:$12 sps:$4 sm:$0xff]  }
 0x257   :  { %3212 = vmatpush3.bf16.msra.mxu1 %v3393_v33  ;;  %v3411_v33 = vld [vmem:[%s4441_s3 + $0x38] ss:$12 sps:$4 sm:$0xff]  }
 0x258   :  { %3213 = vmatprep.subr.bf16.mxu1 %v4455_v35 }
 0x259   :  { %1456 = vmatpush1.bf16.msra.mxu0 %v3702_v42  ;;  %v3396_v42 = vld [vmem:[%s4441_s3 + $0x68] ss:$12 sps:$4 sm:$0xff]  }
 0x25a   :  { %1457 = vmatprep.subr.bf16.mxu0 %v3710_v45  ;;  %v3397_v45 = vld [vmem:[%s4441_s3 + $0x80] ss:$12 sps:$4 sm:$0xff]  }
 0x25b   :  { %3214 = vmatpush3.bf16.msra.mxu1 %v3394_v34  ;;  %v4135_v34 = vld [vmem:[%s4441_s3 + $0x4c] ss:$12 sps:$4 sm:$0xff]  }
 0x25c   :  { %3215 = vmatprep.subr.bf16.mxu1 %v4455_v35 }
 0x25d   :  { %1458 = vmatpush1.bf16.msra.mxu0 %v3718_v47  ;;  %v3398_v47 = vld [vmem:[%s4441_s3 + $0x98] ss:$12 sps:$4 sm:$0xff]  }
 0x25e   :  { %1459 = vmatprep.subr.bf16.mxu0 %v3729_v50  ;;  %v3399_v50 = vld [vmem:[%s4441_s3 + $0xb0] ss:$12 sps:$4 sm:$0xff]  }
 0x25f   :  { %3216 = vmatpush3.bf16.msra.mxu1 %v3395_v37  ;;  %v4141_v37 = vld [vmem:[%s4441_s3 + $0x48] ss:$12 sps:$4 sm:$0xff]  }
 0x260   :  { %3217 = vmatprep.subr.bf16.mxu1 %v4455_v35 }
 0x261   :  { %1460 = vmatpush1.bf16.msra.mxu0 %v3741_v54  ;;  %v1018_v54 = vld [vmem:[%s4444_s5] sm:$0x7] }
 0x262   :  { %1461 = vmatprep.subr.bf16.mxu0 %v3746_v55  ;;  %v1023_v55 = vrot.slane %v1018_v54, %v3873_v19  ;;  %v1031_v10 = vrot.slane %v1018_v54, %v3884_v31 }
 0x263   :  { %3218 = vmatpush3.bf16.msra.mxu1 %v3396_v42  ;;  %v3415_v42 = vld [vmem:[%s4441_s3 + $0x50] ss:$12 sps:$4 sm:$0xff]  }
 0x264   :  { %3219 = vmatprep.subr.bf16.mxu1 %v4455_v35 }
 0x265   :  { %1462 = vmatpush1.bf16.msra.mxu0 %v3759_v59  ;;  %v1027_v59 = vrot.slane %v1018_v54, %v3878_v21  ;;  %v4166_v54 = vld [vmem:[%s4441_s3 + $0x7c] ss:$12 sps:$4 sm:$0xff]  }
 0x266   :  { %1463 = vmatprep.subr.bf16.mxu0 %v3764_v61 }
 0x267   :  { %3220 = vmatpush3.bf16.msra.mxu1 %v3397_v45  ;;  %v4151_v45 = vld [vmem:[%s4441_s3 + $0x64] ss:$12 sps:$4 sm:$0xff]  }
 0x268   :  { %3221 = vmatprep.subr.bf16.mxu1 %v4455_v35 }
 0x269   :  { %1464 = vmatpush1.bf16.msra.mxu0 %v3776_v63 }
 0x26a   :  { %1465 = vmatprep.subr.bf16.mxu0 %v3783_v0 }
 0x26b   :  { %3222 = vmatpush3.bf16.msra.mxu1 %v3398_v47  ;;  %v4157_v47 = vld [vmem:[%s4441_s3 + $0x60] ss:$12 sps:$4 sm:$0xff]  }
 0x26c   :  { %3223 = vmatprep.subr.bf16.mxu1 %v4455_v35 }
 0x26d   :  { %1466 = vmatpush1.bf16.msra.mxu0 %v3794_v3 }
 0x26f   :  { %3224 = vmatpush3.bf16.msra.mxu1 %v3399_v50  ;;  %v3419_v50 = vld [vmem:[%s4441_s3 + $0x68] ss:$12 sps:$4 sm:$0xff]  }
 0x270   :  { %3229 = vmatprep.subr.bf16.mxu1 %v4455_v35 }
 0x323   :  { %v1197_v61 = vpop.f32.mrb[24].mxu0  ;;  %v1238_v63 = vpop.f32.mrb[16].mxu1 }
 0x324   :  { %v1198_v0 = vadd.f32 %v1197_v61, %v1023_v55  ;;  %v1199_v3 = vpop.f32.mrb[25].mxu0  ;;  %v3207_v58 = vpop.f32.mrb[17].mxu1  ;;  %v1239_v49 = vadd.f32 %v1238_v63, %v1031_v10  ;;  %v4172_v55 = vld [vmem:[%s4441_s3 + $0x78] ss:$12 sps:$4 sm:$0xff]   ;;  %v4182_v61 = vld [vmem:[%s4441_s3 + $0x94] ss:$12 sps:$4 sm:$0xff]  }
 0x325   :  { %v1200_v41 = vadd.f32 %v1199_v3, %v1027_v59  ;;  %v1201_v22 = vpop.f32.mrb[26].mxu0  ;;  %v1241_v25 = vpop.f32.mrb[18].mxu1  ;;  %v3423_v59 = vld [vmem:[%s4441_s3 + $0x80] ss:$12 sps:$4 sm:$0xff]   ;;  %v4188_v63 = vld [vmem:[%s4441_s3 + $0x90] ss:$12 sps:$4 sm:$0xff]  }
 0x326   :  { %v1244_v53 = vadd.f32 %v1198_v0, %v3891_v38  ;;  %v1202_v57 = vpop.f32.mrb[27].mxu0  ;;  %v3208_v60 = vpop.f32.mrb[19].mxu1  ;;  %v3427_v0 = vld [vmem:[%s4441_s3 + $0x98] ss:$12 sps:$4 sm:$0xff]   ;;  %v4204_v58 = vld [vmem:[%s4441_s3 + $0xa8] ss:$12 sps:$4 sm:$0xff]  }
 0x327   :  { %v1251_v51 = vadd.f32 %v1200_v41, %v3893_v40  ;;  %v4198_v3 = vld [vmem:[%s4441_s3 + $0xac] ss:$12 sps:$4 sm:$0xff]   ;;  %v3431_v41 = vld [vmem:[%s4441_s3 + $0xb0] ss:$12 sps:$4 sm:$0xff]   ;;  %v1306_v22 = vld [vmem:[%s4444_s5] sm:$0x7] }
 0x328   :  { %v2870_v2 = vmul.f32 -1.442695, %v1244_v53  ;;  %v1311_v25 = vrot.slane %v1306_v22, %v3873_v19  ;;  %v1315_v53 = vrot.slane %v1306_v22, %v3878_v21 }
 0x329   :  { %v2871_v6 = vmul.f32 -1.442695, %v1251_v51 }
 0x32a   :  { %3476 = vpow2.f32 %v2870_v2 }
 0x32b   :  { %3478 = vpow2.f32 %v2871_v6 }
 0x334   :  { %v3477_v15 = vpop.eup %3476 }
 0x335   :  { %v1248_v46 = vadd.f32 1.0, %v3477_v15  ;;  %v3479_v7 = vpop.eup %3478 }
 0x336   :  { %v1255_v4 = vadd.f32 1.0, %v3479_v7 }
 0x337   :  { %3480 = vrcp.f32 %v1248_v46 }
 0x338   :  { %3482 = vrcp.f32 %v1255_v4 }
 0x341   :  { %v3481_v39 = vpop.eup %3480 }
 0x342   :  { %v1258_v28 = vmul.f32 %v3481_v39, %v1239_v49  ;;  %v3483_v9 = vpop.eup %3482 }
 0x343   :  { %v1261_v40 = vsub.f32 1.0, %v3483_v9  ;;  %v1263_v27 = vmul.f32 %v3483_v9, %v4009_v23  ;;  %v4109_v23 = vld [vmem:[%s4441_s3 + $0x18] ss:$12 sps:$4 sm:$0xff]  }
 0x344   :  { %v1259_v38 = vadd.f32 %v1258_v28, %v3898_v48  ;;  %v4088_v48 = vld [vmem:[%s4441_s3 + $0x4] ss:$12 sps:$4 sm:$0xff]  }
 0x345   :  { %1739 = vmatprep.subr.bf16.mxu0 %v4088_v48 }
 0x346   :  { %3484 = vtanh.f32 %v1259_v38 }
 0x350   :  { %v3485_v11 = vpop.eup %3484 }
 0x351   :  { %v1262_v14 = vmul.f32 %v3485_v11, %v1261_v40 }
 0x353   :  { %v4078_v16 = vadd.f32 %v1263_v27, %v1262_v14  ;;  %v1319_v14 = vrot.slane %v1306_v22, %v3884_v31 }
 0x355   :  { %v1267_v32 = vpack.c.bf16 %v4078_v16, %v4078_v16 }
 0x357   :  { %1484 = vmatmul.mubr.bf16.vlgmr.msra.gmra.mrb[28].mxu0 %v1267_v32  ;;  %3226 = vmatmul.mubr.bf16.vlgmr.msra.gmra.mrb[20].mxu1 %v1267_v32 }
 0x358   :  { %1771 = vmatprep.mubr.bf16.mxu0 %v4454_v1  ;;  %3245 = vmatprep.mubr.msk.bf16.mxu1 %vm3538_vm0, %v4455_v35 }
 0x359   :  { %1740 = vmatpush1.bf16.msra.mxu0 %v4093_v26  ;;  %3230 = vmatpush3.bf16.msra.mxu1 %v3403_v36 }
 0x35a   :  { %3231 = vmatprep.subr.bf16.mxu1 %v4455_v35  ;;  %1741 = vmatprep.subr.bf16.mxu0 %v4103_v43 }
 0x35d   :  { %1742 = vmatpush1.bf16.msra.mxu0 %v4109_v23  ;;  %3232 = vmatpush3.bf16.msra.mxu1 %v3407_v24 }
 0x35e   :  { %3233 = vmatprep.subr.bf16.mxu1 %v4455_v35  ;;  %1743 = vmatprep.subr.bf16.mxu0 %v4119_v18 }
 0x361   :  { %1744 = vmatpush1.bf16.msra.mxu0 %v4125_v29  ;;  %3234 = vmatpush3.bf16.msra.mxu1 %v3411_v33 }
 0x362   :  { %3235 = vmatprep.subr.bf16.mxu1 %v4455_v35  ;;  %1745 = vmatprep.subr.bf16.mxu0 %v4135_v34 }
 0x365   :  { %1746 = vmatpush1.bf16.msra.mxu0 %v4141_v37  ;;  %3236 = vmatpush3.bf16.msra.mxu1 %v3415_v42 }
 0x366   :  { %3237 = vmatprep.subr.bf16.mxu1 %v4455_v35  ;;  %1747 = vmatprep.subr.bf16.mxu0 %v4151_v45 }
 0x369   :  { %1748 = vmatpush1.bf16.msra.mxu0 %v4157_v47  ;;  %3238 = vmatpush3.bf16.msra.mxu1 %v3419_v50 }
 0x36a   :  { %1749 = vmatprep.subr.bf16.mxu0 %v4166_v54  ;;  %3239 = vmatprep.subr.bf16.mxu1 %v4455_v35 }
 0x36d   :  { %1750 = vmatpush1.bf16.msra.mxu0 %v4172_v55  ;;  %3240 = vmatpush3.bf16.msra.mxu1 %v3423_v59 }
 0x36e   :  { %1751 = vmatprep.subr.bf16.mxu0 %v4182_v61  ;;  %3241 = vmatprep.subr.bf16.mxu1 %v4455_v35 }
 0x371   :  { %1752 = vmatpush1.bf16.msra.mxu0 %v4188_v63  ;;  %3242 = vmatpush3.bf16.msra.mxu1 %v3427_v0 }
 0x372   :  { %1753 = vmatprep.subr.bf16.mxu0 %v4198_v3  ;;  %3243 = vmatprep.subr.bf16.mxu1 %v4455_v35 }
 0x375   :  { %1754 = vmatpush1.bf16.msra.mxu0 %v4204_v58  ;;  %3244 = vmatpush3.bf16.msra.mxu1 %v3431_v41 }
 0x376   :  { %2027 = vmatprep.subr.bf16.mxu0 %v4088_v48  ;;  %3249 = vmatprep.subr.bf16.mxu1 %v4455_v35 }
 0x42a   :  { %v1485_v57 = vpop.f32.mrb[28].mxu0  ;;  %v1526_v60 = vpop.f32.mrb[20].mxu1 }
 0x42b   :  { %v1486_v51 = vadd.f32 %v1485_v57, %v1311_v25  ;;  %v1487_v2 = vpop.f32.mrb[29].mxu0  ;;  %v3227_v6 = vpop.f32.mrb[21].mxu1  ;;  %v1527_v32 = vadd.f32 %v1526_v60, %v1319_v14  ;;  %v3434_v25 = vld [vmem:[%s4441_s3 + $0x38] ss:$12 sps:$4 sm:$0xff]   ;;  %v3436_v57 = vld [vmem:[%s4441_s3 + $0x68] ss:$12 sps:$4 sm:$0xff]  }
 0x42c   :  { %v1488_v15 = vadd.f32 %v1487_v2, %v1315_v53  ;;  %v1489_v46 = vpop.f32.mrb[30].mxu0  ;;  %v1529_v7 = vpop.f32.mrb[22].mxu1  ;;  %v3435_v53 = vld [vmem:[%s4441_s3 + $0x50] ss:$12 sps:$4 sm:$0xff]   ;;  %v3437_v60 = vld [vmem:[%s4441_s3 + $0x80] ss:$12 sps:$4 sm:$0xff]  }
 0x42d   :  { %v1532_v10 = vadd.f32 %v1486_v51, %v3895_v44  ;;  %v1490_v4 = vpop.f32.mrb[31].mxu0  ;;  %v3228_v49 = vpop.f32.mrb[23].mxu1  ;;  %v3438_v51 = vld [vmem:[%s4441_s3 + $0x98] ss:$12 sps:$4 sm:$0xff]   ;;  %v3439_v2 = vld [vmem:[%s4441_s3 + $0xb0] ss:$12 sps:$4 sm:$0xff]  }
 0x42e   :  { %v1539_v39 = vadd.f32 %v1488_v15, %v3900_v52  ;;  %v1594_v6 = vld [vmem:[%s4444_s5] sm:$0x7] }
 0x42f   :  { %v2896_v28 = vmul.f32 -1.442695, %v1532_v10  ;;  %v1599_v15 = vrot.slane %v1594_v6, %v3873_v19  ;;  %v1603_v46 = vrot.slane %v1594_v6, %v3878_v21 }
 0x430   :  { %v2897_v38 = vmul.f32 -1.442695, %v1539_v39 }
 0x431   :  { %3486 = vpow2.f32 %v2896_v28 }
 0x432   :  { %3488 = vpow2.f32 %v2897_v38 }
 0x43b   :  { %v3487_v9 = vpop.eup %3486 }
 0x43c   :  { %v1536_v40 = vadd.f32 1.0, %v3487_v9  ;;  %v3489_v11 = vpop.eup %3488 }
 0x43d   :  { %v1543_v27 = vadd.f32 1.0, %v3489_v11 }
 0x43e   :  { %3490 = vrcp.f32 %v1536_v40 }
 0x43f   :  { %3492 = vrcp.f32 %v1543_v27 }
 0x448   :  { %v3491_v36 = vpop.eup %3490 }
 0x449   :  { %v1546_v24 = vmul.f32 %v3491_v36, %v1527_v32  ;;  %v3493_v33 = vpop.eup %3492 }
 0x44a   :  { %v1549_v52 = vsub.f32 1.0, %v3493_v33  ;;  %v1551_v59 = vmul.f32 %v3493_v33, %v4078_v16 }
 0x44b   :  { %v1547_v44 = vadd.f32 %v1546_v24, %v3903_v56  ;;  %v3432_v56 = vld [vmem:[%s4441_s3 + $0x8] ss:$12 sps:$4 sm:$0xff]  }
 0x44d   :  { %3494 = vtanh.f32 %v1547_v44 }
 0x457   :  { %v3495_v42 = vpop.eup %3494 }
 0x458   :  { %v1550_v50 = vmul.f32 %v3495_v42, %v1549_v52  ;;  %v1607_v52 = vrot.slane %v1594_v6, %v3884_v31  ;;  %v3446_v6 = vld [vmem:[%s4441_s3 + $0x98] ss:$12 sps:$4 sm:$0xff]  }
 0x45a   :  { %v4224_v0 = vadd.f32 %v1551_v59, %v1550_v50 }
 0x45c   :  { %v1555_v41 = vpack.c.bf16 %v4224_v0, %v4224_v0  ;;  %v3026_v22 = vpack.c.bf16 %v4224_v0, %v4078_v16  ;;  %v3433_v16 = vld [vmem:[%s4441_s3 + $0x20] ss:$12 sps:$4 sm:$0xff]  }
 0x45e   :  { %1772 = vmatmul.mubr.bf16.vlgmr.msra.gmra.mrb[32].mxu0 %v1555_v41  ;;  %3038 = vst [vmem:[%s4445_s6 + $0x8] sm:$0xff] %v3026_v22   ;;  %3246 = vmatmul.mubr.bf16.vlgmr.msra.gmra.mrb[24].mxu1 %v1555_v41 }
 0x45f   :  { %2028 = vmatpush1.bf16.msra.mxu0 %v4093_v26  ;;  %2059 = vmatprep.mubr.bf16.mxu0 %v4454_v1 }
 0x460   :  { %2029 = vmatprep.subr.bf16.mxu0 %v4103_v43  ;;  %3265 = vmatprep.mubr.msk.bf16.mxu1 %vm3538_vm0, %v4455_v35 }
 0x461   :  { %3250 = vmatpush3.bf16.msra.mxu1 %v3432_v56 }
 0x462   :  { %3251 = vmatprep.subr.bf16.mxu1 %v4455_v35 }
 0x463   :  { %2030 = vmatpush1.bf16.msra.mxu0 %v4109_v23 }
 0x464   :  { %2031 = vmatprep.subr.bf16.mxu0 %v4119_v18 }
 0x465   :  { %3252 = vmatpush3.bf16.msra.mxu1 %v3433_v16 }
 0x466   :  { %3253 = vmatprep.subr.bf16.mxu1 %v4455_v35 }
 0x467   :  { %2032 = vmatpush1.bf16.msra.mxu0 %v4125_v29 }
 0x468   :  { %2033 = vmatprep.subr.bf16.mxu0 %v4135_v34 }
 0x469   :  { %3254 = vmatpush3.bf16.msra.mxu1 %v3434_v25 }
 0x46a   :  { %3255 = vmatprep.subr.bf16.mxu1 %v4455_v35 }
 0x46b   :  { %2034 = vmatpush1.bf16.msra.mxu0 %v4141_v37 }
 0x46c   :  { %2035 = vmatprep.subr.bf16.mxu0 %v4151_v45 }
 0x46d   :  { %3256 = vmatpush3.bf16.msra.mxu1 %v3435_v53 }
 0x46e   :  { %3257 = vmatprep.subr.bf16.mxu1 %v4455_v35 }
 0x46f   :  { %2036 = vmatpush1.bf16.msra.mxu0 %v4157_v47 }
 0x470   :  { %2037 = vmatprep.subr.bf16.mxu0 %v4166_v54 }
 0x471   :  { %3258 = vmatpush3.bf16.msra.mxu1 %v3436_v57 }
 0x472   :  { %3259 = vmatprep.subr.bf16.mxu1 %v4455_v35 }
 0x473   :  { %2038 = vmatpush1.bf16.msra.mxu0 %v4172_v55 }
 0x474   :  { %2039 = vmatprep.subr.bf16.mxu0 %v4182_v61 }
 0x475   :  { %3260 = vmatpush3.bf16.msra.mxu1 %v3437_v60  ;;  %v3442_v60 = vld [vmem:[%s4441_s3 + $0x38] ss:$12 sps:$4 sm:$0xff]  }
 0x476   :  { %3261 = vmatprep.subr.bf16.mxu1 %v4455_v35 }
 0x477   :  { %2040 = vmatpush1.bf16.msra.mxu0 %v4188_v63 }
 0x478   :  { %2041 = vmatprep.subr.bf16.mxu0 %v4198_v3 }
 0x479   :  { %3262 = vmatpush3.bf16.msra.mxu1 %v3438_v51  ;;  %v3444_v51 = vld [vmem:[%s4441_s3 + $0x68] ss:$12 sps:$4 sm:$0xff]  }
 0x47a   :  { %3263 = vmatprep.subr.bf16.mxu1 %v4455_v35 }
 0x47b   :  { %2042 = vmatpush1.bf16.msra.mxu0 %v4204_v58 }
 0x47c   :  { %2315 = vmatprep.subr.bf16.mxu0 %v4088_v48 }
 0x47d   :  { %3264 = vmatpush3.bf16.msra.mxu1 %v3439_v2  ;;  %v3445_v2 = vld [vmem:[%s4441_s3 + $0x80] ss:$12 sps:$4 sm:$0xff]  }
 0x47e   :  { %3269 = vmatprep.subr.bf16.mxu1 %v4455_v35 }
 0x531   :  { %v1773_v7 = vpop.f32.mrb[32].mxu0  ;;  %v1814_v10 = vpop.f32.mrb[24].mxu1 }
 0x532   :  { %v1774_v4 = vadd.f32 %v1773_v7, %v1599_v15  ;;  %v1775_v49 = vpop.f32.mrb[33].mxu0  ;;  %v3247_v39 = vpop.f32.mrb[25].mxu1  ;;  %v1815_v50 = vadd.f32 %v1814_v10, %v1607_v52  ;;  %v3447_v15 = vld [vmem:[%s4441_s3 + $0xb0] ss:$12 sps:$4 sm:$0xff]  }
 0x533   :  { %v1776_v28 = vadd.f32 %v1775_v49, %v1603_v46  ;;  %v1777_v38 = vpop.f32.mrb[34].mxu0  ;;  %v1817_v9 = vpop.f32.mrb[26].mxu1  ;;  %v1882_v46 = vld [vmem:[%s4444_s5] sm:$0x7] }
 0x534   :  { %v1820_v40 = vadd.f32 %v1774_v4, %v3908_v62  ;;  %v1778_v11 = vpop.f32.mrb[35].mxu0  ;;  %v3248_v14 = vpop.f32.mrb[27].mxu1  ;;  %v1887_v7 = vrot.slane %v1882_v46, %v3873_v19  ;;  %v1891_v10 = vrot.slane %v1882_v46, %v3878_v21 }
 0x535   :  { %v1827_v27 = vadd.f32 %v1776_v28, %v3910_v5 }
 0x536   :  { %v2922_v32 = vmul.f32 -1.442695, %v1820_v40 }
 0x537   :  { %v2923_v36 = vmul.f32 -1.442695, %v1827_v27 }
 0x538   :  { %3496 = vpow2.f32 %v2922_v32 }
 0x539   :  { %3498 = vpow2.f32 %v2923_v36 }
 0x542   :  { %v3497_v24 = vpop.eup %3496 }
 0x543   :  { %v1824_v44 = vadd.f32 1.0, %v3497_v24  ;;  %v3499_v33 = vpop.eup %3498 }
 0x544   :  { %v1831_v42 = vadd.f32 1.0, %v3499_v33 }
 0x545   :  { %3500 = vrcp.f32 %v1824_v44 }
 0x546   :  { %3502 = vrcp.f32 %v1831_v42 }
 0x54f   :  { %v3501_v59 = vpop.eup %3500 }
 0x550   :  { %v1834_v41 = vmul.f32 %v3501_v59, %v1815_v50  ;;  %v3503_v22 = vpop.eup %3502  ;;  %v1895_v50 = vrot.slane %v1882_v46, %v3884_v31 }
 0x551   :  { %v1837_v5 = vsub.f32 1.0, %v3503_v22  ;;  %v1839_v25 = vmul.f32 %v3503_v22, %v4224_v0  ;;  %v3441_v0 = vld [vmem:[%s4441_s3 + $0x20] ss:$12 sps:$4 sm:$0xff]  }
 0x552   :  { %v1835_v62 = vadd.f32 %v1834_v41, %v3920_v13  ;;  %v3440_v13 = vld [vmem:[%s4441_s3 + $0x8] ss:$12 sps:$4 sm:$0xff]  }
 0x554   :  { %3504 = vtanh.f32 %v1835_v62 }
 0x55e   :  { %v3505_v56 = vpop.eup %3504 }
 0x55f   :  { %v1838_v16 = vmul.f32 %v3505_v56, %v1837_v5 }
 0x561   :  { %v4294_v53 = vadd.f32 %v1839_v25, %v1838_v16 }
 0x563   :  { %v1843_v57 = vpack.c.bf16 %v4294_v53, %v4294_v53 }
 0x565   :  { %2060 = vmatmul.mubr.bf16.vlgmr.msra.gmra.mrb[36].mxu0 %v1843_v57  ;;  %3266 = vmatmul.mubr.bf16.vlgmr.msra.gmra.mrb[28].mxu1 %v1843_v57 }
 0x566   :  { %2316 = vmatpush1.bf16.msra.mxu0 %v4093_v26  ;;  %2347 = vmatprep.mubr.bf16.mxu0 %v4454_v1 }
 0x567   :  { %2317 = vmatprep.subr.bf16.mxu0 %v4103_v43  ;;  %3285 = vmatprep.mubr.msk.bf16.mxu1 %vm3538_vm0, %v4455_v35 }
 0x568   :  { %3270 = vmatpush3.bf16.msra.mxu1 %v3440_v13 }
 0x569   :  { %3271 = vmatprep.subr.bf16.mxu1 %v4455_v35 }
 0x56a   :  { %2318 = vmatpush1.bf16.msra.mxu0 %v4109_v23 }
 0x56b   :  { %2319 = vmatprep.subr.bf16.mxu0 %v4119_v18 }
 0x56c   :  { %3272 = vmatpush3.bf16.msra.mxu1 %v3441_v0 }
 0x56d   :  { %3273 = vmatprep.subr.bf16.mxu1 %v4455_v35 }
 0x56e   :  { %2320 = vmatpush1.bf16.msra.mxu0 %v4125_v29 }
 0x56f   :  { %2321 = vmatprep.subr.bf16.mxu0 %v4135_v34 }
 0x570   :  { %3274 = vmatpush3.bf16.msra.mxu1 %v3442_v60 }
 0x571   :  { %3275 = vmatprep.subr.bf16.mxu1 %v4455_v35 }
 0x572   :  { %2322 = vmatpush1.bf16.msra.mxu0 %v4141_v37 }
 0x573   :  { %2323 = vmatprep.subr.bf16.mxu0 %v4151_v45 }
 0x576   :  { %2324 = vmatpush1.bf16.msra.mxu0 %v4157_v47 }
 0x577   :  { %2325 = vmatprep.subr.bf16.mxu0 %v4166_v54 }
 0x57a   :  { %2326 = vmatpush1.bf16.msra.mxu0 %v4172_v55 }
 0x57b   :  { %2327 = vmatprep.subr.bf16.mxu0 %v4182_v61 }
 0x57e   :  { %2328 = vmatpush1.bf16.msra.mxu0 %v4188_v63 }
 0x57f   :  { %2329 = vmatprep.subr.bf16.mxu0 %v4198_v3 }
 0x582   :  { %2330 = vmatpush1.bf16.msra.mxu0 %v4204_v58 }
 0x583   :  { %2603 = vmatprep.subr.bf16.mxu0 %v4088_v48  ;;  %v3443_v48 = vld [vmem:[%s4441_s3 + $0x50] ss:$12 sps:$4 sm:$0xff]  }
 0x584   :  { %3276 = vmatpush3.bf16.msra.mxu1 %v3443_v48 }
 0x585   :  { %3277 = vmatprep.subr.bf16.mxu1 %v4455_v35 }
 0x588   :  { %3278 = vmatpush3.bf16.msra.mxu1 %v3444_v51 }
 0x589   :  { %3279 = vmatprep.subr.bf16.mxu1 %v4455_v35 }
 0x58c   :  { %3280 = vmatpush3.bf16.msra.mxu1 %v3445_v2 }
 0x58d   :  { %3281 = vmatprep.subr.bf16.mxu1 %v4455_v35 }
 0x590   :  { %3282 = vmatpush3.bf16.msra.mxu1 %v3446_v6 }
 0x591   :  { %3283 = vmatprep.subr.bf16.mxu1 %v4455_v35 }
 0x594   :  { %3284 = vmatpush3.bf16.msra.mxu1 %v3447_v15 }
 0x595   :  { %3289 = vmatprep.subr.bf16.mxu1 %v4455_v35 }
 0x638   :  { %v2061_v4 = vpop.f32.mrb[36].mxu0  ;;  %v2102_v49 = vpop.f32.mrb[28].mxu1 }
 0x639   :  { %v2062_v39 = vadd.f32 %v2061_v4, %v1887_v7  ;;  %v2063_v28 = vpop.f32.mrb[37].mxu0  ;;  %v3267_v38 = vpop.f32.mrb[29].mxu1  ;;  %v2103_v41 = vadd.f32 %v2102_v49, %v1895_v50 }
 0x63a   :  { %v2064_v9 = vadd.f32 %v2063_v28, %v1891_v10  ;;  %v2065_v40 = vpop.f32.mrb[38].mxu0  ;;  %v2105_v11 = vpop.f32.mrb[30].mxu1 }
 0x63b   :  { %v2108_v14 = vadd.f32 %v2062_v39, %v3912_v8  ;;  %v2066_v27 = vpop.f32.mrb[39].mxu0  ;;  %v3268_v32 = vpop.f32.mrb[31].mxu1 }
 0x63c   :  { %v2115_v36 = vadd.f32 %v2064_v9, %v3917_v12 }
 0x63d   :  { %v2948_v24 = vmul.f32 -1.442695, %v2108_v14 }
 0x63e   :  { %v2949_v44 = vmul.f32 -1.442695, %v2115_v36 }
 0x63f   :  { %3506 = vpow2.f32 %v2948_v24  ;;  %v2458_v24 = vld [vmem:[%s4444_s5] sm:$0x7] }
 0x640   :  { %3508 = vpow2.f32 %v2949_v44  ;;  %v2463_v44 = vrot.slane %v2458_v24, %v3873_v19 }
 0x649   :  { %v3507_v33 = vpop.eup %3506 }
 0x64a   :  { %v2112_v52 = vadd.f32 1.0, %v3507_v33  ;;  %v3509_v42 = vpop.eup %3508  ;;  %v2467_v33 = vrot.slane %v2458_v24, %v3878_v21 }
 0x64b   :  { %v2119_v59 = vadd.f32 1.0, %v3509_v42 }
 0x64c   :  { %3510 = vrcp.f32 %v2112_v52 }
 0x64d   :  { %3512 = vrcp.f32 %v2119_v59 }
 0x656   :  { %v3511_v62 = vpop.eup %3510 }
 0x657   :  { %v2122_v22 = vmul.f32 %v3511_v62, %v2103_v41  ;;  %v3513_v5 = vpop.eup %3512 }
 0x658   :  { %v2125_v12 = vsub.f32 1.0, %v3513_v5  ;;  %v2127_v25 = vmul.f32 %v3513_v5, %v4294_v53  ;;  %v4457_v5 = vld [vmem:[#allocation6_spill] sm:$0xff] }
 0x659   :  { %v2123_v8 = vadd.f32 %v2122_v22, %v3926_v17  ;;  %v3448_v17 = vld [vmem:[%s4441_s3 + $0x8] ss:$12 sps:$4 sm:$0xff]  }
 0x65b   :  { %3514 = vtanh.f32 %v2123_v8 }
 0x665   :  { %v3515_v56 = vpop.eup %3514 }
 0x666   :  { %v2126_v16 = vmul.f32 %v3515_v56, %v2125_v12 }
 0x668   :  { %v4359_v57 = vadd.f32 %v2127_v25, %v2126_v16  ;;  %v4458_v25 = vld [vmem:[#allocation7_spill] sm:$0xff] }
 0x66a   :  { %v2131_v13 = vpack.c.bf16 %v4359_v57, %v4359_v57  ;;  %v3031_v0 = vpack.c.bf16 %v4359_v57, %v4294_v53 }
 0x66c   :  { %2348 = vmatmul.mubr.bf16.vlgmr.msra.gmra.mrb[40].mxu0 %v2131_v13  ;;  %3039 = vst [vmem:[%s4445_s6 + $0x10] sm:$0xff] %v3031_v0   ;;  %3286 = vmatmul.mubr.bf16.vlgmr.msra.gmra.mrb[32].mxu1 %v2131_v13 }
 0x66d   :  { %2604 = vmatpush1.bf16.msra.mxu0 %v4093_v26  ;;  %2635 = vmatprep.mubr.bf16.mxu0 %v4454_v1  ;;  %v3449_v1 = vld [vmem:[%s4441_s3 + $0x20] ss:$12 sps:$4 sm:$0xff]   ;;  %v3450_v26 = vld [vmem:[%s4441_s3 + $0x38] ss:$12 sps:$4 sm:$0xff]  }
 0x66e   :  { %2605 = vmatprep.subr.bf16.mxu0 %v4103_v43  ;;  %3305 = vmatprep.mubr.msk.bf16.mxu1 %vm3538_vm0, %v4455_v35  ;;  %v3451_v43 = vld [vmem:[%s4441_s3 + $0x50] ss:$12 sps:$4 sm:$0xff]  }
 0x66f   :  { %3290 = vmatpush3.bf16.msra.mxu1 %v3448_v17 }
 0x670   :  { %3291 = vmatprep.subr.bf16.mxu1 %v4455_v35 }
 0x671   :  { %2606 = vmatpush1.bf16.msra.mxu0 %v4109_v23  ;;  %v3452_v23 = vld [vmem:[%s4441_s3 + $0x68] ss:$12 sps:$4 sm:$0xff]  }
 0x672   :  { %2607 = vmatprep.subr.bf16.mxu0 %v4119_v18  ;;  %v3453_v18 = vld [vmem:[%s4441_s3 + $0x80] ss:$12 sps:$4 sm:$0xff]  }
 0x673   :  { %3292 = vmatpush3.bf16.msra.mxu1 %v3449_v1  ;;  %v2471_v1 = vrot.slane %v2458_v24, %v3884_v31 }
 0x674   :  { %3293 = vmatprep.subr.bf16.mxu1 %v4455_v35 }
 0x675   :  { %2608 = vmatpush1.bf16.msra.mxu0 %v4125_v29  ;;  %v3454_v29 = vld [vmem:[%s4441_s3 + $0x98] ss:$12 sps:$4 sm:$0xff]  }
 0x676   :  { %2609 = vmatprep.subr.bf16.mxu0 %v4135_v34  ;;  %v3455_v34 = vld [vmem:[%s4441_s3 + $0xb0] ss:$12 sps:$4 sm:$0xff]  }
 0x677   :  { %3294 = vmatpush3.bf16.msra.mxu1 %v3450_v26 }
 0x678   :  { %3295 = vmatprep.subr.bf16.mxu1 %v4455_v35 }
 0x679   :  { %2610 = vmatpush1.bf16.msra.mxu0 %v4141_v37  ;;  %v2170_v37 = vld [vmem:[%s4444_s5] sm:$0x7] }
 0x67a   :  { %2611 = vmatprep.subr.bf16.mxu0 %v4151_v45  ;;  %v2175_v45 = vrot.slane %v2170_v37, %v3873_v19  ;;  %v2183_v4 = vrot.slane %v2170_v37, %v3884_v31 }
 0x67b   :  { %3296 = vmatpush3.bf16.msra.mxu1 %v3451_v43 }
 0x67c   :  { %3297 = vmatprep.subr.bf16.mxu1 %v4455_v35 }
 0x67d   :  { %2612 = vmatpush1.bf16.msra.mxu0 %v4157_v47  ;;  %v2179_v47 = vrot.slane %v2170_v37, %v3878_v21 }
 0x67e   :  { %2613 = vmatprep.subr.bf16.mxu0 %v4166_v54 }
 0x67f   :  { %3298 = vmatpush3.bf16.msra.mxu1 %v3452_v23 }
 0x680   :  { %3299 = vmatprep.subr.bf16.mxu1 %v4455_v35 }
 0x681   :  { %2614 = vmatpush1.bf16.msra.mxu0 %v4172_v55 }
 0x682   :  { %2615 = vmatprep.subr.bf16.mxu0 %v4182_v61 }
 0x683   :  { %3300 = vmatpush3.bf16.msra.mxu1 %v3453_v18 }
 0x684   :  { %3301 = vmatprep.subr.bf16.mxu1 %v4455_v35 }
 0x685   :  { %2616 = vmatpush1.bf16.msra.mxu0 %v4188_v63 }
 0x686   :  { %2617 = vmatprep.subr.bf16.mxu0 %v4198_v3 }
 0x687   :  { %3302 = vmatpush3.bf16.msra.mxu1 %v3454_v29  ;;  %v4459_v29 = vld [vmem:[#allocation5_spill] sm:$0xff] }
 0x688   :  { %3303 = vmatprep.subr.bf16.mxu1 %v4455_v35 }
 0x689   :  { %2618 = vmatpush1.bf16.msra.mxu0 %v4204_v58 }
 0x68b   :  { %3304 = vmatpush3.bf16.msra.mxu1 %v3455_v34 }
 0x73f   :  { %v2349_v54 = vpop.f32.mrb[40].mxu0  ;;  %v2390_v55 = vpop.f32.mrb[32].mxu1 }
 0x740   :  { %v2350_v61 = vadd.f32 %v2349_v54, %v2175_v45  ;;  %v2351_v63 = vpop.f32.mrb[41].mxu0  ;;  %v3287_v3 = vpop.f32.mrb[33].mxu1  ;;  %v2391_v39 = vadd.f32 %v2390_v55, %v2183_v4 }
 0x741   :  { %v2352_v58 = vadd.f32 %v2351_v63, %v2179_v47  ;;  %v2353_v53 = vpop.f32.mrb[42].mxu0  ;;  %v2393_v60 = vpop.f32.mrb[34].mxu1 }
 0x742   :  { %v2396_v48 = vadd.f32 %v2350_v61, %v3928_v20  ;;  %v2354_v35 = vpop.f32.mrb[43].mxu0  ;;  %v3288_v51 = vpop.f32.mrb[35].mxu1  ;;  %v4456_v20 = vld [vmem:[#allocation4_spill] sm:$0xff] }
 0x743   :  { %v2403_v2 = vadd.f32 %v2352_v58, %v3930_v30 }
 0x744   :  { %v2974_v6 = vmul.f32 -1.442695, %v2396_v48 }
 0x745   :  { %v2975_v15 = vmul.f32 -1.442695, %v2403_v2 }
 0x746   :  { %3516 = vpow2.f32 %v2974_v6 }
 0x747   :  { %3518 = vpow2.f32 %v2975_v15 }
 0x750   :  { %v3517_v46 = vpop.eup %3516 }
 0x751   :  { %v2400_v7 = vadd.f32 1.0, %v3517_v46  ;;  %v3519_v10 = vpop.eup %3518 }
 0x752   :  { %v2407_v49 = vadd.f32 1.0, %v3519_v10 }
 0x753   :  { %3520 = vrcp.f32 %v2400_v7 }
 0x754   :  { %3522 = vrcp.f32 %v2407_v49 }
 0x75d   :  { %v3521_v28 = vpop.eup %3520 }
 0x75e   :  { %v2410_v38 = vmul.f32 %v3521_v28, %v2391_v39  ;;  %v3523_v40 = vpop.eup %3522 }
 0x75f   :  { %v2413_v30 = vsub.f32 1.0, %v3523_v40  ;;  %v2415_v27 = vmul.f32 %v3523_v40, %v4359_v57 }
 0x760   :  { %v2411_v9 = vadd.f32 %v2410_v38, %v4456_v20 }
 0x762   :  { %3524 = vtanh.f32 %v2411_v9 }
 0x76c   :  { %v3525_v11 = vpop.eup %3524 }
 0x76d   :  { %v2414_v14 = vmul.f32 %v3525_v11, %v2413_v30 }
 0x76f   :  { %v2416_v32 = vadd.f32 %v2415_v27, %v2414_v14 }
 0x771   :  { %v2419_v36 = vpack.c.bf16 %v2416_v32, %v2416_v32 }
 0x773   :  { %2636 = vmatmul.mubr.bf16.vlgmr.msra.gmra.mrb[44].mxu0 %v2419_v36  ;;  %3306 = vmatmul.mubr.bf16.vlgmr.msra.gmra.mrb[36].mxu1 %v2419_v36 }
 0x846   :  { %v2637_v52 = vpop.f32.mrb[44].mxu0  ;;  %v2678_v42 = vpop.f32.mrb[36].mxu1 }
 0x847   :  { %v2638_v50 = vadd.f32 %v2637_v52, %v2463_v44  ;;  %v2639_v59 = vpop.f32.mrb[45].mxu0  ;;  %v3307_v41 = vpop.f32.mrb[37].mxu1  ;;  %v2679_v43 = vadd.f32 %v2678_v42, %v2471_v1 }
 0x848   :  { %v2640_v62 = vadd.f32 %v2639_v59, %v2467_v33  ;;  %v2641_v22 = vpop.f32.mrb[46].mxu0  ;;  %v2681_v8 = vpop.f32.mrb[38].mxu1 }
 0x849   :  { %v2684_v12 = vadd.f32 %v2638_v50, %v4457_v5  ;;  %v2642_v56 = vpop.f32.mrb[47].mxu0  ;;  %v3308_v16 = vpop.f32.mrb[39].mxu1 }
 0x84a   :  { %v2691_v57 = vadd.f32 %v2640_v62, %v4458_v25 }
 0x84b   :  { %v3000_v13 = vmul.f32 -1.442695, %v2684_v12 }
 0x84c   :  { %v3001_v0 = vmul.f32 -1.442695, %v2691_v57 }
 0x84d   :  { %3526 = vpow2.f32 %v3000_v13 }
 0x84e   :  { %3528 = vpow2.f32 %v3001_v0 }
 0x857   :  { %v3527_v19 = vpop.eup %3526 }
 0x858   :  { %v2688_v21 = vadd.f32 1.0, %v3527_v19  ;;  %v3529_v17 = vpop.eup %3528 }
 0x859   :  { %v2695_v26 = vadd.f32 1.0, %v3529_v17 }
 0x85a   :  { %3530 = vrcp.f32 %v2688_v21 }
 0x85b   :  { %3532 = vrcp.f32 %v2695_v26 }
 0x864   :  { %v3531_v23 = vpop.eup %3530 }
 0x865   :  { %v2698_v18 = vmul.f32 %v3531_v23, %v2679_v43  ;;  %v3533_v37 = vpop.eup %3532 }
 0x866   :  { %v2701_v45 = vsub.f32 1.0, %v3533_v37  ;;  %v2703_v55 = vmul.f32 %v3533_v37, %v2416_v32 }
 0x867   :  { %v2699_v34 = vadd.f32 %v2698_v18, %v4459_v29 }
 0x869   :  { %3534 = vtanh.f32 %v2699_v34 }
 0x873   :  { %v3535_v47 = vpop.eup %3534 }
 0x874   :  { %v2702_v54 = vmul.f32 %v3535_v47, %v2701_v45 }
 0x876   :  { %v2704_v61 = vadd.f32 %v2703_v55, %v2702_v54 }
 0x878   :  { %v3036_v63 = vpack.c.bf16 %v2704_v61, %v2416_v32 }
 0x87a   :  { %3040 = vst [vmem:[%s4445_s6 + $0x18] sm:$0xff] %v3036_v63  }

</bundles_post_ra>
